<compile_context>
chip_gen: v7x
topology: tpu7x:2x2x1
jax: 0.10.0
libtpu: 0.0.40
codegen_flags: <defaults>
</compile_context>

<pallas_src>
import functools

import jax
import jax.numpy as jnp
import numpy as np
from jax.experimental import pallas as pl
from jax.experimental.pallas import tpu as pltpu

EPS = 1e-5
LANE = 128

_COMPILER_PARAMS = pltpu.CompilerParams(
    dimension_semantics=("parallel",),
    vmem_limit_bytes=64 * 1024 * 1024,
)


# ---------------------------------------------------------------------------
# Kernels
# ---------------------------------------------------------------------------
def _conv_core(w_ref, o_ref, stat_ref, xpad_ref, rh):
    """3x3 'SAME' conv of the (already written) xpad_ref interior.

    The nine taps are folded into one matmul per output-row chunk
    (K = 9 * Cin_pad), accumulated in f32 on the MXU; per-image sum and
    sum-of-squares are accumulated for the global BatchNorm statistics.
    """
    hp, wp, cin = xpad_ref.shape
    ho, wo = hp - 2, wp - 2
    cout = o_ref.shape[-1]
    s = jnp.zeros((1, cout), jnp.float32)
    ss = jnp.zeros((1, cout), jnp.float32)
    for r0 in range(0, ho, rh):  # static unroll over output-row chunks
        taps = [
            xpad_ref[r0 + dh:r0 + dh + rh, dw:dw + wo, :].reshape(rh * wo, cin)
            for dh in range(3) for dw in range(3)
        ]
        a = jnp.concatenate(taps, axis=1)                  # (rh*wo, 9*cin) bf16
        acc = jnp.dot(a, w_ref[...], preferred_element_type=jnp.float32)
        o_ref[0, r0 * wo:(r0 + rh) * wo, :] = acc
        s = s + jnp.sum(acc, axis=0, keepdims=True)
        ss = ss + jnp.sum(acc * acc, axis=0, keepdims=True)
    stat_ref[0, 0:1, :] = s
    stat_ref[0, 1:2, :] = ss


def _pool_conv_kernel(x_ref, w_ref, o_ref, stat_ref, xpad_ref, *, rh):
    # x_ref: (1, Ho, 2, Wo, 2*Cp) bf16 -- the 2x2 pool window exposed by a free
    # row-major reshape in the wrapper.  Pool is fused here (never hits HBM).
    cp = x_ref.shape[-1] // 2
    t00 = x_ref[0, :, 0, :, 0:cp]
    t01 = x_ref[0, :, 0, :, cp:2 * cp]
    t10 = x_ref[0, :, 1, :, 0:cp]
    t11 = x_ref[0, :, 1, :, cp:2 * cp]
    pooled = jnp.maximum(jnp.maximum(t00, t01), jnp.maximum(t10, t11))
    ho, wo = pooled.shape[0], pooled.shape[1]
    xpad_ref[...] = jnp.zeros(xpad_ref.shape, xpad_ref.dtype)   # zero halo
    xpad_ref[1:1 + ho, 1:1 + wo, :] = pooled
    _conv_core(w_ref, o_ref, stat_ref, xpad_ref, rh)


def _conv_kernel(x_ref, w_ref, o_ref, stat_ref, xpad_ref, *, rh):
    # x_ref: (1, Ho, Wo, Cp) bf16 (already BN+ReLU normalized activation)
    ho, wo = x_ref.shape[1], x_ref.shape[2]
    xpad_ref[...] = jnp.zeros(xpad_ref.shape, xpad_ref.dtype)   # zero halo
    xpad_ref[1:1 + ho, 1:1 + wo, :] = x_ref[0]
    _conv_core(w_ref, o_ref, stat_ref, xpad_ref, rh)


def _bn_relu_kernel(y_ref, scale_ref, shift_ref, o_ref):
    # y_ref: (TN, Cp) f32 raw conv rows; scale/shift: (1, Cp) precomputed from
    # the GLOBAL batch statistics.  Lane-dense, row-tiled elementwise pass.
    y = y_ref[...] * scale_ref[...] + shift_ref[...]
    o_ref[...] = jnp.maximum(y, 0.0).astype(o_ref.dtype)


# ---------------------------------------------------------------------------
# Wrapper glue (layout, parameter packing, pallas_call plumbing)
# ---------------------------------------------------------------------------
def _round_up(n, m):
    return ((n + m - 1) // m) * m


def _pick_rh(ho, wo, target_rows=512):
    """Output-row chunk so each matmul has ~target_rows M-rows; divides ho."""
    rh = max(1, min(ho, max(1, target_rows // wo)))
    while ho % rh:
        rh -= 1
    return rh


def _pick_tn(n, cap=2048):
    """Row-tile for the elementwise BN kernel (multiple of 8, divides n)."""
    tn = min(n, cap)
    tn -= tn % 8
    while n % tn:
        tn -= 8
    return tn


def _fold_weights(w_hwio, cin_p, cout_p):
    """(3,3,Cin,Cout) -> zero-padded, folded (9*Cin_p, Cout_p) bf16 matrix.

    Row index = (dh*3 + dw) * Cin_p + c, matching the in-kernel tap concat."""
    kh, kw, cin, cout = w_hwio.shape
    w = jnp.zeros((kh, kw, cin_p, cout_p), jnp.float32)
    w = w.at[:, :, :cin, :cout].set(w_hwio)
    return w.reshape(kh * kw * cin_p, cout_p).astype(jnp.bfloat16)


def _pad_vec(v, cp):
    return jnp.zeros((cp,), jnp.float32).at[: v.shape[0]].set(v)


def _conv_layer(x_blocks, w_fold, *, pool, ho, wo):
    """Returns raw conv output (B, Ho*Wo, Cp_out) f32 and per-image
    [sum, sumsq] stats (B, 2, Cp_out) f32."""
    b = x_blocks.shape[0]
    cin_p = x_blocks.shape[-1] // 2 if pool else x_blocks.shape[-1]
    cout_p = w_fold.shape[-1]
    rh = _pick_rh(ho, wo)
    kernel = functools.partial(_pool_conv_kernel if pool else _conv_kernel, rh=rh)
    blk = (1,) + tuple(x_blocks.shape[1:])
    zeros = (0,) * (x_blocks.ndim - 1)
    in_map = lambda i: (i,) + zeros                       # noqa: E731
    grid_spec = pltpu.PrefetchScalarGridSpec(
        num_scalar_prefetch=0,
        grid=(b,),
        in_specs=[
            pl.BlockSpec(blk, in_map),
            pl.BlockSpec(w_fold.shape, lambda i: (0, 0)),  # resident weights
        ],
        out_specs=[
            pl.BlockSpec((1, ho * wo, cout_p), lambda i: (i, 0, 0)),
            pl.BlockSpec((1, 2, cout_p), lambda i: (i, 0, 0)),
        ],
        scratch_shapes=[pltpu.VMEM((ho + 2, wo + 2, cin_p), jnp.bfloat16)],
    )
    return pl.pallas_call(
        kernel,
        out_shape=(
            jax.ShapeDtypeStruct((b, ho * wo, cout_p), jnp.float32),
            jax.ShapeDtypeStruct((b, 2, cout_p), jnp.float32),
        ),
        grid_spec=grid_spec,
        compiler_params=_COMPILER_PARAMS,
    )(x_blocks, w_fold)


def _bn_relu_layer(conv_raw, stats, gamma_p, beta_p, count, out_dtype):
    b, n_img, cp = conv_raw.shape
    # Tiny global reduction of the per-image partial sums (kept "parallel"
    # friendly for v7x by not accumulating across the batch grid axis).
    s = jnp.sum(stats[:, 0, :], axis=0)
    ss = jnp.sum(stats[:, 1, :], axis=0)
    mean = s / count
    var = jnp.maximum(ss / count - mean * mean, 0.0)      # biased variance
    inv = jax.lax.rsqrt(var + EPS)
    scale = (gamma_p * inv).reshape(1, cp)
    shift = (beta_p - mean * gamma_p * inv).reshape(1, cp)

    y = conv_raw.reshape(b * n_img, cp)
    ntot = b * n_img
    tn = _pick_tn(ntot)
    return pl.pallas_call(
        _bn_relu_kernel,
        out_shape=jax.ShapeDtypeStruct((ntot, cp), out_dtype),
        grid_spec=pltpu.PrefetchScalarGridSpec(
            num_scalar_prefetch=0,
            grid=(ntot // tn,),
            in_specs=[
                pl.BlockSpec((tn, cp), lambda i: (i, 0)),
                pl.BlockSpec((1, cp), lambda i: (0, 0)),
                pl.BlockSpec((1, cp), lambda i: (0, 0)),
            ],
            out_specs=pl.BlockSpec((tn, cp), lambda i: (i, 0)),
        ),
        compiler_params=_COMPILER_PARAMS,
    )(y, scale, shift)


def down_forward(x_nchw, params):
    """Down.forward: maxpool(2,2) -> (conv3x3 -> BN -> ReLU) x 2.  NCHW in/out."""
    b, cin, h, w = x_nchw.shape
    assert h % 2 == 0 and w % 2 == 0, "MaxPool2d(2,2) needs even spatial dims"
    ho, wo = h // 2, w // 2
    assert wo % 8 == 0, "demo kernel assumes pooled width is a multiple of 8"
    cout = params["w1"].shape[-1]
    cin_p, cout_p = _round_up(cin, LANE), _round_up(cout, LANE)

    # One NCHW->NHWC transpose + lane padding + bf16 cast.  The 5-D view that
    # exposes the 2x2 pool window to the kernel is a free row-major reshape.
    x = jnp.transpose(x_nchw, (0, 2, 3, 1))
    x = jnp.pad(x, ((0, 0), (0, 0), (0, 0), (0, cin_p - cin))).astype(jnp.bfloat16)
    x5 = x.reshape(b, ho, 2, wo, 2 * cin_p)

    w1 = _fold_weights(params["w1"], cin_p, cout_p)
    w2 = _fold_weights(params["w2"], cout_p, cout_p)
    g1, b1 = _pad_vec(params["g1"], cout_p), _pad_vec(params["b1"], cout_p)
    g2, b2 = _pad_vec(params["g2"], cout_p), _pad_vec(params["b2"], cout_p)
    count = b * ho * wo

    conv1, st1 = _conv_layer(x5, w1, pool=True, ho=ho, wo=wo)
    h1 = _bn_relu_layer(conv1, st1, g1, b1, count, jnp.bfloat16)
    h1 = h1.reshape(b, ho, wo, cout_p)

    conv2, st2 = _conv_layer(h1, w2, pool=False, ho=ho, wo=wo)
    h2 = _bn_relu_layer(conv2, st2, g2, b2, count, jnp.float32)
    h2 = h2.reshape(b, ho, wo, cout_p)[..., :cout]
    return jnp.transpose(h2, (0, 3, 1, 2))


# ---------------------------------------------------------------------------
# Pure-JAX f32 reference (module semantics) for the correctness check
# ---------------------------------------------------------------------------
def ref_forward(x_nchw, params):
    x = jnp.transpose(x_nchw, (0, 2, 3, 1))
    x = jax.lax.reduce_window(x, -jnp.inf, jax.lax.max,
                              (1, 2, 2, 1), (1, 2, 2, 1), "VALID")

    def block(h_, w_, g, bt):
        y = jax.lax.conv_general_dilated(
            h_, w_, (1, 1), "SAME",
            dimension_numbers=("NHWC", "HWIO", "NHWC"))
        mean = jnp.mean(y, axis=(0, 1, 2))
        var = jnp.mean((y - mean) ** 2, axis=(0, 1, 2))   # biased (training BN)
        y = (y - mean) * jax.lax.rsqrt(var + EPS) * g + bt
        return jnp.maximum(y, 0.0)

    h = block(x, params["w1"], params["g1"], params["b1"])
    h = block(h, params["w2"], params["g2"], params["b2"])
    return jnp.transpose(h, (0, 3, 1, 2))


# ---------------------------------------------------------------------------
if __name__ == "__main__":
    key = jax.random.PRNGKey(0)
    B, CIN, H, W = 2, 4, 16, 16
    COUT = 8

    k = jax.random.split(key, 7)
    x = jax.random.normal(k[0], (B, CIN, H, W), jnp.float32)
    # Synthetic parameters; conv weights are kept in HWIO layout.
    params = dict(
        w1=0.1 * jax.random.normal(k[1], (3, 3, CIN, COUT), jnp.float32),
        g1=1.0 + 0.1 * jax.random.normal(k[2], (COUT,), jnp.float32),
        b1=0.1 * jax.random.normal(k[3], (COUT,), jnp.float32),
        w2=0.1 * jax.random.normal(k[4], (3, 3, COUT, COUT), jnp.float32),
        g2=1.0 + 0.1 * jax.random.normal(k[5], (COUT,), jnp.float32),
        b2=0.1 * jax.random.normal(k[6], (COUT,), jnp.float32),
    )

    out = jax.jit(down_forward)(x, params)
    out = jax.block_until_ready(out)
    assert out.shape == (B, COUT, H // 2, W // 2)

    ref = ref_forward(x, params)
    # bf16 MXU operands (f32 accumulate / f32 BN) -> compare vs f32 reference
    # with a correspondingly relaxed tolerance.
    np.testing.assert_allclose(np.asarray(out), np.asarray(ref),
                               rtol=2e-2, atol=2e-2)
    print("KERNEL_OK")
</pallas_src>

<mosaic_0001>
module attributes {stable_mosaic.version = 11 : i64} {
  func.func @_pool_conv_kernel(%arg0: i32, %arg1: memref<1x8x2x8x256xbf16, #tpu.memory_space<vmem>>, %arg2: memref<1152x128xbf16, #tpu.memory_space<vmem>>, %arg3: memref<1x64x128xf32, #tpu.memory_space<vmem>>, %arg4: memref<1x2x128xf32, #tpu.memory_space<vmem>>, %arg5: memref<10x10x128xbf16, #tpu.memory_space<vmem>>) attributes {dimension_semantics = [#tpu.dimension_semantics<parallel>], iteration_bounds = array<i64: 2>, scalar_prefetch = 0 : i64, scratch_operands = 1 : i64, tpu.core_type = #tpu.core_type<tc>, window_params = [{transform_indices = @transform_0, window_bounds = array<i64: 1, 8, 2, 8, 256>}, {pipeline_mode = #tpu.pipeline_mode<synchronous>, transform_indices = @transform_1, window_bounds = array<i64: 1152, 128>}, {transform_indices = @transform_2, window_bounds = array<i64: 1, 64, 128>}, {transform_indices = @transform_3, window_bounds = array<i64: 1, 2, 128>}]} {
    %c0 = arith.constant 0 : index
    %c0_0 = arith.constant 0 : index
    %c0_1 = arith.constant 0 : index
    %c0_2 = arith.constant 0 : index
    %c0_3 = arith.constant 0 : index
    %0 = vector.load %arg1[%c0, %c0_0, %c0_1, %c0_2, %c0_3] : memref<1x8x2x8x256xbf16, #tpu.memory_space<vmem>>, vector<1x8x1x8x128xbf16>
    %1 = vector.shape_cast %0 : vector<1x8x1x8x128xbf16> to vector<8x8x128xbf16>
    %c0_4 = arith.constant 0 : index
    %c0_5 = arith.constant 0 : index
    %c0_6 = arith.constant 0 : index
    %c0_7 = arith.constant 0 : index
    %c128 = arith.constant 128 : index
    %2 = vector.load %arg1[%c0_4, %c0_5, %c0_6, %c0_7, %c128] : memref<1x8x2x8x256xbf16, #tpu.memory_space<vmem>>, vector<1x8x1x8x128xbf16>
    %3 = vector.shape_cast %2 : vector<1x8x1x8x128xbf16> to vector<8x8x128xbf16>
    %c0_8 = arith.constant 0 : index
    %c0_9 = arith.constant 0 : index
    %c1 = arith.constant 1 : index
    %c0_10 = arith.constant 0 : index
    %c0_11 = arith.constant 0 : index
    %4 = vector.load %arg1[%c0_8, %c0_9, %c1, %c0_10, %c0_11] : memref<1x8x2x8x256xbf16, #tpu.memory_space<vmem>>, vector<1x8x1x8x128xbf16>
    %5 = vector.shape_cast %4 : vector<1x8x1x8x128xbf16> to vector<8x8x128xbf16>
    %c0_12 = arith.constant 0 : index
    %c0_13 = arith.constant 0 : index
    %c1_14 = arith.constant 1 : index
    %c0_15 = arith.constant 0 : index
    %c128_16 = arith.constant 128 : index
    %6 = vector.load %arg1[%c0_12, %c0_13, %c1_14, %c0_15, %c128_16] : memref<1x8x2x8x256xbf16, #tpu.memory_space<vmem>>, vector<1x8x1x8x128xbf16>
    %7 = vector.shape_cast %6 : vector<1x8x1x8x128xbf16> to vector<8x8x128xbf16>
    %8 = arith.maximumf %1, %3 : vector<8x8x128xbf16>
    %9 = arith.maximumf %5, %7 : vector<8x8x128xbf16>
    %10 = arith.maximumf %8, %9 : vector<8x8x128xbf16>
    %cst = arith.constant 0.000000e+00 : bf16
    %11 = vector.broadcast %cst : bf16 to vector<10x10x128xbf16>
    %c0_17 = arith.constant 0 : index
    %c0_18 = arith.constant 0 : index
    %c0_19 = arith.constant 0 : index
    %12 = vector.load %arg5[%c0_17, %c0_18, %c0_19] : memref<10x10x128xbf16, #tpu.memory_space<vmem>>, vector<10x10x128xbf16>
    tpu.vector_store %arg5[%c0_17, %c0_18, %c0_19], %11 {strides = array<i32>} : memref<10x10x128xbf16, #tpu.memory_space<vmem>>, vector<10x10x128xbf16>,
    %c1_20 = arith.constant 1 : index
    %c1_21 = arith.constant 1 : index
    %c0_22 = arith.constant 0 : index
    %13 = vector.load %arg5[%c1_20, %c1_21, %c0_22] : memref<10x10x128xbf16, #tpu.memory_space<vmem>>, vector<8x8x128xbf16>
    tpu.vector_store %arg5[%c1_20, %c1_21, %c0_22], %10 {strides = array<i32>} : memref<10x10x128xbf16, #tpu.memory_space<vmem>>, vector<8x8x128xbf16>,
    %cst_23 = arith.constant 0.000000e+00 : f32
    %14 = vector.broadcast %cst_23 : f32 to vector<1x128xf32>
    %cst_24 = arith.constant 0.000000e+00 : f32
    %15 = vector.broadcast %cst_24 : f32 to vector<1x128xf32>
    %c0_25 = arith.constant 0 : index
    %c0_26 = arith.constant 0 : index
    %c0_27 = arith.constant 0 : index
    %16 = vector.load %arg5[%c0_25, %c0_26, %c0_27] : memref<10x10x128xbf16, #tpu.memory_space<vmem>>, vector<8x8x128xbf16>
    %17 = vector.shape_cast %16 : vector<8x8x128xbf16> to vector<64x128xbf16>
    %c0_28 = arith.constant 0 : index
    %c1_29 = arith.constant 1 : index
    %c0_30 = arith.constant 0 : index
    %18 = vector.load %arg5[%c0_28, %c1_29, %c0_30] : memref<10x10x128xbf16, #tpu.memory_space<vmem>>, vector<8x8x128xbf16>
    %19 = vector.shape_cast %18 : vector<8x8x128xbf16> to vector<64x128xbf16>
    %c0_31 = arith.constant 0 : index
    %c2 = arith.constant 2 : index
    %c0_32 = arith.constant 0 : index
    %20 = vector.load %arg5[%c0_31, %c2, %c0_32] : memref<10x10x128xbf16, #tpu.memory_space<vmem>>, vector<8x8x128xbf16>
    %21 = vector.shape_cast %20 : vector<8x8x128xbf16> to vector<64x128xbf16>
    %c1_33 = arith.constant 1 : index
    %c0_34 = arith.constant 0 : index
    %c0_35 = arith.constant 0 : index
    %22 = vector.load %arg5[%c1_33, %c0_34, %c0_35] : memref<10x10x128xbf16, #tpu.memory_space<vmem>>, vector<8x8x128xbf16>
    %23 = vector.shape_cast %22 : vector<8x8x128xbf16> to vector<64x128xbf16>
    %c1_36 = arith.constant 1 : index
    %c1_37 = arith.constant 1 : index
    %c0_38 = arith.constant 0 : index
    %24 = vector.load %arg5[%c1_36, %c1_37, %c0_38] : memref<10x10x128xbf16, #tpu.memory_space<vmem>>, vector<8x8x128xbf16>
    %25 = vector.shape_cast %24 : vector<8x8x128xbf16> to vector<64x128xbf16>
    %c1_39 = arith.constant 1 : index
    %c2_40 = arith.constant 2 : index
    %c0_41 = arith.constant 0 : index
    %26 = vector.load %arg5[%c1_39, %c2_40, %c0_41] : memref<10x10x128xbf16, #tpu.memory_space<vmem>>, vector<8x8x128xbf16>
    %27 = vector.shape_cast %26 : vector<8x8x128xbf16> to vector<64x128xbf16>
    %c2_42 = arith.constant 2 : index
    %c0_43 = arith.constant 0 : index
    %c0_44 = arith.constant 0 : index
    %28 = vector.load %arg5[%c2_42, %c0_43, %c0_44] : memref<10x10x128xbf16, #tpu.memory_space<vmem>>, vector<8x8x128xbf16>
    %29 = vector.shape_cast %28 : vector<8x8x128xbf16> to vector<64x128xbf16>
    %c2_45 = arith.constant 2 : index
    %c1_46 = arith.constant 1 : index
    %c0_47 = arith.constant 0 : index
    %30 = vector.load %arg5[%c2_45, %c1_46, %c0_47] : memref<10x10x128xbf16, #tpu.memory_space<vmem>>, vector<8x8x128xbf16>
    %31 = vector.shape_cast %30 : vector<8x8x128xbf16> to vector<64x128xbf16>
    %c2_48 = arith.constant 2 : index
    %c2_49 = arith.constant 2 : index
    %c0_50 = arith.constant 0 : index
    %32 = vector.load %arg5[%c2_48, %c2_49, %c0_50] : memref<10x10x128xbf16, #tpu.memory_space<vmem>>, vector<8x8x128xbf16>
    %33 = vector.shape_cast %32 : vector<8x8x128xbf16> to vector<64x128xbf16>
    %34 = tpu.concatenate %17, %19, %21, %23, %25, %27, %29, %31, %33 in 1 : vector<64x128xbf16>, vector<64x128xbf16>, vector<64x128xbf16>, vector<64x128xbf16>, vector<64x128xbf16>, vector<64x128xbf16>, vector<64x128xbf16>, vector<64x128xbf16>, vector<64x128xbf16> -> vector<64x1152xbf16>
    %c0_51 = arith.constant 0 : index
    %c0_52 = arith.constant 0 : index
    %35 = vector.load %arg2[%c0_51, %c0_52] : memref<1152x128xbf16, #tpu.memory_space<vmem>>, vector<1152x128xbf16>
    %cst_53 = arith.constant dense<0.000000e+00> : vector<64x128xf32>
    %36 = tpu.matmul %34, %35, %cst_53 {dimension_numbers = #tpu.dot_dimension_numbers<[1], [0], [0], [1], [0, 0, 1, 1], [], []>} : vector<64x1152xbf16>, vector<1152x128xbf16>, vector<64x128xf32> -> vector<64x128xf32>
    %c0_54 = arith.constant 0 : index
    %c0_55 = arith.constant 0 : index
    %c0_56 = arith.constant 0 : index
    %37 = vector.load %arg3[%c0_54, %c0_55, %c0_56] : memref<1x64x128xf32, #tpu.memory_space<vmem>>, vector<1x64x128xf32>
    %38 = vector.shape_cast %37 : vector<1x64x128xf32> to vector<64x128xf32>
    %39 = vector.shape_cast %36 : vector<64x128xf32> to vector<1x64x128xf32>
    tpu.vector_store %arg3[%c0_54, %c0_55, %c0_56], %39 {strides = array<i32>} : memref<1x64x128xf32, #tpu.memory_space<vmem>>, vector<1x64x128xf32>,
    %cst_57 = arith.constant dense<0.000000e+00> : vector<128xf32>
    %40 = vector.multi_reduction <add>, %36, %cst_57 [0] : vector<64x128xf32> to vector<128xf32>
    %41 = vector.shape_cast %40 : vector<128xf32> to vector<1x128xf32>
    %42 = arith.addf %14, %41 : vector<1x128xf32>
    %43 = arith.mulf %36, %36 : vector<64x128xf32>
    %cst_58 = arith.constant dense<0.000000e+00> : vector<128xf32>
    %44 = vector.multi_reduction <add>, %43, %cst_58 [0] : vector<64x128xf32> to vector<128xf32>
    %45 = vector.shape_cast %44 : vector<128xf32> to vector<1x128xf32>
    %46 = arith.addf %15, %45 : vector<1x128xf32>
    %c0_59 = arith.constant 0 : index
    %c0_60 = arith.constant 0 : index
    %c0_61 = arith.constant 0 : index
    %47 = vector.load %arg4[%c0_59, %c0_60, %c0_61] : memref<1x2x128xf32, #tpu.memory_space<vmem>>, vector<1x1x128xf32>
    %48 = vector.shape_cast %47 : vector<1x1x128xf32> to vector<1x128xf32>
    %49 = vector.shape_cast %42 : vector<1x128xf32> to vector<1x1x128xf32>
    tpu.vector_store %arg4[%c0_59, %c0_60, %c0_61], %49 {strides = array<i32>} : memref<1x2x128xf32, #tpu.memory_space<vmem>>, vector<1x1x128xf32>,
    %c0_62 = arith.constant 0 : index
    %c1_63 = arith.constant 1 : index
    %c0_64 = arith.constant 0 : index
    %50 = vector.load %arg4[%c0_62, %c1_63, %c0_64] : memref<1x2x128xf32, #tpu.memory_space<vmem>>, vector<1x1x128xf32>
    %51 = vector.shape_cast %50 : vector<1x1x128xf32> to vector<1x128xf32>
    %52 = vector.shape_cast %46 : vector<1x128xf32> to vector<1x1x128xf32>
    tpu.vector_store %arg4[%c0_62, %c1_63, %c0_64], %52 {strides = array<i32>} : memref<1x2x128xf32, #tpu.memory_space<vmem>>, vector<1x1x128xf32>,
    return
  }
  func.func @transform_0(%arg0: i32) -> (i32, i32, i32, i32, i32) {
    %c0_i32 = arith.constant 0 : i32
    %c0_i32_0 = arith.constant 0 : i32
    %c0_i32_1 = arith.constant 0 : i32
    %c0_i32_2 = arith.constant 0 : i32
    %c0_i32_3 = arith.constant 0 : i32
    return %arg0, %c0_i32, %c0_i32_0, %c0_i32_1, %c0_i32_2 : i32, i32, i32, i32, i32
  }
  func.func @transform_1(%arg0: i32) -> (i32, i32) {
    %c0_i32 = arith.constant 0 : i32
    %c0_i32_0 = arith.constant 0 : i32
    %c0_i32_1 = arith.constant 0 : i32
    return %c0_i32, %c0_i32_0 : i32, i32
  }
  func.func @transform_2(%arg0: i32) -> (i32, i32, i32) {
    %c0_i32 = arith.constant 0 : i32
    %c0_i32_0 = arith.constant 0 : i32
    %c0_i32_1 = arith.constant 0 : i32
    return %arg0, %c0_i32, %c0_i32_0 : i32, i32, i32
  }
  func.func @transform_3(%arg0: i32) -> (i32, i32, i32) {
    %c0_i32 = arith.constant 0 : i32
    %c0_i32_0 = arith.constant 0 : i32
    %c0_i32_1 = arith.constant 0 : i32
    return %arg0, %c0_i32, %c0_i32_0 : i32, i32, i32
  }
}

module attributes {stable_mosaic.version = 11 : i64} {
  func.func @_bn_relu_kernel(%arg0: i32, %arg1: memref<128x128xf32, #tpu.memory_space<vmem>>, %arg2: memref<1x128xf32, #tpu.memory_space<vmem>>, %arg3: memref<1x128xf32, #tpu.memory_space<vmem>>, %arg4: memref<128x128xbf16, #tpu.memory_space<vmem>>) attributes {dimension_semantics = [#tpu.dimension_semantics<parallel>], iteration_bounds = array<i64: 1>, scalar_prefetch = 0 : i64, scratch_operands = 0 : i64, tpu.core_type = #tpu.core_type<tc>, window_params = [{transform_indices = @transform_0, window_bounds = array<i64: 128, 128>}, {pipeline_mode = #tpu.pipeline_mode<synchronous>, transform_indices = @transform_1, window_bounds = array<i64: 1, 128>}, {pipeline_mode = #tpu.pipeline_mode<synchronous>, transform_indices = @transform_2, window_bounds = array<i64: 1, 128>}, {transform_indices = @transform_3, window_bounds = array<i64: 128, 128>}]} {
    %c0 = arith.constant 0 : index
    %c0_0 = arith.constant 0 : index
    %0 = vector.load %arg1[%c0, %c0_0] : memref<128x128xf32, #tpu.memory_space<vmem>>, vector<128x128xf32>
    %c0_1 = arith.constant 0 : index
    %c0_2 = arith.constant 0 : index
    %1 = vector.load %arg2[%c0_1, %c0_2] : memref<1x128xf32, #tpu.memory_space<vmem>>, vector<1x128xf32>
    %2 = vector.broadcast %1 : vector<1x128xf32> to vector<128x128xf32>
    %3 = arith.mulf %0, %2 : vector<128x128xf32>
    %c0_3 = arith.constant 0 : index
    %c0_4 = arith.constant 0 : index
    %4 = vector.load %arg3[%c0_3, %c0_4] : memref<1x128xf32, #tpu.memory_space<vmem>>, vector<1x128xf32>
    %5 = vector.broadcast %4 : vector<1x128xf32> to vector<128x128xf32>
    %6 = arith.addf %3, %5 : vector<128x128xf32>
    %cst = arith.constant 0.000000e+00 : f32
    %7 = vector.broadcast %cst : f32 to vector<128x128xf32>
    %8 = arith.maximumf %6, %7 : vector<128x128xf32>
    %9 = arith.truncf %8 : vector<128x128xf32> to vector<128x128xbf16>
    %c0_5 = arith.constant 0 : index
    %c0_6 = arith.constant 0 : index
    %10 = vector.load %arg4[%c0_5, %c0_6] : memref<128x128xbf16, #tpu.memory_space<vmem>>, vector<128x128xbf16>
    tpu.vector_store %arg4[%c0_5, %c0_6], %9 {strides = array<i32>} : memref<128x128xbf16, #tpu.memory_space<vmem>>, vector<128x128xbf16>,
    return
  }
  func.func @transform_0(%arg0: i32) -> (i32, i32) {
    %c0_i32 = arith.constant 0 : i32
    %c0_i32_0 = arith.constant 0 : i32
    return %arg0, %c0_i32 : i32, i32
  }
  func.func @transform_1(%arg0: i32) -> (i32, i32) {
    %c0_i32 = arith.constant 0 : i32
    %c0_i32_0 = arith.constant 0 : i32
    %c0_i32_1 = arith.constant 0 : i32
    return %c0_i32, %c0_i32_0 : i32, i32
  }
  func.func @transform_2(%arg0: i32) -> (i32, i32) {
    %c0_i32 = arith.constant 0 : i32
    %c0_i32_0 = arith.constant 0 : i32
    %c0_i32_1 = arith.constant 0 : i32
    return %c0_i32, %c0_i32_0 : i32, i32
  }
  func.func @transform_3(%arg0: i32) -> (i32, i32) {
    %c0_i32 = arith.constant 0 : i32
    %c0_i32_0 = arith.constant 0 : i32
    return %arg0, %c0_i32 : i32, i32
  }
}

module attributes {stable_mosaic.version = 11 : i64} {
  func.func @_bn_relu_kernel(%arg0: i32, %arg1: memref<128x128xf32, #tpu.memory_space<vmem>>, %arg2: memref<1x128xf32, #tpu.memory_space<vmem>>, %arg3: memref<1x128xf32, #tpu.memory_space<vmem>>, %arg4: memref<128x128xf32, #tpu.memory_space<vmem>>) attributes {dimension_semantics = [#tpu.dimension_semantics<parallel>], iteration_bounds = array<i64: 1>, scalar_prefetch = 0 : i64, scratch_operands = 0 : i64, tpu.core_type = #tpu.core_type<tc>, window_params = [{transform_indices = @transform_0, window_bounds = array<i64: 128, 128>}, {pipeline_mode = #tpu.pipeline_mode<synchronous>, transform_indices = @transform_1, window_bounds = array<i64: 1, 128>}, {pipeline_mode = #tpu.pipeline_mode<synchronous>, transform_indices = @transform_2, window_bounds = array<i64: 1, 128>}, {transform_indices = @transform_3, window_bounds = array<i64: 128, 128>}]} {
    %c0 = arith.constant 0 : index
    %c0_0 = arith.constant 0 : index
    %0 = vector.load %arg1[%c0, %c0_0] : memref<128x128xf32, #tpu.memory_space<vmem>>, vector<128x128xf32>
    %c0_1 = arith.constant 0 : index
    %c0_2 = arith.constant 0 : index
    %1 = vector.load %arg2[%c0_1, %c0_2] : memref<1x128xf32, #tpu.memory_space<vmem>>, vector<1x128xf32>
    %2 = vector.broadcast %1 : vector<1x128xf32> to vector<128x128xf32>
    %3 = arith.mulf %0, %2 : vector<128x128xf32>
    %c0_3 = arith.constant 0 : index
    %c0_4 = arith.constant 0 : index
    %4 = vector.load %arg3[%c0_3, %c0_4] : memref<1x128xf32, #tpu.memory_space<vmem>>, vector<1x128xf32>
    %5 = vector.broadcast %4 : vector<1x128xf32> to vector<128x128xf32>
    %6 = arith.addf %3, %5 : vector<128x128xf32>
    %cst = arith.constant 0.000000e+00 : f32
    %7 = vector.broadcast %cst : f32 to vector<128x128xf32>
    %8 = arith.maximumf %6, %7 : vector<128x128xf32>
    %c0_5 = arith.constant 0 : index
    %c0_6 = arith.constant 0 : index
    %9 = vector.load %arg4[%c0_5, %c0_6] : memref<128x128xf32, #tpu.memory_space<vmem>>, vector<128x128xf32>
    tpu.vector_store %arg4[%c0_5, %c0_6], %8 {strides = array<i32>} : memref<128x128xf32, #tpu.memory_space<vmem>>, vector<128x128xf32>,
    return
  }
  func.func @transform_0(%arg0: i32) -> (i32, i32) {
    %c0_i32 = arith.constant 0 : i32
    %c0_i32_0 = arith.constant 0 : i32
    return %arg0, %c0_i32 : i32, i32
  }
  func.func @transform_1(%arg0: i32) -> (i32, i32) {
    %c0_i32 = arith.constant 0 : i32
    %c0_i32_0 = arith.constant 0 : i32
    %c0_i32_1 = arith.constant 0 : i32
    return %c0_i32, %c0_i32_0 : i32, i32
  }
  func.func @transform_2(%arg0: i32) -> (i32, i32) {
    %c0_i32 = arith.constant 0 : i32
    %c0_i32_0 = arith.constant 0 : i32
    %c0_i32_1 = arith.constant 0 : i32
    return %c0_i32, %c0_i32_0 : i32, i32
  }
  func.func @transform_3(%arg0: i32) -> (i32, i32) {
    %c0_i32 = arith.constant 0 : i32
    %c0_i32_0 = arith.constant 0 : i32
    return %arg0, %c0_i32 : i32, i32
  }
}

module attributes {stable_mosaic.version = 11 : i64} {
  func.func @_conv_kernel(%arg0: i32, %arg1: memref<1x8x8x128xbf16, #tpu.memory_space<vmem>>, %arg2: memref<1152x128xbf16, #tpu.memory_space<vmem>>, %arg3: memref<1x64x128xf32, #tpu.memory_space<vmem>>, %arg4: memref<1x2x128xf32, #tpu.memory_space<vmem>>, %arg5: memref<10x10x128xbf16, #tpu.memory_space<vmem>>) attributes {dimension_semantics = [#tpu.dimension_semantics<parallel>], iteration_bounds = array<i64: 2>, scalar_prefetch = 0 : i64, scratch_operands = 1 : i64, tpu.core_type = #tpu.core_type<tc>, window_params = [{transform_indices = @transform_0, window_bounds = array<i64: 1, 8, 8, 128>}, {pipeline_mode = #tpu.pipeline_mode<synchronous>, transform_indices = @transform_1, window_bounds = array<i64: 1152, 128>}, {transform_indices = @transform_2, window_bounds = array<i64: 1, 64, 128>}, {transform_indices = @transform_3, window_bounds = array<i64: 1, 2, 128>}]} {
    %cst = arith.constant 0.000000e+00 : bf16
    %0 = vector.broadcast %cst : bf16 to vector<10x10x128xbf16>
    %c0 = arith.constant 0 : index
    %c0_0 = arith.constant 0 : index
    %c0_1 = arith.constant 0 : index
    %1 = vector.load %arg5[%c0, %c0_0, %c0_1] : memref<10x10x128xbf16, #tpu.memory_space<vmem>>, vector<10x10x128xbf16>
    tpu.vector_store %arg5[%c0, %c0_0, %c0_1], %0 {strides = array<i32>} : memref<10x10x128xbf16, #tpu.memory_space<vmem>>, vector<10x10x128xbf16>,
    %c0_2 = arith.constant 0 : index
    %c0_3 = arith.constant 0 : index
    %c0_4 = arith.constant 0 : index
    %c0_5 = arith.constant 0 : index
    %2 = vector.load %arg1[%c0_2, %c0_3, %c0_4, %c0_5] : memref<1x8x8x128xbf16, #tpu.memory_space<vmem>>, vector<1x8x8x128xbf16>
    %3 = vector.shape_cast %2 : vector<1x8x8x128xbf16> to vector<8x8x128xbf16>
    %c1 = arith.constant 1 : index
    %c1_6 = arith.constant 1 : index
    %c0_7 = arith.constant 0 : index
    %4 = vector.load %arg5[%c1, %c1_6, %c0_7] : memref<10x10x128xbf16, #tpu.memory_space<vmem>>, vector<8x8x128xbf16>
    tpu.vector_store %arg5[%c1, %c1_6, %c0_7], %3 {strides = array<i32>} : memref<10x10x128xbf16, #tpu.memory_space<vmem>>, vector<8x8x128xbf16>,
    %cst_8 = arith.constant 0.000000e+00 : f32
    %5 = vector.broadcast %cst_8 : f32 to vector<1x128xf32>
    %cst_9 = arith.constant 0.000000e+00 : f32
    %6 = vector.broadcast %cst_9 : f32 to vector<1x128xf32>
    %c0_10 = arith.constant 0 : index
    %c0_11 = arith.constant 0 : index
    %c0_12 = arith.constant 0 : index
    %7 = vector.load %arg5[%c0_10, %c0_11, %c0_12] : memref<10x10x128xbf16, #tpu.memory_space<vmem>>, vector<8x8x128xbf16>
    %8 = vector.shape_cast %7 : vector<8x8x128xbf16> to vector<64x128xbf16>
    %c0_13 = arith.constant 0 : index
    %c1_14 = arith.constant 1 : index
    %c0_15 = arith.constant 0 : index
    %9 = vector.load %arg5[%c0_13, %c1_14, %c0_15] : memref<10x10x128xbf16, #tpu.memory_space<vmem>>, vector<8x8x128xbf16>
    %10 = vector.shape_cast %9 : vector<8x8x128xbf16> to vector<64x128xbf16>
    %c0_16 = arith.constant 0 : index
    %c2 = arith.constant 2 : index
    %c0_17 = arith.constant 0 : index
    %11 = vector.load %arg5[%c0_16, %c2, %c0_17] : memref<10x10x128xbf16, #tpu.memory_space<vmem>>, vector<8x8x128xbf16>
    %12 = vector.shape_cast %11 : vector<8x8x128xbf16> to vector<64x128xbf16>
    %c1_18 = arith.constant 1 : index
    %c0_19 = arith.constant 0 : index
    %c0_20 = arith.constant 0 : index
    %13 = vector.load %arg5[%c1_18, %c0_19, %c0_20] : memref<10x10x128xbf16, #tpu.memory_space<vmem>>, vector<8x8x128xbf16>
    %14 = vector.shape_cast %13 : vector<8x8x128xbf16> to vector<64x128xbf16>
    %c1_21 = arith.constant 1 : index
    %c1_22 = arith.constant 1 : index
    %c0_23 = arith.constant 0 : index
    %15 = vector.load %arg5[%c1_21, %c1_22, %c0_23] : memref<10x10x128xbf16, #tpu.memory_space<vmem>>, vector<8x8x128xbf16>
    %16 = vector.shape_cast %15 : vector<8x8x128xbf16> to vector<64x128xbf16>
    %c1_24 = arith.constant 1 : index
    %c2_25 = arith.constant 2 : index
    %c0_26 = arith.constant 0 : index
    %17 = vector.load %arg5[%c1_24, %c2_25, %c0_26] : memref<10x10x128xbf16, #tpu.memory_space<vmem>>, vector<8x8x128xbf16>
    %18 = vector.shape_cast %17 : vector<8x8x128xbf16> to vector<64x128xbf16>
    %c2_27 = arith.constant 2 : index
    %c0_28 = arith.constant 0 : index
    %c0_29 = arith.constant 0 : index
    %19 = vector.load %arg5[%c2_27, %c0_28, %c0_29] : memref<10x10x128xbf16, #tpu.memory_space<vmem>>, vector<8x8x128xbf16>
    %20 = vector.shape_cast %19 : vector<8x8x128xbf16> to vector<64x128xbf16>
    %c2_30 = arith.constant 2 : index
    %c1_31 = arith.constant 1 : index
    %c0_32 = arith.constant 0 : index
    %21 = vector.load %arg5[%c2_30, %c1_31, %c0_32] : memref<10x10x128xbf16, #tpu.memory_space<vmem>>, vector<8x8x128xbf16>
    %22 = vector.shape_cast %21 : vector<8x8x128xbf16> to vector<64x128xbf16>
    %c2_33 = arith.constant 2 : index
    %c2_34 = arith.constant 2 : index
    %c0_35 = arith.constant 0 : index
    %23 = vector.load %arg5[%c2_33, %c2_34, %c0_35] : memref<10x10x128xbf16, #tpu.memory_space<vmem>>, vector<8x8x128xbf16>
    %24 = vector.shape_cast %23 : vector<8x8x128xbf16> to vector<64x128xbf16>
    %25 = tpu.concatenate %8, %10, %12, %14, %16, %18, %20, %22, %24 in 1 : vector<64x128xbf16>, vector<64x128xbf16>, vector<64x128xbf16>, vector<64x128xbf16>, vector<64x128xbf16>, vector<64x128xbf16>, vector<64x128xbf16>, vector<64x128xbf16>, vector<64x128xbf16> -> vector<64x1152xbf16>
    %c0_36 = arith.constant 0 : index
    %c0_37 = arith.constant 0 : index
    %26 = vector.load %arg2[%c0_36, %c0_37] : memref<1152x128xbf16, #tpu.memory_space<vmem>>, vector<1152x128xbf16>
    %cst_38 = arith.constant dense<0.000000e+00> : vector<64x128xf32>
    %27 = tpu.matmul %25, %26, %cst_38 {dimension_numbers = #tpu.dot_dimension_numbers<[1], [0], [0], [1], [0, 0, 1, 1], [], []>} : vector<64x1152xbf16>, vector<1152x128xbf16>, vector<64x128xf32> -> vector<64x128xf32>
    %c0_39 = arith.constant 0 : index
    %c0_40 = arith.constant 0 : index
    %c0_41 = arith.constant 0 : index
    %28 = vector.load %arg3[%c0_39, %c0_40, %c0_41] : memref<1x64x128xf32, #tpu.memory_space<vmem>>, vector<1x64x128xf32>
    %29 = vector.shape_cast %28 : vector<1x64x128xf32> to vector<64x128xf32>
    %30 = vector.shape_cast %27 : vector<64x128xf32> to vector<1x64x128xf32>
    tpu.vector_store %arg3[%c0_39, %c0_40, %c0_41], %30 {strides = array<i32>} : memref<1x64x128xf32, #tpu.memory_space<vmem>>, vector<1x64x128xf32>,
    %cst_42 = arith.constant dense<0.000000e+00> : vector<128xf32>
    %31 = vector.multi_reduction <add>, %27, %cst_42 [0] : vector<64x128xf32> to vector<128xf32>
    %32 = vector.shape_cast %31 : vector<128xf32> to vector<1x128xf32>
    %33 = arith.addf %5, %32 : vector<1x128xf32>
    %34 = arith.mulf %27, %27 : vector<64x128xf32>
    %cst_43 = arith.constant dense<0.000000e+00> : vector<128xf32>
    %35 = vector.multi_reduction <add>, %34, %cst_43 [0] : vector<64x128xf32> to vector<128xf32>
    %36 = vector.shape_cast %35 : vector<128xf32> to vector<1x128xf32>
    %37 = arith.addf %6, %36 : vector<1x128xf32>
    %c0_44 = arith.constant 0 : index
    %c0_45 = arith.constant 0 : index
    %c0_46 = arith.constant 0 : index
    %38 = vector.load %arg4[%c0_44, %c0_45, %c0_46] : memref<1x2x128xf32, #tpu.memory_space<vmem>>, vector<1x1x128xf32>
    %39 = vector.shape_cast %38 : vector<1x1x128xf32> to vector<1x128xf32>
    %40 = vector.shape_cast %33 : vector<1x128xf32> to vector<1x1x128xf32>
    tpu.vector_store %arg4[%c0_44, %c0_45, %c0_46], %40 {strides = array<i32>} : memref<1x2x128xf32, #tpu.memory_space<vmem>>, vector<1x1x128xf32>,
    %c0_47 = arith.constant 0 : index
    %c1_48 = arith.constant 1 : index
    %c0_49 = arith.constant 0 : index
    %41 = vector.load %arg4[%c0_47, %c1_48, %c0_49] : memref<1x2x128xf32, #tpu.memory_space<vmem>>, vector<1x1x128xf32>
    %42 = vector.shape_cast %41 : vector<1x1x128xf32> to vector<1x128xf32>
    %43 = vector.shape_cast %37 : vector<1x128xf32> to vector<1x1x128xf32>
    tpu.vector_store %arg4[%c0_47, %c1_48, %c0_49], %43 {strides = array<i32>} : memref<1x2x128xf32, #tpu.memory_space<vmem>>, vector<1x1x128xf32>,
    return
  }
  func.func @transform_0(%arg0: i32) -> (i32, i32, i32, i32) {
    %c0_i32 = arith.constant 0 : i32
    %c0_i32_0 = arith.constant 0 : i32
    %c0_i32_1 = arith.constant 0 : i32
    %c0_i32_2 = arith.constant 0 : i32
    return %arg0, %c0_i32, %c0_i32_0, %c0_i32_1 : i32, i32, i32, i32
  }
  func.func @transform_1(%arg0: i32) -> (i32, i32) {
    %c0_i32 = arith.constant 0 : i32
    %c0_i32_0 = arith.constant 0 : i32
    %c0_i32_1 = arith.constant 0 : i32
    return %c0_i32, %c0_i32_0 : i32, i32
  }
  func.func @transform_2(%arg0: i32) -> (i32, i32, i32) {
    %c0_i32 = arith.constant 0 : i32
    %c0_i32_0 = arith.constant 0 : i32
    %c0_i32_1 = arith.constant 0 : i32
    return %arg0, %c0_i32, %c0_i32_0 : i32, i32, i32
  }
  func.func @transform_3(%arg0: i32) -> (i32, i32, i32) {
    %c0_i32 = arith.constant 0 : i32
    %c0_i32_0 = arith.constant 0 : i32
    %c0_i32_1 = arith.constant 0 : i32
    return %arg0, %c0_i32, %c0_i32_0 : i32, i32, i32
  }
}

</mosaic_0001>

<bundles_post_ra>
// kernel: down_forward.5
= control target key start
LH: loop header
LB: loop body
LE: loop exit
PB: predicated region body
PF: predicated region fallthrough
CT: control target
= control target key end

     0   :  { %8 = vsyncpa [#allocation3], 0  ;;  %s530_s0 = inlined_call_operand.hbm [shape: f32[128,128], index: 0, kind: input, shape index: {}]   ;;  %s531_s1 = inlined_call_operand.hbm [shape: f32[1,128], index: 1, kind: input, shape index: {}]   ;;  %s532_s2 = inlined_call_operand.hbm [shape: f32[1,128], index: 2, kind: input, shape index: {}]   ;;  %s533_s3 = inlined_call_operand.hbm [shape: bf16[128,128], index: 3, kind: output, shape index: {}]  }
   0x1   :  { %9 = vsyncpa [#allocation6], 0 }
   0x2   :  { %10 = vsyncpa [#allocation4], 0  ;;  %s411_s12 = smov [#allocation5]   ;;  %s412_s14 = smov [#allocation2]  }
   0x3   :  { %s29_s13 = sshll.u32 %s411_s12, 4  ;;  %s16_s15 = sshll.u32 %s412_s14, 4  ;;  %s30_s13 = int_to_ptr.vmem [resolvable:$true] %s29_s13  ;;  %s439_s15 = int_to_ptr.vmem [resolvable:$true] %s16_s15 }
   0x4   :  { %s317_s18 = scalar_lea.hbm %s531_s1, 16 }
   0x5   :  { %p318_p0 = scmp.ne.s32.totalorder %s531_s1, %s317_s18  ;;  %p321_p1 = scmp.lt.u32.totalorder %s317_s18, %s531_s1 }
   0x7   :  { %p323_p2 = pnand %p321_p1, %p318_p0 }
   0x9   :  { %326 = shalt.err (!%p323_p2)
}
   0xa   :  { %s327_s23 = scalar_lea.vmem %s30_s13, 16  ;;  %s331_s24 = scalar_lea.vmem %s30_s13, 32 }
   0xb   :  { %p328_p3 = scmp.ne.s32.totalorder %s30_s13, %s327_s23  ;;  %p332_p4 = scmp.lt.s32.totalorder %s30_s13, %s30_s13 }
   0xc   :  { %p333_p5 = scmp.lt.s32.totalorder %s331_s24, %s327_s23 }
   0xe   :  { %p334_p6 = por %p333_p5, %p332_p4 }
  0x10   :  { %p335_p7 = pnand %p334_p6, %p328_p3 }
  0x12   :  { %338 = shalt.err (!%p335_p7)
}
  0x13   :  { %32 = dma.hbm_to_vmem [thread:$0]  %s531_s1, 16, %s30_s13, [#allocation6]  }
  0x14   :  { %s339_s29 = scalar_lea.hbm %s530_s0, 2048 }
  0x15   :  { %p340_p8 = scmp.ne.s32.totalorder %s530_s0, %s339_s29  ;;  %p343_p9 = scmp.lt.u32.totalorder %s339_s29, %s530_s0 }
  0x17   :  { %p345_p10 = pnand %p343_p9, %p340_p8 }
  0x19   :  { %348 = shalt.err (!%p345_p10)
}
  0x1a   :  { %s349_s7 = scalar_lea.vmem %s439_s15, 2048  ;;  %p354_p12 = scmp.lt.s32.totalorder %s439_s15, %s439_s15 }
  0x1b   :  { %p350_p11 = scmp.ne.s32.totalorder %s439_s15, %s349_s7  ;;  %p355_p13 = scmp.lt.s32.totalorder %s349_s7, %s349_s7 }
  0x1d   :  { %p356_p0 = por %p355_p13, %p354_p12 }
  0x1f   :  { %p357_p1 = pnand %p356_p0, %p350_p11 }
  0x21   :  { %360 = shalt.err (!%p357_p1)
}
  0x22   :  { %s413_s1 = smov 128   ;;  %s414_s8 = smov 8  }
  0x23   :  { %22 = dma.hbm_to_vmem [thread:$0]  %s530_s0, 2048, %s439_s15, [#allocation3], %s413_s1, %s413_s1, %s414_s8  }
  0x24   :  { %s415_s11 = smov [#allocation7]   ;;  %s361_s16 = scalar_lea.hbm %s532_s2, 16 }
  0x25   :  { %s39_s12 = sshll.u32 %s415_s11, 4  ;;  %p362_p2 = scmp.ne.s32.totalorder %s532_s2, %s361_s16  ;;  %s40_s12 = int_to_ptr.vmem [resolvable:$true] %s39_s12 }
  0x26   :  { %p365_p3 = scmp.lt.u32.totalorder %s361_s16, %s532_s2 }
  0x28   :  { %p367_p4 = pnand %p365_p3, %p362_p2 }
  0x2a   :  { %370 = shalt.err (!%p367_p4)
}
  0x2b   :  { %s371_s21 = scalar_lea.vmem %s40_s12, 16  ;;  %s375_s0 = scalar_lea.vmem %s40_s12, 32 }
  0x2c   :  { %p372_p5 = scmp.ne.s32.totalorder %s40_s12, %s371_s21  ;;  %p376_p6 = scmp.lt.s32.totalorder %s40_s12, %s40_s12 }
  0x2d   :  { %p377_p7 = scmp.lt.s32.totalorder %s375_s0, %s371_s21 }
  0x2f   :  { %p378_p8 = por %p377_p7, %p376_p6 }
  0x31   :  { %p379_p9 = pnand %p378_p8, %p372_p5 }
  0x33   :  { %382 = shalt.err (!%p379_p9)
}
  0x34   :  { %42 = dma.hbm_to_vmem [thread:$0]  %s532_s2, 16, %s40_s12, [#allocation6]  }
  0x35   :  { %405 = dma.done.wait [#allocation3], 2048  }
  0x36   :  { %406 = vsyncadd [#allocation3], 4294965248 }
  0x37   :  { %407 = dma.done.wait [#allocation6], 32  }
  0x38   :  { %408 = vsyncadd [#allocation6], 4294967264  ;;  %v52_v0 = vld [vmem:[#allocation2] sm:$0xff]  ;;  %v53_v1 = vld [vmem:[#allocation2 + $0x8] sm:$0xff]  ;;  %s416_s2 = smov [#allocation8]  }
  0x39   :  { %v482_v2 = vld [vmem:[#allocation5] ss:$0 sm:$0xff]  ;;  %v486_v5 = vld [vmem:[#allocation7] ss:$0 sm:$0xff]  ;;  %v54_v6 = vld [vmem:[#allocation2 + $0x10] sm:$0xff]  ;;  %s215_s23 = sshll.u32 %s416_s2, 4  ;;  %s216_s23 = int_to_ptr.vmem [resolvable:$true] %s215_s23 }
  0x3a   :  { %v75_v3 = vmul.f32 %v482_v2, %v52_v0  ;;  %v76_v4 = vmul.f32 %v482_v2, %v53_v1  ;;  %v55_v7 = vld [vmem:[#allocation2 + $0x18] sm:$0xff]  ;;  %v77_v8 = vmul.f32 %v482_v2, %v54_v6  ;;  %v56_v10 = vld [vmem:[#allocation2 + $0x20] sm:$0xff]  ;;  %v57_v11 = vld [vmem:[#allocation2 + $0x28] sm:$0xff]  ;;  %s383_s24 = scalar_lea.vmem %s216_s23, 1024  ;;  %p388_p11 = scmp.lt.s32.totalorder %s216_s23, %s216_s23 }
  0x3b   :  { %v78_v9 = vmul.f32 %v482_v2, %v55_v7  ;;  %v58_v12 = vld [vmem:[#allocation2 + $0x30] sm:$0xff]  ;;  %v79_v15 = vmul.f32 %v482_v2, %v56_v10  ;;  %v80_v16 = vmul.f32 %v482_v2, %v57_v11  ;;  %v59_v17 = vld [vmem:[#allocation2 + $0x38] sm:$0xff]  ;;  %v60_v22 = vld [vmem:[#allocation2 + $0x40] sm:$0xff]  ;;  %p384_p10 = scmp.ne.s32.totalorder %s216_s23, %s383_s24  ;;  %p389_p12 = scmp.lt.s32.totalorder %s383_s24, %s383_s24 }
  0x3c   :  { %v98_v13 = vadd.f32 %v486_v5, %v75_v3  ;;  %v99_v14 = vadd.f32 %v486_v5, %v76_v4  ;;  %v100_v18 = vadd.f32 %v486_v5, %v77_v8  ;;  %v81_v20 = vmul.f32 %v482_v2, %v58_v12  ;;  %v61_v27 = vld [vmem:[#allocation2 + $0x48] sm:$0xff]  ;;  %v62_v32 = vld [vmem:[#allocation2 + $0x50] sm:$0xff]  ;;  %v63_v33 = vld [vmem:[#allocation2 + $0x58] sm:$0xff] }
  0x3d   :  { %v101_v19 = vadd.f32 %v486_v5, %v78_v9  ;;  %v82_v21 = vmul.f32 %v482_v2, %v59_v17  ;;  %v102_v25 = vadd.f32 %v486_v5, %v79_v15  ;;  %v103_v26 = vadd.f32 %v486_v5, %v80_v16  ;;  %v64_v38 = vld [vmem:[#allocation2 + $0x60] sm:$0xff]  ;;  %v65_v39 = vld [vmem:[#allocation2 + $0x68] sm:$0xff]  ;;  %v66_v44 = vld [vmem:[#allocation2 + $0x70] sm:$0xff]  ;;  %p390_p13 = por %p389_p12, %p388_p11 }
  0x3e   :  { %v114_v23 = vmax.f32 %v98_v13, 0.0  ;;  %v115_v24 = vmax.f32 %v99_v14, 0.0  ;;  %v116_v28 = vmax.f32 %v100_v18, 0.0  ;;  %v104_v30 = vadd.f32 %v486_v5, %v81_v20  ;;  %v67_v49 = vld [vmem:[#allocation2 + $0x78] sm:$0xff] }
  0x3f   :  { %v117_v29 = vmax.f32 %v101_v19, 0.0  ;;  %v105_v31 = vadd.f32 %v486_v5, %v82_v21  ;;  %v118_v35 = vmax.f32 %v102_v25, 0.0  ;;  %v119_v36 = vmax.f32 %v103_v26, 0.0  ;;  %p391_p0 = pnand %p390_p13, %p384_p10 }
  0x40   :  { %v265_v34 = vpack.c.bf16 %v115_v24, %v114_v23  ;;  %v83_v37 = vmul.f32 %v482_v2, %v60_v22  ;;  %v120_v41 = vmax.f32 %v104_v30, 0.0  ;;  %v84_v43 = vmul.f32 %v482_v2, %v61_v27 }
  0x41   :  { %v270_v40 = vpack.c.bf16 %v117_v29, %v116_v28  ;;  %v121_v42 = vmax.f32 %v105_v31, 0.0  ;;  %v275_v45 = vpack.c.bf16 %v119_v36, %v118_v35  ;;  %v85_v47 = vmul.f32 %v482_v2, %v62_v32 }
  0x42   :  { %266 = vst [vmem:[#allocation8] sm:$0xff] %v265_v34   ;;  %v106_v46 = vadd.f32 %v486_v5, %v83_v37  ;;  %v86_v48 = vmul.f32 %v482_v2, %v63_v33  ;;  %v107_v51 = vadd.f32 %v486_v5, %v84_v43  ;;  %v87_v52 = vmul.f32 %v482_v2, %v64_v38 }
  0x43   :  { %302 = vst [vmem:[#allocation8 + $0x8] sm:$0xff] %v270_v40   ;;  %v280_v50 = vpack.c.bf16 %v121_v42, %v120_v41  ;;  %v88_v53 = vmul.f32 %v482_v2, %v65_v39  ;;  %303 = vst [vmem:[#allocation8 + $0x10] sm:$0xff] %v275_v45   ;;  %v108_v55 = vadd.f32 %v486_v5, %v85_v47 }
  0x44   :  { %v122_v54 = vmax.f32 %v106_v46, 0.0  ;;  %v109_v56 = vadd.f32 %v486_v5, %v86_v48  ;;  %v89_v57 = vmul.f32 %v482_v2, %v66_v44  ;;  %v123_v58 = vmax.f32 %v107_v51, 0.0 }
  0x45   :  { %304 = vst [vmem:[#allocation8 + $0x18] sm:$0xff] %v280_v50   ;;  %v110_v59 = vadd.f32 %v486_v5, %v87_v52  ;;  %v111_v60 = vadd.f32 %v486_v5, %v88_v53  ;;  %v90_v61 = vmul.f32 %v482_v2, %v67_v49  ;;  %v124_v62 = vmax.f32 %v108_v55, 0.0 }
  0x46   :  { %v125_v63 = vmax.f32 %v109_v56, 0.0  ;;  %v112_v0 = vadd.f32 %v486_v5, %v89_v57  ;;  %v285_v1 = vpack.c.bf16 %v123_v58, %v122_v54 }
  0x47   :  { %v126_v3 = vmax.f32 %v110_v59, 0.0  ;;  %v127_v4 = vmax.f32 %v111_v60, 0.0  ;;  %v113_v6 = vadd.f32 %v486_v5, %v90_v61 }
  0x48   :  { %v290_v7 = vpack.c.bf16 %v125_v63, %v124_v62  ;;  %v128_v8 = vmax.f32 %v112_v0, 0.0  ;;  %305 = vst [vmem:[#allocation8 + $0x20] sm:$0xff] %v285_v1  }
  0x49   :  { %v295_v9 = vpack.c.bf16 %v127_v4, %v126_v3  ;;  %v129_v10 = vmax.f32 %v113_v6, 0.0 }
  0x4a   :  { %306 = vst [vmem:[#allocation8 + $0x28] sm:$0xff] %v290_v7  }
  0x4b   :  { %307 = vst [vmem:[#allocation8 + $0x30] sm:$0xff] %v295_v9   ;;  %v300_v11 = vpack.c.bf16 %v129_v10, %v128_v8 }
  0x4d   :  { %308 = vst [vmem:[#allocation8 + $0x38] sm:$0xff] %v300_v11  }
  0x4e   :  { %394 = shalt.err (!%p391_p0)
}
  0x4f   :  { %s395_s27 = scalar_lea.hbm %s533_s3, 1024 }
  0x50   :  { %p396_p1 = scmp.ne.s32.totalorder %s533_s3, %s395_s27  ;;  %p399_p2 = scmp.lt.u32.totalorder %s395_s27, %s533_s3 }
  0x52   :  { %p401_p3 = pnand %p399_p2, %p396_p1 }
  0x54   :  { %404 = shalt.err (!%p401_p3)
}
  0x55   :  { %s417_s5 = smov 64   ;;  %s418_s6 = smov 4  }
  0x56   :  { %221 = dma.vmem_to_hbm [thread:$0]  %s216_s23, 1024, %s533_s3, [#allocation4], %s417_s5, %s417_s5, %s418_s6  }
  0x57   :  { %409 = dma.done.wait [#allocation4], 1024  }
  0x58   :  { %410 = vsyncadd [#allocation4], 4294966272 }
  0x59   :  { %225 = vsyncpa [#allocation3], 1 }
  0x5a   :  { %226 = vsyncpa [#allocation6], 1 }
  0x5b   :  { %227 = vsyncpa [#allocation4], 1 }

// kernel: down_forward.7
= control target key start
LH: loop header
LB: loop body
LE: loop exit
PB: predicated region body
PF: predicated region fallthrough
CT: control target
= control target key end

     0   :  { %8 = vsyncpa [#allocation3], 0  ;;  %s371_s0 = inlined_call_operand.hbm [shape: f32[128,128], index: 0, kind: input, shape index: {}]   ;;  %s372_s1 = inlined_call_operand.hbm [shape: f32[1,128], index: 1, kind: input, shape index: {}]   ;;  %s373_s2 = inlined_call_operand.hbm [shape: f32[1,128], index: 2, kind: input, shape index: {}]   ;;  %s374_s3 = inlined_call_operand.hbm [shape: f32[128,128], index: 3, kind: output, shape index: {}]  }
   0x1   :  { %9 = vsyncpa [#allocation6], 0 }
   0x2   :  { %10 = vsyncpa [#allocation4], 0  ;;  %s266_s12 = smov [#allocation5]   ;;  %s267_s14 = smov [#allocation2]  }
   0x3   :  { %s29_s13 = sshll.u32 %s266_s12, 4  ;;  %s16_s15 = sshll.u32 %s267_s14, 4  ;;  %s30_s13 = int_to_ptr.vmem [resolvable:$true] %s29_s13  ;;  %s292_s15 = int_to_ptr.vmem [resolvable:$true] %s16_s15 }
   0x4   :  { %s172_s18 = scalar_lea.hbm %s372_s1, 16 }
   0x5   :  { %p173_p0 = scmp.ne.s32.totalorder %s372_s1, %s172_s18  ;;  %p176_p1 = scmp.lt.u32.totalorder %s172_s18, %s372_s1 }
   0x7   :  { %p178_p2 = pnand %p176_p1, %p173_p0 }
   0x9   :  { %181 = shalt.err (!%p178_p2)
}
   0xa   :  { %s182_s23 = scalar_lea.vmem %s30_s13, 16  ;;  %s186_s24 = scalar_lea.vmem %s30_s13, 32 }
   0xb   :  { %p183_p3 = scmp.ne.s32.totalorder %s30_s13, %s182_s23  ;;  %p187_p4 = scmp.lt.s32.totalorder %s30_s13, %s30_s13 }
   0xc   :  { %p188_p5 = scmp.lt.s32.totalorder %s186_s24, %s182_s23 }
   0xe   :  { %p189_p6 = por %p188_p5, %p187_p4 }
  0x10   :  { %p190_p7 = pnand %p189_p6, %p183_p3 }
  0x12   :  { %193 = shalt.err (!%p190_p7)
}
  0x13   :  { %32 = dma.hbm_to_vmem [thread:$0]  %s372_s1, 16, %s30_s13, [#allocation6]  }
  0x14   :  { %s194_s29 = scalar_lea.hbm %s371_s0, 2048 }
  0x15   :  { %p195_p8 = scmp.ne.s32.totalorder %s371_s0, %s194_s29  ;;  %p198_p9 = scmp.lt.u32.totalorder %s194_s29, %s371_s0 }
  0x17   :  { %p200_p10 = pnand %p198_p9, %p195_p8 }
  0x19   :  { %203 = shalt.err (!%p200_p10)
}
  0x1a   :  { %s204_s7 = scalar_lea.vmem %s292_s15, 2048  ;;  %p209_p12 = scmp.lt.s32.totalorder %s292_s15, %s292_s15 }
  0x1b   :  { %p205_p11 = scmp.ne.s32.totalorder %s292_s15, %s204_s7  ;;  %p210_p13 = scmp.lt.s32.totalorder %s204_s7, %s204_s7 }
  0x1d   :  { %p211_p0 = por %p210_p13, %p209_p12 }
  0x1f   :  { %p212_p1 = pnand %p211_p0, %p205_p11 }
  0x21   :  { %215 = shalt.err (!%p212_p1)
}
  0x22   :  { %s268_s1 = smov 128   ;;  %s269_s8 = smov 8  }
  0x23   :  { %22 = dma.hbm_to_vmem [thread:$0]  %s371_s0, 2048, %s292_s15, [#allocation3], %s268_s1, %s268_s1, %s269_s8  }
  0x24   :  { %s270_s11 = smov [#allocation7]   ;;  %s216_s16 = scalar_lea.hbm %s373_s2, 16 }
  0x25   :  { %s39_s12 = sshll.u32 %s270_s11, 4  ;;  %p217_p2 = scmp.ne.s32.totalorder %s373_s2, %s216_s16  ;;  %s40_s12 = int_to_ptr.vmem [resolvable:$true] %s39_s12 }
  0x26   :  { %p220_p3 = scmp.lt.u32.totalorder %s216_s16, %s373_s2 }
  0x28   :  { %p222_p4 = pnand %p220_p3, %p217_p2 }
  0x2a   :  { %225 = shalt.err (!%p222_p4)
}
  0x2b   :  { %s226_s21 = scalar_lea.vmem %s40_s12, 16  ;;  %s230_s0 = scalar_lea.vmem %s40_s12, 32 }
  0x2c   :  { %p227_p5 = scmp.ne.s32.totalorder %s40_s12, %s226_s21  ;;  %p231_p6 = scmp.lt.s32.totalorder %s40_s12, %s40_s12 }
  0x2d   :  { %p232_p7 = scmp.lt.s32.totalorder %s230_s0, %s226_s21 }
  0x2f   :  { %p233_p8 = por %p232_p7, %p231_p6 }
  0x31   :  { %p234_p9 = pnand %p233_p8, %p227_p5 }
  0x33   :  { %237 = shalt.err (!%p234_p9)
}
  0x34   :  { %42 = dma.hbm_to_vmem [thread:$0]  %s373_s2, 16, %s40_s12, [#allocation6]  }
  0x35   :  { %260 = dma.done.wait [#allocation3], 2048  }
  0x36   :  { %261 = vsyncadd [#allocation3], 4294965248 }
  0x37   :  { %262 = dma.done.wait [#allocation6], 32  }
  0x38   :  { %263 = vsyncadd [#allocation6], 4294967264  ;;  %v52_v0 = vld [vmem:[#allocation2] sm:$0xff]  ;;  %v53_v4 = vld [vmem:[#allocation2 + $0x8] sm:$0xff]  ;;  %s271_s2 = smov [#allocation8]  }
  0x39   :  { %v164_v1 = vld [vmem:[#allocation5] ss:$0 sm:$0xff]  ;;  %v338_v2 = vld [vmem:[#allocation7] ss:$0 sm:$0xff]  ;;  %v54_v5 = vld [vmem:[#allocation2 + $0x10] sm:$0xff]  ;;  %s151_s23 = sshll.u32 %s271_s2, 4  ;;  %s152_s23 = int_to_ptr.vmem [resolvable:$true] %s151_s23 }
  0x3a   :  { %v75_v3 = vmul.f32 %v164_v1, %v52_v0  ;;  %v55_v6 = vld [vmem:[#allocation2 + $0x18] sm:$0xff]  ;;  %v76_v7 = vmul.f32 %v164_v1, %v53_v4  ;;  %v77_v8 = vmul.f32 %v164_v1, %v54_v5  ;;  %v56_v10 = vld [vmem:[#allocation2 + $0x20] sm:$0xff]  ;;  %v57_v11 = vld [vmem:[#allocation2 + $0x28] sm:$0xff]  ;;  %s238_s24 = scalar_lea.vmem %s152_s23, 2048  ;;  %p243_p11 = scmp.lt.s32.totalorder %s152_s23, %s152_s23 }
  0x3b   :  { %v78_v9 = vmul.f32 %v164_v1, %v55_v6  ;;  %v58_v12 = vld [vmem:[#allocation2 + $0x30] sm:$0xff]  ;;  %v79_v14 = vmul.f32 %v164_v1, %v56_v10  ;;  %v80_v15 = vmul.f32 %v164_v1, %v57_v11  ;;  %v59_v17 = vld [vmem:[#allocation2 + $0x38] sm:$0xff]  ;;  %v60_v22 = vld [vmem:[#allocation2 + $0x40] sm:$0xff]  ;;  %p239_p10 = scmp.ne.s32.totalorder %s152_s23, %s238_s24  ;;  %p244_p12 = scmp.lt.s32.totalorder %s238_s24, %s238_s24 }
  0x3c   :  { %v98_v13 = vadd.f32 %v338_v2, %v75_v3  ;;  %v81_v16 = vmul.f32 %v164_v1, %v58_v12  ;;  %v99_v18 = vadd.f32 %v338_v2, %v76_v7  ;;  %v100_v19 = vadd.f32 %v338_v2, %v77_v8  ;;  %v61_v27 = vld [vmem:[#allocation2 + $0x48] sm:$0xff]  ;;  %v62_v28 = vld [vmem:[#allocation2 + $0x50] sm:$0xff]  ;;  %v63_v29 = vld [vmem:[#allocation2 + $0x58] sm:$0xff] }
  0x3d   :  { %v101_v20 = vadd.f32 %v338_v2, %v78_v9  ;;  %v82_v21 = vmul.f32 %v164_v1, %v59_v17  ;;  %v102_v24 = vadd.f32 %v338_v2, %v79_v14  ;;  %v103_v25 = vadd.f32 %v338_v2, %v80_v15  ;;  %v64_v34 = vld [vmem:[#allocation2 + $0x60] sm:$0xff]  ;;  %v65_v35 = vld [vmem:[#allocation2 + $0x68] sm:$0xff]  ;;  %v66_v36 = vld [vmem:[#allocation2 + $0x70] sm:$0xff]  ;;  %p245_p13 = por %p244_p12, %p243_p11 }
  0x3e   :  { %v114_v23 = vmax.f32 %v98_v13, 0.0  ;;  %v104_v26 = vadd.f32 %v338_v2, %v81_v16  ;;  %v115_v30 = vmax.f32 %v99_v18, 0.0  ;;  %v116_v31 = vmax.f32 %v100_v19, 0.0  ;;  %v67_v41 = vld [vmem:[#allocation2 + $0x78] sm:$0xff] }
  0x3f   :  { %v117_v32 = vmax.f32 %v101_v20, 0.0  ;;  %v105_v33 = vadd.f32 %v338_v2, %v82_v21  ;;  %v118_v37 = vmax.f32 %v102_v24, 0.0  ;;  %v119_v38 = vmax.f32 %v103_v25, 0.0  ;;  %p246_p0 = pnand %p245_p13, %p239_p10 }
  0x40   :  { %130 = vst [vmem:[#allocation8] sm:$0xff] %v114_v23  ;;  %v120_v39 = vmax.f32 %v104_v26, 0.0  ;;  %v83_v40 = vmul.f32 %v164_v1, %v60_v22  ;;  %131 = vst [vmem:[#allocation8 + $0x8] sm:$0xff] %v115_v30  ;;  %v84_v43 = vmul.f32 %v164_v1, %v61_v27  ;;  %v85_v44 = vmul.f32 %v164_v1, %v62_v28 }
  0x41   :  { %132 = vst [vmem:[#allocation8 + $0x10] sm:$0xff] %v116_v31  ;;  %133 = vst [vmem:[#allocation8 + $0x18] sm:$0xff] %v117_v32  ;;  %v121_v42 = vmax.f32 %v105_v33, 0.0  ;;  %v86_v45 = vmul.f32 %v164_v1, %v63_v29  ;;  %v87_v47 = vmul.f32 %v164_v1, %v64_v34  ;;  %v88_v48 = vmul.f32 %v164_v1, %v65_v35 }
  0x42   :  { %134 = vst [vmem:[#allocation8 + $0x20] sm:$0xff] %v118_v37  ;;  %135 = vst [vmem:[#allocation8 + $0x28] sm:$0xff] %v119_v38  ;;  %v106_v46 = vadd.f32 %v338_v2, %v83_v40  ;;  %v89_v49 = vmul.f32 %v164_v1, %v66_v36  ;;  %v107_v50 = vadd.f32 %v338_v2, %v84_v43 }
  0x43   :  { %136 = vst [vmem:[#allocation8 + $0x30] sm:$0xff] %v120_v39  ;;  %137 = vst [vmem:[#allocation8 + $0x38] sm:$0xff] %v121_v42  ;;  %v108_v51 = vadd.f32 %v338_v2, %v85_v44  ;;  %v109_v52 = vadd.f32 %v338_v2, %v86_v45  ;;  %v90_v53 = vmul.f32 %v164_v1, %v67_v41 }
  0x44   :  { %v122_v54 = vmax.f32 %v106_v46, 0.0  ;;  %v110_v55 = vadd.f32 %v338_v2, %v87_v47  ;;  %v111_v56 = vadd.f32 %v338_v2, %v88_v48  ;;  %v112_v57 = vadd.f32 %v338_v2, %v89_v49 }
  0x45   :  { %v123_v58 = vmax.f32 %v107_v50, 0.0  ;;  %v124_v59 = vmax.f32 %v108_v51, 0.0  ;;  %v125_v60 = vmax.f32 %v109_v52, 0.0  ;;  %v113_v61 = vadd.f32 %v338_v2, %v90_v53 }
  0x46   :  { %138 = vst [vmem:[#allocation8 + $0x40] sm:$0xff] %v122_v54  ;;  %v126_v62 = vmax.f32 %v110_v55, 0.0  ;;  %v127_v63 = vmax.f32 %v111_v56, 0.0  ;;  %v128_v0 = vmax.f32 %v112_v57, 0.0 }
  0x47   :  { %139 = vst [vmem:[#allocation8 + $0x48] sm:$0xff] %v123_v58  ;;  %140 = vst [vmem:[#allocation8 + $0x50] sm:$0xff] %v124_v59  ;;  %v129_v1 = vmax.f32 %v113_v61, 0.0 }
  0x48   :  { %141 = vst [vmem:[#allocation8 + $0x58] sm:$0xff] %v125_v60  ;;  %142 = vst [vmem:[#allocation8 + $0x60] sm:$0xff] %v126_v62 }
  0x49   :  { %143 = vst [vmem:[#allocation8 + $0x68] sm:$0xff] %v127_v63  ;;  %144 = vst [vmem:[#allocation8 + $0x70] sm:$0xff] %v128_v0 }
  0x4a   :  { %145 = vst [vmem:[#allocation8 + $0x78] sm:$0xff] %v129_v1 }
  0x4b   :  { %249 = shalt.err (!%p246_p0)
}
  0x4c   :  { %s250_s27 = scalar_lea.hbm %s374_s3, 2048 }
  0x4d   :  { %p251_p1 = scmp.ne.s32.totalorder %s374_s3, %s250_s27  ;;  %p254_p2 = scmp.lt.u32.totalorder %s250_s27, %s374_s3 }
  0x4f   :  { %p256_p3 = pnand %p254_p2, %p251_p1 }
  0x51   :  { %259 = shalt.err (!%p256_p3)
}
  0x52   :  { %157 = dma.vmem_to_hbm [thread:$0]  %s152_s23, 2048, %s374_s3, [#allocation4], %s268_s1, %s268_s1, %s269_s8  }
  0x53   :  { %264 = dma.done.wait [#allocation4], 2048  }
  0x54   :  { %265 = vsyncadd [#allocation4], 4294965248 }
  0x55   :  { %161 = vsyncpa [#allocation3], 1 }
  0x56   :  { %162 = vsyncpa [#allocation6], 1 }
  0x57   :  { %163 = vsyncpa [#allocation4], 1 }

// kernel: down_forward.4
= control target key start
LH: loop header
LB: loop body
LE: loop exit
PB: predicated region body
PF: predicated region fallthrough
CT: control target
= control target key end

     0   :  { %9 = vsyncpa [#allocation4], 0  ;;  %s3668_s0 = inlined_call_operand.hbm [shape: bf16[2,8,2,8,256], index: 0, kind: input, shape index: {}]   ;;  %s3669_s1 = inlined_call_operand.hbm [shape: bf16[1152,128], index: 1, kind: input, shape index: {}]   ;;  %s3670_s2 = inlined_call_operand.hbm [shape: f32[2,64,128], index: 2, kind: output, shape index: {0}]   ;;  %s3671_s3 = inlined_call_operand.hbm [shape: f32[2,2,128], index: 3, kind: output, shape index: {1}]  }
   0x1   :  { %11 = vsyncpa [#allocation4 + $0x1], 0 }
   0x2   :  { %12 = vsyncpa [#allocation7], 0 }
   0x3   :  { %13 = vsyncpa [#allocation5], 0 }
   0x4   :  { %15 = vsyncpa [#allocation5 + $0x1], 0 }
   0x5   :  { %16 = vsyncpa [#allocation10], 0 }
   0x6   :  { %18 = vsyncpa [#allocation10 + $0x1], 0  ;;  %s2976_s12 = smov 0   ;;  %s2978_s13 = smov 0  }
   0x7   :  { %s2980_s14 = smov 0   ;;  %s2982_s15 = smov 0  }
   0x8 LB: > { %s2997_s16 = sadd.s32 4294967295, %s2943_s15   ;;  %s2249_s17 = sadd.s32 4294967294, %s2943_s15   ;;  %s2943_s15 = sphi %s2982_s15, %s3699_s15   ;;  %s2939_s14 = sphi %s2980_s14, %s3698_s14   ;;  %s2935_s13 = sphi %s2978_s13, %s3697_s13   ;;  %s2931_s12 = sphi %s2976_s12, %s3696_s12  }
   0x9   : > { %p44_p0 = scmp.ne.s32.totalorder %s2935_s13, %s2931_s12  ;;  %p3672_p1 = scmp.eq.s32.totalorder %s2997_s16, 0 }
   0xa   : > { %p95_p3 = scmp.eq.s32.totalorder %s2249_s17, 1  ;;  %p2250_p5 = scmp.ge.s32.totalorder %s2943_s15, 1 }
   0xb   : > { %p3006_p4 = por %p3672_p1, %p44_p0  ;;  %p128_p7 = scmp.lt.s32.totalorder %s2943_s15, 3 }
   0xc   : > { %p3011_p6 = por %p95_p3, %p44_p0  ;;  %s2945_s21 = smov [#allocation6]  }
   0xd   : > { %s3675_s18 = scalar_select %p3006_p4, 1, 0 }
   0xe   : > { %s3676_s19 = scalar_select %p3011_p6, 1, 0 }
   0xf   : > { %p3016_p8 = pnand %p2250_p5, %p128_p7  ;;  %s140_s22 = sshll.u32 %s2945_s21, 4  ;;  %s3020_s22 = int_to_ptr.vmem [resolvable:$true] %s140_s22 }
  0x10   : > { %s3032_s24 = sadd.s32 1, %s2943_s15   ;;  %s31_s25 = sadd.s32 1, %s2939_s14 }
  0x11   : > { %s3677_s20 = scalar_select %p3016_p8, 1, 0 }
  0x12   : > { %p2640_p9 = pneg %p3016_p8  ;;  %s28_s26 = ssub.s32 %s2943_s15, %s3032_s24 }
  0x13   : > { %s2783_s29 = scalar_lea.hbm %s3669_s1, 9216 }
  0x14   : > { %p3027_p11 = pnand %p2640_p9, %p3672_p1  ;;  %p2784_p12 = scmp.ne.s32.totalorder %s3669_s1, %s2783_s29 }
  0x15   : > { %p2790_p5 = scmp.lt.u32.totalorder %s2783_s29, %s3669_s1 }
  0x16   : > { %p2785_p13 = pneg %p3027_p11 }
  0x18   : > { %p2786_p0 = pnand %p2785_p13, %p2784_p12 }
  0x1a   : > { %p2787_p3 = pneg %p2786_p0 }
  0x1c   : > { %p2792_p7 = pnand %p2790_p5, %p2787_p3 }
  0x1e   : > { %2795 = shalt.err (!%p2792_p7)
}
  0x1f   : > { %s2796_s7 = scalar_lea.vmem %s3020_s22, 9216  ;;  %p2804_p2 = scmp.lt.s32.totalorder %s3020_s22, %s3020_s22 }
  0x20   : > { %p2797_p9 = scmp.ne.s32.totalorder %s3020_s22, %s2796_s7  ;;  %p2805_p6 = scmp.lt.s32.totalorder %s2796_s7, %s2796_s7 }
  0x22   : > { %p2799_p10 = pnand %p2797_p9, %p2785_p13  ;;  %p2806_p4 = por %p2805_p6, %p2804_p2 }
  0x24   : > { %p2800_p1 = pneg %p2799_p10 }
  0x26   : > { %p2807_p8 = pnand %p2806_p4, %p2800_p1 }
  0x28   : > { %2810 = shalt.err (!%p2807_p8)
}
  0x29   : > { %s2946_s8 = smov 64   ;;  %s2947_s9 = smov 4  }
  0x2a   : > { %2643 = dma.hbm_to_vmem [thread:$0]  (!%p3027_p11), %s3669_s1, 9216, %s3020_s22, [#allocation7], %s2946_s8, %s2946_s8, %s2947_s9  }
  0x2b   : > { %p29_p2 = scmp.eq.s32.totalorder %s28_s26, 0  ;;  %p38_p1 = scmp.ne.s32.totalorder %s2939_s14, %s2935_s13 }
  0x2c   : > { %p39_p4 = scmp.eq.s32.totalorder %s2943_s15, 0  ;;  %p2656_p6 = scmp.lt.s32.totalorder %s2943_s15, 2 }
  0x2d   : > { %s3063_s17 = scalar_select %p29_p2, %s2939_s14, %s31_s25  }
  0x2e   : > { %p40_p8 = por %p39_p4, %p38_p1  ;;  %p3679_p10 = scmp.eq.s32.totalorder %s2997_s16, 1 }
  0x2f   : > { %s154_s27 = sand.u32 1, %s2939_s14   ;;  %s2416_s28 = sshll.u32 %s2943_s15, 11 }
  0x30   : > { %p3067_p12 = por %p3679_p10, %p38_p1  ;;  %s2253_s29 = sshll.u32 %s154_s27, 7 }
  0x31   : > { %s3076_s4 = scalar_lea.hbm %s3668_s0, %s2416_s28  ;;  %s158_s22 = scalar_lea.vmem [#allocation3], %s2253_s29 }
  0x32   : > { %s165_s25 = sshll.u32 %s158_s22, 4  ;;  %p3078_p11 = pnand %p2656_p6, %p40_p8  ;;  %s3082_s25 = int_to_ptr.vmem [resolvable:$true] %s165_s25 }
  0x33   : > { %s3084_s5 = scalar_lea.sflag [#allocation4], %s154_s27  ;;  %s2811_s6 = scalar_lea.hbm %s3076_s4, 2048 }
  0x34   : > { %p2812_p13 = scmp.ne.s32.totalorder %s3076_s4, %s2811_s6  ;;  %p2813_p0 = pneg %p3078_p11 }
  0x35   : > { %s2816_s9 = scalar_lea.hbm %s3668_s0, 4096  ;;  %p2817_p7 = scmp.lt.u32.totalorder %s3076_s4, %s3668_s0 }
  0x36   : > { %p2814_p3 = pnand %p2813_p0, %p2812_p13  ;;  %p2818_p9 = scmp.lt.u32.totalorder %s2816_s9, %s2811_s6 }
  0x37   : > { %p2820_p1 = scmp.lt.u32.totalorder %s2811_s6, %s3076_s4 }
  0x38   : > { %p2815_p5 = pneg %p2814_p3  ;;  %p2819_p2 = por %p2818_p9, %p2817_p7 }
  0x3a   : > { %p2821_p4 = por %p2820_p1, %p2819_p2 }
  0x3c   : > { %p2822_p6 = pnand %p2821_p4, %p2815_p5 }
  0x3e   : > { %2825 = shalt.err (!%p2822_p6)
}
  0x3f   : > { %s2826_s27 = scalar_lea.vmem %s3082_s25, 2048  ;;  %s2948_s28 = smov [#allocation3]  }
  0x40   : > { %p2827_p8 = scmp.ne.s32.totalorder %s3082_s25, %s2826_s27  ;;  %s2831_s29 = sshll.u32 %s2948_s28, 4  ;;  %s2832_s29 = int_to_ptr.vmem [resolvable:$false] %s2831_s29 }
  0x41   : > { %s2833_s23 = scalar_lea.vmem %s2832_s29, 4096  ;;  %p2834_p3 = scmp.lt.s32.totalorder %s3082_s25, %s2832_s29 }
  0x42   : > { %p2829_p10 = pnand %p2827_p8, %p2813_p0  ;;  %p2835_p7 = scmp.lt.s32.totalorder %s2833_s23, %s2826_s27 }
  0x44   : > { %p2830_p13 = pneg %p2829_p10  ;;  %p2836_p9 = por %p2835_p7, %p2834_p3 }
  0x46   : > { %p2837_p2 = pnand %p2836_p9, %p2830_p13 }
  0x48   : > { %2840 = shalt.err (!%p2837_p2)
}
  0x49   : > { %s2949_s30 = smov 128   ;;  %s2950_s22 = smov 8  }
  0x4a   : > { %2647 = dma.hbm_to_vmem [thread:$0]  (!%p3078_p11), %s3076_s4, 2048, %s3082_s25, %s3084_s5, %s2949_s30, %s2949_s30, %s2950_s22  }
  0x4b   : > { %p3682_p0 = scmp.ne.s32.totalorder %s3677_s20, 0 }
  0x4c   : > { %s3115_s6 = sand.u32 (!%p3682_p0), 1, %s2935_s13   ;;  %p3683_p5 = scmp.ne.s32.totalorder (!%p3682_p0), %s3675_s18, 0 }
  0x4d   : > { %177 = sbr.rel (%p3682_p0) target bundleno = 495 (0x1ef), region = 28  ;;  %s2257_s7 = sshll.u32 (!%p3682_p0), %s3115_s6, 7 }
  0x4e   : > { %s180_s8 = scalar_lea.sflag (!%p3682_p0), [#allocation4], %s3115_s6  ;;  %s3119_s9 = scalar_lea.vmem (!%p3682_p0), [#allocation3], %s2257_s7 }
  0x54   : > { %2914 = dma.done.wait (%p3683_p5), %s180_s8, 2048  }
  0x55   : > { %2916 = vsyncadd (%p3683_p5), %s180_s8, 4294965248  ;;  %p3684_p11 = scmp.eq.s32.totalorder %s2997_s16, 0 }
  0x57   : > { %2918 = dma.done.wait (%p3684_p11), [#allocation7], 9216   ;;  %p3685_p1 = pmov %p3684_p11 }
  0x58   : > { %v2951_v0 = vmov 0   ;;  %v2699_v1 = vld [vmem:[#allocation6 + $0x40] sm:$0xff]   ;;  %v2703_v5 = vld [vmem:[#allocation6 + $0x48] sm:$0xff]   ;;  %v2707_v9 = vld [vmem:[#allocation6 + $0x50] sm:$0xff]   ;;  %vm374_vm0 = vcmask 1043456   ;;  %vm380_vm2 = vcmask 1040384  }
  0x59   : > { %2920 = vsyncadd (%p3685_p1), [#allocation7], 4294958080  ;;  %273 = vst [vmem:[#allocation2] sm:$0xf] %v2951_v0  ;;  %v2700_v2 = vld [vmem:[#allocation6 + $0xc0] sm:$0xff]   ;;  %2418 = vmatprep.subr.bf16.mxu0 %v2699_v1  ;;  %v2704_v6 = vld [vmem:[#allocation6 + $0xc8] sm:$0xff]  }
  0x5a   : > { %274 = vst [vmem:[#allocation2 + $0x4] sm:$0x1] %v2951_v0  ;;  %275 = vst [vmem:[#allocation2 + $0x8] sm:$0xf] %v2951_v0  ;;  %v2701_v3 = vld [vmem:[#allocation6] sm:$0xff]   ;;  %2458 = vmatprep.subr.bf16.mxu1 %v2700_v2  ;;  %v2705_v7 = vld [vmem:[#allocation6 + $0x8] sm:$0xff]  }
  0x5b   : > { %276 = vst [vmem:[#allocation2 + $0xc] sm:$0x1] %v2951_v0  ;;  %277 = vst [vmem:[#allocation2 + $0x10] sm:$0xf] %v2951_v0  ;;  %v2702_v4 = vld [vmem:[#allocation6 + $0x80] sm:$0xff]   ;;  %2419 = vmatpush3.bf16.msra.mxu0 %v2701_v3  ;;  %v2706_v8 = vld [vmem:[#allocation6 + $0x88] sm:$0xff]  }
  0x5c   : > { %278 = vst [vmem:[#allocation2 + $0x14] sm:$0x1] %v2951_v0  ;;  %279 = vst [vmem:[#allocation2 + $0x18] sm:$0xf] %v2951_v0  ;;  %2459 = vmatpush3.bf16.msra.mxu1 %v2702_v4  ;;  %2420 = vmatprep.subr.bf16.mxu0 %v2703_v5  ;;  %v2708_v10 = vld [vmem:[#allocation6 + $0xd0] sm:$0xff]   ;;  %v2711_v13 = vld [vmem:[#allocation6 + $0x58] sm:$0xff]  }
  0x5d   : > { %280 = vst [vmem:[#allocation2 + $0x1c] sm:$0x1] %v2951_v0  ;;  %281 = vst [vmem:[#allocation2 + $0x20] sm:$0xf] %v2951_v0  ;;  %2460 = vmatprep.subr.bf16.mxu1 %v2704_v6  ;;  %v2709_v11 = vld [vmem:[#allocation6 + $0x10] sm:$0xff]   ;;  %v2712_v14 = vld [vmem:[#allocation6 + $0xd8] sm:$0xff]  }
  0x5e   : > { %282 = vst [vmem:[#allocation2 + $0x24] sm:$0x1] %v2951_v0  ;;  %283 = vst [vmem:[#allocation2 + $0x28] sm:$0xf] %v2951_v0  ;;  %v2710_v12 = vld [vmem:[#allocation6 + $0x90] sm:$0xff]   ;;  %v2713_v15 = vld [vmem:[#allocation6 + $0x18] sm:$0xff]  }
  0x5f   : > { %284 = vst [vmem:[#allocation2 + $0x2c] sm:$0x1] %v2951_v0  ;;  %285 = vst [vmem:[#allocation2 + $0x30] sm:$0xf] %v2951_v0  ;;  %2421 = vmatpush3.bf16.msra.mxu0 %v2705_v7  ;;  %v2714_v16 = vld [vmem:[#allocation6 + $0x98] sm:$0xff]   ;;  %v2715_v17 = vld [vmem:[#allocation6 + $0x60] sm:$0xff]  }
  0x60   : > { %286 = vst [vmem:[#allocation2 + $0x34] sm:$0x1] %v2951_v0  ;;  %287 = vst [vmem:[#allocation2 + $0x38] sm:$0xf] %v2951_v0  ;;  %2461 = vmatpush3.bf16.msra.mxu1 %v2706_v8  ;;  %2422 = vmatprep.subr.bf16.mxu0 %v2707_v9  ;;  %v2716_v18 = vld [vmem:[#allocation6 + $0xe0] sm:$0xff]   ;;  %v2719_v21 = vld [vmem:[#allocation6 + $0x68] sm:$0xff]  }
  0x61   : > { %288 = vst [vmem:[#allocation2 + $0x3c] sm:$0x1] %v2951_v0  ;;  %289 = vst [vmem:[#allocation2 + $0x40] sm:$0xf] %v2951_v0  ;;  %2462 = vmatprep.subr.bf16.mxu1 %v2708_v10  ;;  %v2717_v19 = vld [vmem:[#allocation6 + $0x20] sm:$0xff]   ;;  %v2720_v22 = vld [vmem:[#allocation6 + $0xe8] sm:$0xff]  }
  0x62   : > { %290 = vst [vmem:[#allocation2 + $0x44] sm:$0x1] %v2951_v0  ;;  %291 = vst [vmem:[#allocation2 + $0x48] sm:$0xf] %v2951_v0  ;;  %v2718_v20 = vld [vmem:[#allocation6 + $0xa0] sm:$0xff]   ;;  %v2721_v23 = vld [vmem:[#allocation6 + $0x28] sm:$0xff]  }
  0x63   : > { %292 = vst [vmem:[#allocation2 + $0x4c] sm:$0x1] %v2951_v0  ;;  %2423 = vmatpush3.bf16.msra.mxu0 %v2709_v11  ;;  %v2722_v24 = vld [vmem:[#allocation6 + $0xa8] sm:$0xff]   ;;  %v2723_v25 = vld [vmem:[#allocation6 + $0x70] sm:$0xff]   ;;  %v2727_v29 = vld [vmem:[#allocation6 + $0x78] sm:$0xff]   ;;  %vm583_vm6 = vcmask 1042432  }
  0x64   : > { %2463 = vmatpush3.bf16.msra.mxu1 %v2710_v12  ;;  %2424 = vmatprep.subr.bf16.mxu0 %v2711_v13  ;;  %v2724_v26 = vld [vmem:[#allocation6 + $0xf0] sm:$0xff]   ;;  %v2728_v30 = vld [vmem:[#allocation6 + $0xf8] sm:$0xff]   ;;  %v216_v33 = vld [vmem:[%s3119_s9] sm:$0xf]  ;;  %vm375_vm1 = vsmask.f32 7938 }
  0x65   : > { %2464 = vmatprep.subr.bf16.mxu1 %v2712_v14  ;;  %v2725_v27 = vld [vmem:[#allocation6 + $0x30] sm:$0xff]   ;;  %v2729_v31 = vld [vmem:[#allocation6 + $0x38] sm:$0xff]   ;;  %v224_v34 = vld [vmem:[%s3119_s9 + $0x4] sm:$0xf]  ;;  %vm381_vm3 = vsmask.f32 256 }
  0x66   : > { %v2726_v28 = vld [vmem:[#allocation6 + $0xb0] sm:$0xff]   ;;  %v2730_v32 = vld [vmem:[#allocation6 + $0xb8] sm:$0xff]   ;;  %v2261_v35 = vld [vmem:[%s3119_s9 + $0x8] sm:$0xf]  ;;  %v249_v37 = vmax.bf16 %v224_v34, %v216_v33  ;;  %vm444_vm7 = vsmask.f32 3328 }
  0x67   : > { %2425 = vmatpush3.bf16.msra.mxu0 %v2713_v15  ;;  %v2269_v36 = vld [vmem:[%s3119_s9 + $0xc] sm:$0xf]  ;;  %v217_v39 = vld [vmem:[%s3119_s9 + $0x10] sm:$0xf]  ;;  %v225_v41 = vld [vmem:[%s3119_s9 + $0x14] sm:$0xf] }
  0x68   : > { %2465 = vmatpush3.bf16.msra.mxu1 %v2714_v16  ;;  %2426 = vmatprep.subr.bf16.mxu0 %v2715_v17  ;;  %v257_v38 = vmax.bf16 %v2269_v36, %v2261_v35  ;;  %v3134_v40 = vld [vmem:[#allocation2] sm:$0xf]  ;;  %v2262_v43 = vld [vmem:[%s3119_s9 + $0x18] sm:$0xf]  ;;  %v2270_v44 = vld [vmem:[%s3119_s9 + $0x1c] sm:$0xf]  ;;  %v250_v45 = vmax.bf16 %v225_v41, %v217_v39 }
  0x69   : > { %2466 = vmatprep.subr.bf16.mxu1 %v2716_v18  ;;  %v258_v46 = vmax.bf16 %v2270_v44, %v2262_v43  ;;  %v2733_v47 = vld [vmem:[#allocation6 + $0x140] sm:$0xff]   ;;  %v448_v50 = vshrl.u32 %v3134_v40, 16  ;;  %v377_v52 = vld [vmem:[#allocation2 + $0x8] sm:$0xf]  ;;  %v383_v53 = vld [vmem:[#allocation2 + $0xc] sm:$0x1] }
  0x6a   : > { %v265_v42 = vmax.bf16 %v257_v38, %v249_v37  ;;  %v2734_v51 = vld [vmem:[#allocation6 + $0x1c0] sm:$0xff]   ;;  %vm3141_vm4 = vmand %vm374_vm0, %vm375_vm1  ;;  %v451_v58 = vshll.u32 %v3134_v40, 16  ;;  %v436_v0 = vld [vmem:[#allocation2 + $0x4] sm:$0x1]  ;;  %vm445_vm8 = vsmask.f32 7440 }
  0x6b   : > { %2427 = vmatpush3.bf16.msra.mxu0 %v2717_v19  ;;  %v266_v54 = vmax.bf16 %v258_v46, %v250_v45  ;;  %vm3146_vm5 = vmand %vm380_vm2, %vm381_vm3  ;;  %v386_v63 = vld [vmem:[#allocation2 + $0x10] sm:$0xf]  ;;  %v450_v1 = vrot.slane %v448_v50, 4  ;;  %v559_v8 = vld [vmem:[#allocation2] sm:$0xe]  ;;  %v457_v16 = vshll.u32 %v436_v0, 16 }
  0x6c   : > { %2467 = vmatpush3.bf16.msra.mxu1 %v2718_v20  ;;  %2428 = vmatprep.subr.bf16.mxu0 %v2719_v21  ;;  %v294_v48 = vshrl.u32 %v265_v42, 16  ;;  %v297_v49 = vshll.u32 %v265_v42, 16  ;;  %v453_v5 = vrot.slane %v451_v58, 5  ;;  %v218_v9 = vld [vmem:[%s3119_s9 + $0x20] sm:$0xf]  ;;  %vm584_vm9 = vcmask 1046532   ;;  %vm3179_vm11 = vmor %vm444_vm7, %vm445_vm8 }
  0x6d   : > { %2468 = vmatprep.subr.bf16.mxu1 %v2720_v22  ;;  %v302_v59 = vshrl.u32 %v266_v54, 16  ;;  %v305_v60 = vshll.u32 %v266_v54, 16  ;;  %v226_v10 = vld [vmem:[%s3119_s9 + $0x24] sm:$0xf]  ;;  %v2263_v12 = vld [vmem:[%s3119_s9 + $0x28] sm:$0xf]  ;;  %vm3171_vm10 = vmor %vm583_vm6, %vm584_vm9 }
  0x6e   : > { %v296_v55 = vrot.slane %v294_v48, 7  ;;  %v2271_v13 = vld [vmem:[%s3119_s9 + $0x2c] sm:$0xf]  ;;  %v251_v14 = vmax.bf16 %v226_v10, %v218_v9  ;;  %v389_v15 = vld [vmem:[#allocation2 + $0x14] sm:$0x1]  ;;  %v588_v19 = vrot.slane %v436_v0, 5 }
  0x6f   : > { %2429 = vmatpush3.bf16.msra.mxu0 %v2721_v23  ;;  %v304_v2 = vrot.slane %v302_v59, 7  ;;  %v259_v17 = vmax.bf16 %v2271_v13, %v2263_v12  ;;  %v2277_v20 = vrot.slane %v559_v8, 9  ;;  %v219_v21 = vld [vmem:[%s3119_s9 + $0x30] sm:$0xf]  ;;  %v227_v22 = vld [vmem:[%s3119_s9 + $0x34] sm:$0xf]  ;;  %v454_v23 = vor.u32 %v453_v5, %v450_v1 }
  0x70   : > { %2469 = vmatpush3.bf16.msra.mxu1 %v2722_v24  ;;  %2430 = vmatprep.subr.bf16.mxu0 %v2723_v25  ;;  %v299_v61 = vor.u32 %v297_v49, %v296_v55  ;;  %v300_v62 = vrot.slane %v296_v55, 4  ;;  %v2264_v24 = vld [vmem:[%s3119_s9 + $0x38] sm:$0xf]  ;;  %v252_v39 = vmax.bf16 %v227_v22, %v219_v21  ;;  %v2736_v58 = vld [vmem:[#allocation6 + $0x180] sm:$0xff]   ;;  %v2738_v0 = vld [vmem:[#allocation6 + $0x1c8] sm:$0xff]   ;;  %s2259_s18 = sshll.u32 %s3115_s6, 6 }
  0x71   : > { %2470 = vmatprep.subr.bf16.mxu1 %v2724_v26  ;;  %v307_v6 = vor.u32 %v305_v60, %v304_v2  ;;  %v308_v7 = vrot.slane %v304_v2, 4  ;;  %v267_v25 = vmax.bf16 %v259_v17, %v251_v14  ;;  %v2272_v26 = vld [vmem:[%s3119_s9 + $0x3c] sm:$0xf]  ;;  %v455_v36 = vrot.slane %v454_v23, 4  ;;  %v395_v60 = vld [vmem:[#allocation2 + $0x1c] sm:$0x1] }
  0x72   : > { %v378_v3 = vsel %vm3141_vm4, %v299_v61, %v377_v52  ;;  %v384_v4 = vsel %vm3146_vm5, %v300_v62, %v383_v53  ;;  %v260_v41 = vmax.bf16 %v2272_v26, %v2264_v24  ;;  %v589_v46 = vsel %vm3171_vm10, %v2277_v20, %v588_v19  ;;  %v392_v1 = vld [vmem:[#allocation2 + $0x18] sm:$0xf]  ;;  %v2735_v10 = vld [vmem:[#allocation6 + $0x100] sm:$0xff]   ;;  %v2744_v21 = vld [vmem:[#allocation6 + $0x1d0] sm:$0xff]   ;;  %s3569_s20 = scalar_lea.vmem [#allocation8], %s2259_s18  ;;  %s2417_s25 = sshll.u32 %s2997_s16, 10 }
  0x73   : > { %2431 = vmatpush3.bf16.msra.mxu0 %v2725_v27  ;;  %379 = vst [vmem:[#allocation2 + $0x8] sm:$0xf] %v378_v3  ;;  %385 = vst [vmem:[#allocation2 + $0xc] sm:$0x1] %v384_v4  ;;  %v387_v11 = vsel %vm3141_vm4, %v307_v6, %v386_v63  ;;  %v390_v18 = vsel %vm3146_vm5, %v308_v7, %v389_v15  ;;  %v313_v4 = vshll.u32 %v267_v25, 16  ;;  %v2737_v14 = vld [vmem:[#allocation6 + $0x148] sm:$0xff]   ;;  %s3583_s10 = scalar_lea.hbm %s3670_s2, %s2417_s25 }
  0x74   : > { %2471 = vmatpush3.bf16.msra.mxu1 %v2726_v28  ;;  %2432 = vmatprep.subr.bf16.mxu0 %v2727_v29  ;;  %388 = vst [vmem:[#allocation2 + $0x10] sm:$0xf] %v387_v11  ;;  %391 = vst [vmem:[#allocation2 + $0x14] sm:$0x1] %v390_v18  ;;  %v459_v29 = vrot.slane %v457_v16, 5  ;;  %v268_v2 = vmax.bf16 %v260_v41, %v252_v39  ;;  %v2740_v15 = vld [vmem:[#allocation6 + $0x188] sm:$0xff]  }
  0x75   : > { %2472 = vmatprep.subr.bf16.mxu1 %v2728_v30  ;;  %v2265_v39 = vld [vmem:[%s3119_s9 + $0x48] sm:$0xf]  ;;  %s2121_s4 = sshll.u32 %s3569_s20, 4  ;;  %s2103_s11 = scalar_lea.sflag [#allocation5], %s3115_s6  ;;  %s3575_s4 = int_to_ptr.vmem [resolvable:$true] %s2121_s4 }
  0x76   : > { %v460_v61 = vsel %vm3179_vm11, %v455_v36, %v459_v29  ;;  %v318_v24 = vshrl.u32 %v268_v2, 16  ;;  %s2841_s27 = scalar_lea.vmem %s3575_s4, 1024  ;;  %s2952_s28 = smov [#allocation8]  }
  0x77   : > { %2433 = vmatpush3.bf16.msra.mxu0 %v2729_v31  ;;  %p2842_p4 = scmp.ne.s32.totalorder %s3575_s4, %s2841_s27  ;;  %s2845_s29 = sshll.u32 %s2952_s28, 4  ;;  %s2846_s29 = int_to_ptr.vmem [resolvable:$false] %s2845_s29 }
  0x78   : > { %2473 = vmatpush3.bf16.msra.mxu1 %v2730_v32  ;;  %2498 = vmatprep.subr.bf16.mxu0 %v2733_v47  ;;  %v310_v47 = vshrl.u32 %v267_v25, 16  ;;  %v321_v25 = vshll.u32 %v268_v2, 16  ;;  %s2847_s23 = scalar_lea.vmem %s2846_s29, 2048  ;;  %p2848_p10 = scmp.lt.s32.totalorder %s3575_s4, %s2846_s29 }
  0x79   : > { %2538 = vmatprep.subr.bf16.mxu1 %v2734_v51  ;;  %p2843_p6 = pnand %p2842_p4, %p3067_p12  ;;  %p2849_p13 = scmp.lt.s32.totalorder %s2847_s23, %s2841_s27 }
  0x7a   : > { %v3167_v27 = vld [vmem:[#allocation2 + $0x8] sm:$0xf]  ;;  %v437_v28 = vld [vmem:[#allocation2 + $0xc] sm:$0x1]  ;;  %v312_v59 = vrot.slane %v310_v47, 7 }
  0x7b   : > { %v462_v31 = vshrl.u32 %v3167_v27, 16  ;;  %v465_v32 = vshll.u32 %v3167_v27, 16  ;;  %v471_v33 = vshll.u32 %v437_v28, 16  ;;  %v592_v34 = vrot.slane %v437_v28, 5  ;;  %v560_v35 = vld [vmem:[#allocation2 + $0x8] sm:$0xe]  ;;  %p2844_p8 = pneg %p2843_p6  ;;  %p2850_p3 = por %p2849_p13, %p2848_p10 }
  0x7c   : > { %v618_v37 = vld [vmem:[#allocation2 + $0x8] sm:$0xf]  ;;  %v2278_v38 = vrot.slane %v560_v35, 9  ;;  %v619_v45 = vld [vmem:[#allocation2 + $0x10] sm:$0xf]  ;;  %v316_v5 = vrot.slane %v312_v59, 4  ;;  %v2301_v9 = vcombine.low %v3134_v40, %v3167_v27  ;;  %v315_v16 = vor.u32 %v313_v4, %v312_v59 }
  0x7d   : > { %v464_v43 = vrot.slane %v462_v31, 4  ;;  %v467_v44 = vrot.slane %v465_v32, 5  ;;  %v473_v48 = vrot.slane %v471_v33, 5  ;;  %v635_v49 = vshrl.u32 %v618_v37, 16  ;;  %v3185_v52 = vld [vmem:[#allocation2 + $0x10] sm:$0xf]  ;;  %p2851_p7 = pnand %p2850_p3, %p2844_p8 }
  0x7e   : > { %v638_v50 = vshll.u32 %v618_v37, 16  ;;  %v649_v51 = vshrl.u32 %v619_v45, 16  ;;  %v2313_v54 = vcombine.low %v618_v37, %v619_v45  ;;  %v593_v55 = vsel %vm3171_vm10, %v2278_v38, %v592_v34  ;;  %v3201_v23 = vld [vmem:[#allocation2 + $0x14] sm:$0x1]  ;;  %v2739_v27 = vld [vmem:[#allocation6 + $0x108] sm:$0xff]   ;;  %v2746_v32 = vld [vmem:[#allocation6 + $0x190] sm:$0xff]  }
  0x7f   : > { %v468_v53 = vor.u32 %v467_v44, %v464_v43  ;;  %v652_v62 = vshll.u32 %v619_v45, 16  ;;  %v2309_v63 = vcombine.low %v589_v46, %v593_v55  ;;  %v476_v6 = vshrl.u32 %v3185_v52, 16  ;;  %v398_v28 = vld [vmem:[#allocation2 + $0x20] sm:$0xf]  ;;  %v561_v29 = vld [vmem:[#allocation2 + $0x10] sm:$0xe] }
  0x80   : > { %1828 = vmatprep.mubr.bf16.mxu1 %v2313_v54  ;;  %v637_v7 = vrot.slane %v635_v49, 4  ;;  %v640_v8 = vrot.slane %v638_v50, 5  ;;  %v479_v11 = vshll.u32 %v3185_v52, 16  ;;  %v651_v13 = vrot.slane %v649_v51, 4  ;;  %v220_v33 = vld [vmem:[%s3119_s9 + $0x40] sm:$0xf] }
  0x81   : > { %v469_v3 = vrot.slane %v468_v53, 4  ;;  %1829 = vmatmul.mubr.bf16.vlgmr.msra.gmra.mrb[0].mxu1 %v2309_v63  ;;  %v396_v17 = vsel %vm3146_vm5, %v316_v5, %v395_v60  ;;  %v654_v19 = vrot.slane %v652_v62, 5  ;;  %v478_v40 = vrot.slane %v476_v6, 4  ;;  %v2748_v37 = vld [vmem:[#allocation6 + $0x1d8] sm:$0xff]   ;;  %v228_v38 = vld [vmem:[%s3119_s9 + $0x44] sm:$0xf] }
  0x82   : > { %2539 = vmatpush3.bf16.msra.mxu1 %v2736_v58  ;;  %397 = vst [vmem:[#allocation2 + $0x1c] sm:$0x1] %v396_v17  ;;  %v481_v20 = vrot.slane %v479_v11, 5  ;;  %v393_v22 = vsel %vm3141_vm4, %v315_v16, %v392_v1  ;;  %v641_v26 = vor.u32 %v640_v8, %v637_v7  ;;  %v320_v31 = vrot.slane %v318_v24, 7  ;;  %v2743_v44 = vld [vmem:[#allocation6 + $0x150] sm:$0xff]   ;;  %v2750_v53 = vld [vmem:[#allocation6 + $0x198] sm:$0xff]  }
  0x83   : > { %v474_v12 = vsel %vm3179_vm11, %v469_v3, %v473_v48  ;;  %2540 = vmatprep.subr.bf16.mxu1 %v2738_v0  ;;  %394 = vst [vmem:[#allocation2 + $0x18] sm:$0xf] %v393_v22  ;;  %v655_v34 = vor.u32 %v654_v19, %v651_v13  ;;  %v485_v36 = vshll.u32 %v3201_v23, 16  ;;  %v2273_v45 = vld [vmem:[%s3119_s9 + $0x4c] sm:$0xf]  ;;  %v253_v46 = vmax.bf16 %v228_v38, %v220_v33  ;;  %v2745_v51 = vld [vmem:[#allocation6 + $0x110] sm:$0xff]  }
  0x84   : > { %v2305_v18 = vcombine.low %v460_v61, %v474_v12  ;;  %v482_v35 = vor.u32 %v481_v20, %v478_v40  ;;  %v323_v41 = vor.u32 %v321_v25, %v320_v31  ;;  %v324_v43 = vrot.slane %v320_v31, 4  ;;  %v401_v47 = vld [vmem:[#allocation2 + $0x24] sm:$0x1]  ;;  %v221_v55 = vld [vmem:[%s3119_s9 + $0x50] sm:$0xf]  ;;  %v2747_v60 = vld [vmem:[#allocation6 + $0x158] sm:$0xff]  }
  0x85   : > { %v3208_v48 = vrot.slane %v641_v26, 4  ;;  %v2279_v49 = vrot.slane %v561_v29, 9  ;;  %v596_v50 = vrot.slane %v3201_v23, 5  ;;  %v261_v54 = vmax.bf16 %v2273_v45, %v2265_v39  ;;  %v229_v62 = vld [vmem:[%s3119_s9 + $0x54] sm:$0xf]  ;;  %v2754_v5 = vld [vmem:[#allocation6 + $0x1e0] sm:$0xff]  }
  0x86   : > { %1763 = vmatprep.mubr.bf16.mxu0 %v2305_v18  ;;  %2541 = vmatpush3.bf16.msra.mxu1 %v2740_v15  ;;  %v399_v59 = vsel %vm3141_vm4, %v323_v41, %v398_v28  ;;  %v402_v61 = vsel %vm3146_vm5, %v324_v43, %v401_v47  ;;  %v2266_v63 = vld [vmem:[%s3119_s9 + $0x58] sm:$0xf]  ;;  %v3218_v0 = vrot.slane %v655_v34, 4  ;;  %v3220_v1 = vrot.slane %v482_v35, 4  ;;  %v2274_v4 = vld [vmem:[%s3119_s9 + $0x5c] sm:$0xf] }
  0x87   : > { %1764 = vmatmul.mubr.bf16.vlgmr.msra.gmra.mrb[0].mxu0 %v2301_v9  ;;  %2542 = vmatprep.subr.bf16.mxu1 %v2744_v21  ;;  %v3222_v2 = vrot.slane %v485_v36, 5  ;;  %400 = vst [vmem:[#allocation2 + $0x20] sm:$0xf] %v399_v59  ;;  %v269_v3 = vmax.bf16 %v261_v54, %v253_v46  ;;  %403 = vst [vmem:[#allocation2 + $0x24] sm:$0x1] %v402_v61  ;;  %v262_v11 = vmax.bf16 %v2274_v4, %v2266_v63  ;;  %v2749_v15 = vld [vmem:[#allocation6 + $0x118] sm:$0xff]  }
  0x88   : > { %2499 = vmatpush3.bf16.msra.mxu0 %v2735_v10  ;;  %v254_v10 = vmax.bf16 %v229_v62, %v221_v55  ;;  %v597_v17 = vsel %vm3171_vm10, %v2279_v49, %v596_v50  ;;  %v2753_v40 = vld [vmem:[#allocation6 + $0x160] sm:$0xff]   ;;  %v404_v25 = vld [vmem:[#allocation2 + $0x28] sm:$0xf]  ;;  %v407_v26 = vld [vmem:[#allocation2 + $0x2c] sm:$0x1] }
  0x89   : > { %2500 = vmatprep.subr.bf16.mxu0 %v2737_v14  ;;  %v439_v58 = vld [vmem:[#allocation2 + $0x1c] sm:$0x1]  ;;  %v326_v19 = vshrl.u32 %v269_v3, 16  ;;  %v2756_v20 = vld [vmem:[#allocation6 + $0x1a0] sm:$0xff]   ;;  %v329_v24 = vshll.u32 %v269_v3, 16 }
  0x8a   : > { %2543 = vmatpush3.bf16.msra.mxu1 %v2746_v32  ;;  %v3225_v6 = vld [vmem:[#allocation2 + $0x18] sm:$0xf]  ;;  %v499_v7 = vshll.u32 %v439_v58, 16  ;;  %v600_v9 = vrot.slane %v439_v58, 5  ;;  %v270_v31 = vmax.bf16 %v262_v11, %v254_v10  ;;  %v488_v32 = vsel %vm3179_vm11, %v3220_v1, %v3222_v2  ;;  %v410_v3 = vld [vmem:[#allocation2 + $0x30] sm:$0xf] }
  0x8b   : > { %2544 = vmatprep.subr.bf16.mxu1 %v2748_v37  ;;  %v562_v8 = vld [vmem:[#allocation2 + $0x18] sm:$0xe]  ;;  %v490_v12 = vshrl.u32 %v3225_v6, 16  ;;  %v493_v13 = vshll.u32 %v3225_v6, 16  ;;  %v328_v29 = vrot.slane %v326_v19, 7  ;;  %v2302_v34 = vcombine.low %v3185_v52, %v3225_v6  ;;  %v2755_v52 = vld [vmem:[#allocation6 + $0x120] sm:$0xff]  }
  0x8c   : > { %2501 = vmatpush3.bf16.msra.mxu0 %v2739_v27  ;;  %v620_v14 = vld [vmem:[#allocation2 + $0x18] sm:$0xf]  ;;  %v2280_v18 = vrot.slane %v562_v8, 9  ;;  %v501_v27 = vrot.slane %v499_v7, 5  ;;  %v334_v41 = vshrl.u32 %v270_v31, 16  ;;  %v337_v4 = vshll.u32 %v270_v31, 16 }
  0x8d   : > { %2502 = vmatprep.subr.bf16.mxu0 %v2743_v44  ;;  %v663_v16 = vshrl.u32 %v620_v14, 16  ;;  %v492_v21 = vrot.slane %v490_v12, 4  ;;  %v495_v22 = vrot.slane %v493_v13, 5  ;;  %v666_v23 = vshll.u32 %v620_v14, 16  ;;  %v2757_v54 = vld [vmem:[#allocation6 + $0x168] sm:$0xff]  }
  0x8e   : > { %2545 = vmatpush3.bf16.msra.mxu1 %v2750_v53  ;;  %v601_v28 = vsel %vm3171_vm10, %v2280_v18, %v600_v9  ;;  %v3239_v35 = vld [vmem:[#allocation2 + $0x20] sm:$0xf]  ;;  %v331_v37 = vor.u32 %v329_v24, %v328_v29  ;;  %v332_v38 = vrot.slane %v328_v29, 4  ;;  %v3248_v47 = vld [vmem:[#allocation2 + $0x24] sm:$0x1]  ;;  %v2758_v61 = vld [vmem:[#allocation6 + $0x1e8] sm:$0xff]  }
  0x8f   : > { %2546 = vmatprep.subr.bf16.mxu1 %v2754_v5  ;;  %v496_v33 = vor.u32 %v495_v22, %v492_v21  ;;  %v2310_v36 = vcombine.low %v597_v17, %v601_v28  ;;  %v3241_v39 = vld [vmem:[#allocation2 + $0x20] sm:$0xf]  ;;  %v3243_v44 = vrot.slane %v663_v16, 4  ;;  %v3245_v45 = vrot.slane %v666_v23, 5  ;;  %v2759_v6 = vld [vmem:[#allocation6 + $0x128] sm:$0xff]  }
  0x90   : > { %2503 = vmatpush3.bf16.msra.mxu0 %v2745_v51  ;;  %v2314_v46 = vcombine.low %v620_v14, %v3239_v35  ;;  %v405_v49 = vsel %vm3141_vm4, %v331_v37, %v404_v25  ;;  %v408_v50 = vsel %vm3146_vm5, %v332_v38, %v407_v26  ;;  %v504_v51 = vshrl.u32 %v3241_v39, 16  ;;  %v563_v5 = vld [vmem:[#allocation2 + $0x20] sm:$0xe]  ;;  %v2760_v8 = vld [vmem:[#allocation6 + $0x1a8] sm:$0xff]   ;;  %v222_v10 = vld [vmem:[%s3119_s9 + $0x60] sm:$0xf] }
  0x91   : > { %2504 = vmatprep.subr.bf16.mxu0 %v2747_v60  ;;  %v497_v43 = vrot.slane %v496_v33, 4  ;;  %v507_v53 = vshll.u32 %v3241_v39, 16  ;;  %v677_v58 = vshrl.u32 %v3239_v35, 16  ;;  %v680_v59 = vshll.u32 %v3239_v35, 16  ;;  %406 = vst [vmem:[#allocation2 + $0x28] sm:$0xf] %v405_v49 }
  0x92   : > { %2547 = vmatpush3.bf16.msra.mxu1 %v2756_v20  ;;  %1836 = vmatprep.mubr.bf16.mxu1 %v2314_v46  ;;  %409 = vst [vmem:[#allocation2 + $0x2c] sm:$0x1] %v408_v50  ;;  %v513_v60 = vshll.u32 %v3248_v47, 16  ;;  %v506_v63 = vrot.slane %v504_v51, 4  ;;  %v336_v2 = vrot.slane %v334_v41, 7  ;;  %v2281_v17 = vrot.slane %v563_v5, 9 }
  0x93   : > { %v502_v55 = vsel %vm3179_vm11, %v497_v43, %v501_v27  ;;  %1837 = vmatmul.mubr.bf16.gmra.mrb[4].mxu1 %v2310_v36  ;;  %v509_v1 = vrot.slane %v507_v53, 5  ;;  %2548 = vmatprep.subr.bf16.mxu1 %v2758_v61  ;;  %v230_v13 = vld [vmem:[%s3119_s9 + $0x64] sm:$0xf]  ;;  %v2267_v14 = vld [vmem:[%s3119_s9 + $0x68] sm:$0xf]  ;;  %v604_v18 = vrot.slane %v3248_v47, 5 }
  0x94   : > { %2505 = vmatpush3.bf16.msra.mxu0 %v2749_v15  ;;  %v2306_v62 = vcombine.low %v488_v32, %v502_v55  ;;  %v340_v7 = vrot.slane %v336_v2, 4  ;;  %v339_v9 = vor.u32 %v337_v4, %v336_v2  ;;  %v3262_v12 = vrot.slane %v513_v60, 5  ;;  %v2763_v15 = vld [vmem:[#allocation6 + $0x170] sm:$0xff]   ;;  %v2275_v19 = vld [vmem:[%s3119_s9 + $0x6c] sm:$0xf] }
  0x95   : > { %2506 = vmatprep.subr.bf16.mxu0 %v2753_v40  ;;  %v510_v11 = vor.u32 %v509_v1, %v506_v63  ;;  %v413_v40 = vld [vmem:[#allocation2 + $0x34] sm:$0x1]  ;;  %v255_v23 = vmax.bf16 %v230_v13, %v222_v10  ;;  %v263_v24 = vmax.bf16 %v2275_v19, %v2267_v14  ;;  %v2764_v36 = vld [vmem:[#allocation6 + $0x1f0] sm:$0xff]   ;;  %v3280_v37 = vrot.slane %v677_v58, 4  ;;  %v2268_v53 = vld [vmem:[%s3119_s9 + $0x78] sm:$0xf] }
  0x96   : > { %1771 = vmatprep.mubr.bf16.mxu0 %v2306_v62  ;;  %2549 = vmatpush3.bf16.msra.mxu1 %v2760_v8  ;;  %v411_v16 = vsel %vm3141_vm4, %v339_v9, %v410_v3  ;;  %v414_v25 = vsel %vm3146_vm5, %v340_v7, %v413_v40  ;;  %v3282_v38 = vrot.slane %v680_v59, 5  ;;  %v223_v46 = vld [vmem:[%s3119_s9 + $0x70] sm:$0xf]  ;;  %v231_v51 = vld [vmem:[%s3119_s9 + $0x74] sm:$0xf] }
  0x97   : > { %1772 = vmatmul.mubr.bf16.gmra.mrb[4].mxu0 %v2302_v34  ;;  %412 = vst [vmem:[#allocation2 + $0x30] sm:$0xf] %v411_v16  ;;  %415 = vst [vmem:[#allocation2 + $0x34] sm:$0x1] %v414_v25  ;;  %v511_v32 = vrot.slane %v510_v11, 4  ;;  %v271_v50 = vmax.bf16 %v263_v24, %v255_v23  ;;  %2550 = vmatprep.subr.bf16.mxu1 %v2764_v36  ;;  %v256_v7 = vmax.bf16 %v231_v51, %v223_v46  ;;  %v2766_v9 = vld [vmem:[#allocation6 + $0x1b0] sm:$0xff]  }
  0x98   : > { %2507 = vmatpush3.bf16.msra.mxu0 %v2755_v52  ;;  %v3270_v20 = vld [vmem:[#allocation2 + $0x28] sm:$0xf]  ;;  %v605_v52 = vsel %vm3171_vm10, %v2281_v17, %v604_v18  ;;  %v2276_v60 = vld [vmem:[%s3119_s9 + $0x7c] sm:$0xf]  ;;  %v416_v5 = vld [vmem:[#allocation2 + $0x38] sm:$0xf]  ;;  %v669_v51 = vor.u32 %v3245_v45, %v3243_v44 }
  0x99   : > { %2508 = vmatprep.subr.bf16.mxu0 %v2757_v54  ;;  %v441_v21 = vld [vmem:[#allocation2 + $0x2c] sm:$0x1]  ;;  %v3272_v22 = vld [vmem:[#allocation2 + $0x28] sm:$0xf]  ;;  %v518_v26 = vshrl.u32 %v3270_v20, 16  ;;  %v521_v27 = vshll.u32 %v3270_v20, 16  ;;  %v516_v61 = vsel %vm3179_vm11, %v511_v32, %v3262_v12  ;;  %v2303_v62 = vcombine.low %v3241_v39, %v3270_v20 }
  0x9a   : > { %v527_v28 = vshll.u32 %v441_v21, 16  ;;  %v691_v29 = vshrl.u32 %v3272_v22, 16  ;;  %v564_v31 = vld [vmem:[#allocation2 + $0x28] sm:$0xe]  ;;  %v694_v33 = vshll.u32 %v3272_v22, 16  ;;  %v608_v35 = vrot.slane %v441_v21, 5  ;;  %2551 = vmatpush3.bf16.msra.mxu1 %v2766_v9 }
  0x9b   : > { %v2282_v34 = vrot.slane %v564_v31, 9  ;;  %v520_v41 = vrot.slane %v518_v26, 4  ;;  %v523_v43 = vrot.slane %v521_v27, 5  ;;  %v2765_v54 = vld [vmem:[#allocation6 + $0x130] sm:$0xff]   ;;  %v342_v63 = vshrl.u32 %v271_v50, 16  ;;  %v2767_v39 = vld [vmem:[#allocation6 + $0x178] sm:$0xff]  }
  0x9c   : > { %2509 = vmatpush3.bf16.msra.mxu0 %v2759_v6  ;;  %v529_v47 = vrot.slane %v527_v28, 5  ;;  %v3291_v58 = vrot.slane %v691_v29, 4  ;;  %v3293_v59 = vrot.slane %v694_v33, 5  ;;  %v345_v1 = vshll.u32 %v271_v50, 16  ;;  %v419_v14 = vld [vmem:[#allocation2 + $0x3c] sm:$0x1] }
  0x9d   : > { %2510 = vmatprep.subr.bf16.mxu0 %v2763_v15  ;;  %v609_v49 = vsel %vm3171_vm10, %v2282_v34, %v608_v35  ;;  %v524_v55 = vor.u32 %v523_v43, %v520_v41  ;;  %v264_v8 = vmax.bf16 %v2276_v60, %v2268_v53  ;;  %v344_v12 = vrot.slane %v342_v63, 7  ;;  %v2768_v20 = vld [vmem:[#allocation6 + $0x1f8] sm:$0xff]   ;;  %v422_v46 = vld [vmem:[#allocation2 + $0x40] sm:$0xf] }
  0x9e   : > { %v623_v3 = vld [vmem:[#allocation2 + $0x30] sm:$0xf]  ;;  %v2311_v4 = vcombine.low %v605_v52, %v609_v49  ;;  %v442_v15 = vld [vmem:[#allocation2 + $0x34] sm:$0x1]  ;;  %2552 = vmatprep.subr.bf16.mxu1 %v2768_v20  ;;  %v2770_v49 = vld [vmem:[#allocation6 + $0x1b8] sm:$0xff]   ;;  %v683_v53 = vor.u32 %v3282_v38, %v3280_v37 }
  0x9f   : > { %v525_v2 = vrot.slane %v524_v55, 4  ;;  %v3301_v6 = vld [vmem:[#allocation2 + $0x30] sm:$0xf]  ;;  %v705_v10 = vshrl.u32 %v623_v3, 16  ;;  %v708_v11 = vshll.u32 %v623_v3, 16  ;;  %v2315_v13 = vcombine.low %v3272_v22, %v623_v3  ;;  %2553 = vmatpush3.bf16.msra.mxu1 %v2770_v49  ;;  %v2775_v37 = vld [vmem:[#allocation6 + $0x210] sm:$0xff]  }
  0xa0   : > { %2511 = vmatpush3.bf16.msra.mxu0 %v2765_v54  ;;  %v532_v17 = vshrl.u32 %v3301_v6, 16  ;;  %v535_v18 = vshll.u32 %v3301_v6, 16  ;;  %v541_v19 = vshll.u32 %v442_v15, 16  ;;  %v565_v40 = vld [vmem:[#allocation2 + $0x30] sm:$0xe]  ;;  %v347_v22 = vor.u32 %v345_v1, %v344_v12 }
  0xa1   : > { %v530_v16 = vsel %vm3179_vm11, %v525_v2, %v529_v47  ;;  %v3308_v23 = vrot.slane %v705_v10, 4  ;;  %v3310_v24 = vrot.slane %v708_v11, 5  ;;  %1844 = vmatprep.mubr.bf16.mxu1 %v2315_v13  ;;  %2512 = vmatprep.subr.bf16.mxu0 %v2767_v39  ;;  %v348_v25 = vrot.slane %v344_v12, 4  ;;  %v2769_v47 = vld [vmem:[#allocation6 + $0x138] sm:$0xff]   ;;  %v627_v54 = vld [vmem:[#allocation2 + $0x14] sm:$0x1] }
  0xa2   : > { %v2307_v21 = vcombine.low %v516_v61, %v530_v16  ;;  %1845 = vmatmul.mubr.bf16.gmra.mrb[8].mxu1 %v2311_v4  ;;  %v534_v26 = vrot.slane %v532_v17, 4  ;;  %v537_v27 = vrot.slane %v535_v18, 5  ;;  %v3312_v28 = vrot.slane %v541_v19, 5  ;;  %v626_v50 = vld [vmem:[#allocation2 + $0xc] sm:$0x1] }
  0xa3   : > { %v417_v29 = vsel %vm3141_vm4, %v347_v22, %v416_v5  ;;  %v272_v31 = vmax.bf16 %v264_v8, %v256_v7  ;;  %v2283_v32 = vrot.slane %v565_v40, 9  ;;  %v612_v33 = vrot.slane %v442_v15, 5  ;;  %v746_v60 = vld [vmem:[#allocation2 + $0x8] sm:$0xe]  ;;  %v747_v4 = vld [vmem:[#allocation2 + $0x10] sm:$0xe] }
  0xa4   : > { %1779 = vmatprep.mubr.bf16.mxu0 %v2307_v21  ;;  %418 = vst [vmem:[#allocation2 + $0x38] sm:$0xf] %v417_v29  ;;  %v420_v34 = vsel %vm3146_vm5, %v348_v25, %v419_v14  ;;  %v538_v35 = vor.u32 %v537_v27, %v534_v26  ;;  %2513 = vmatpush3.bf16.msra.mxu0 %v2769_v47  ;;  %v644_v55 = vshll.u32 %v626_v50, 16  ;;  %v772_v61 = vrot.slane %v626_v50, 5  ;;  %v3336_v7 = vld [vmem:[#allocation6 + $0x200] sm:$0xff]  }
  0xa5   : > { %1780 = vmatmul.mubr.bf16.gmra.mrb[8].mxu0 %v2303_v62  ;;  %421 = vst [vmem:[#allocation2 + $0x3c] sm:$0x1] %v420_v34  ;;  %v350_v36 = vshrl.u32 %v272_v31, 16  ;;  %v353_v41 = vshll.u32 %v272_v31, 16  ;;  %v697_v62 = vor.u32 %v3293_v59, %v3291_v58  ;;  %v711_v63 = vor.u32 %v3310_v24, %v3308_v23  ;;  %v3352_v17 = vld [vmem:[#allocation2 + $0x10] sm:$0xf]  ;;  %2590 = vmatprep.subr.bf16.mxu0 %v3336_v7 }
  0xa6   : > { %v3318_v43 = vrot.slane %v538_v35, 4  ;;  %v3334_v3 = vsel %vm3171_vm10, %v2283_v32, %v612_v33  ;;  %v2285_v5 = vrot.slane %v746_v60, 9  ;;  %v3338_v8 = vrot.slane %v644_v55, 5  ;;  %2614 = vmatprep.subr.bf16.mxu1 %v3336_v7  ;;  %v3360_v27 = vld [vmem:[#allocation2 + $0x18] sm:$0xf] }
  0xa7   : > { %v3320_v52 = vrot.slane %v350_v36, 7  ;;  %v658_v9 = vshll.u32 %v627_v54, 16  ;;  %v2286_v10 = vrot.slane %v747_v4, 9  ;;  %v776_v11 = vrot.slane %v627_v54, 5  ;;  %v3366_v33 = vld [vmem:[#allocation2 + $0x14] sm:$0x1] }
  0xa8   : > { %v544_v12 = vsel %vm3179_vm11, %v3318_v43, %v3312_v28  ;;  %v3350_v16 = vsel %vm3171_vm10, %v2285_v5, %v772_v61  ;;  %v820_v49 = vshrl.u32 %v3352_v17, 16  ;;  %v823_v50 = vshll.u32 %v3352_v17, 16 }
  0xa9   : > { %v355_v1 = vor.u32 %v353_v41, %v3320_v52  ;;  %v356_v2 = vrot.slane %v3320_v52, 4  ;;  %v660_v36 = vrot.slane %v658_v9, 5  ;;  %v3372_v41 = vld [vmem:[#allocation2 + $0x1c] sm:$0x1]  ;;  %v829_v54 = vshll.u32 %v3366_v33, 16 }
  0xaa   : > { %v834_v55 = vshrl.u32 %v3360_v27, 16  ;;  %v837_v60 = vshll.u32 %v3360_v27, 16  ;;  %v843_v4 = vshll.u32 %v3372_v41, 16  ;;  %v825_v9 = vrot.slane %v823_v50, 5 }
  0xab   : > { %v3340_v13 = vld [vmem:[#allocation2 + $0x38] sm:$0xf]  ;;  %v423_v14 = vsel %vm3141_vm4, %v355_v1, %v422_v46  ;;  %v822_v1 = vrot.slane %v820_v49, 4 }
  0xac   : > { %v624_v15 = vld [vmem:[#allocation2 + $0x38] sm:$0xf]  ;;  %v443_v18 = vld [vmem:[#allocation2 + $0x3c] sm:$0x1]  ;;  %v546_v19 = vshrl.u32 %v3340_v13, 16  ;;  %v549_v40 = vshll.u32 %v3340_v13, 16  ;;  %v2304_v22 = vcombine.low %v3301_v6, %v3340_v13  ;;  %v777_v6 = vsel %vm3171_vm10, %v2286_v10, %v776_v11 }
  0xad   : > { %v566_v39 = vld [vmem:[#allocation2 + $0x38] sm:$0xe]  ;;  %424 = vst [vmem:[#allocation2 + $0x40] sm:$0xf] %v423_v14  ;;  %v719_v56 = vshrl.u32 %v624_v15, 16  ;;  %v722_v20 = vshll.u32 %v624_v15, 16  ;;  %v2321_v47 = vcombine.low %v3350_v16, %v777_v6 }
  0xae   : > { %v555_v21 = vshll.u32 %v443_v18, 16  ;;  %v2284_v25 = vrot.slane %v566_v39, 9  ;;  %v616_v26 = vrot.slane %v443_v18, 5  ;;  %v548_v28 = vrot.slane %v546_v19, 4  ;;  %v3386_v14 = vld [vmem:[#allocation2 + $0x1c] sm:$0x1] }
  0xaf   : > { %v551_v29 = vrot.slane %v549_v40, 5  ;;  %v3362_v31 = vrot.slane %v719_v56, 4  ;;  %v3364_v32 = vrot.slane %v722_v20, 5  ;;  %v831_v10 = vrot.slane %v829_v54, 5  ;;  %v3390_v40 = vld [vmem:[#allocation2 + $0x24] sm:$0x1] }
  0xb0   : > { %v557_v34 = vrot.slane %v555_v21, 5  ;;  %v617_v35 = vsel %vm3171_vm10, %v2284_v25, %v616_v26  ;;  %v836_v11 = vrot.slane %v834_v55, 4  ;;  %v839_v13 = vrot.slane %v837_v60, 5  ;;  %v748_v56 = vld [vmem:[#allocation2 + $0x18] sm:$0xe] }
  0xb1   : > { %v552_v43 = vor.u32 %v551_v29, %v548_v28  ;;  %v2312_v46 = vcombine.low %v3334_v3, %v617_v35  ;;  %v647_v3 = vsel %vm3179_vm11, %v3208_v48, %v3338_v8  ;;  %v826_v21 = vor.u32 %v825_v9, %v822_v1  ;;  %v749_v8 = vld [vmem:[#allocation2 + $0x20] sm:$0xe]  ;;  %v3403_v35 = vld [vmem:[#allocation2 + $0x28] sm:$0xf]  ;;  %v3407_v54 = vld [vmem:[#allocation2 + $0x2c] sm:$0x1] }
  0xb2   : > { %v840_v25 = vor.u32 %v839_v13, %v836_v11  ;;  %v845_v48 = vrot.slane %v843_v4, 5  ;;  %v3392_v26 = vld [vmem:[#allocation2 + $0x20] sm:$0xf]  ;;  %v2287_v50 = vrot.slane %v748_v56, 9  ;;  %v780_v55 = vrot.slane %v3386_v14, 5 }
  0xb3   : > { %v553_v61 = vrot.slane %v552_v43, 4  ;;  %v827_v6 = vrot.slane %v826_v21, 4  ;;  %v2288_v60 = vrot.slane %v749_v8, 9  ;;  %v3423_v11 = vld [vmem:[#allocation2 + $0x2c] sm:$0x1]  ;;  %v865_v13 = vshll.u32 %v3403_v35, 16 }
  0xb4   : > { %v625_v5 = vld [vmem:[#allocation2 + $0x40] sm:$0xf]  ;;  %v841_v43 = vrot.slane %v840_v25, 4  ;;  %v750_v56 = vld [vmem:[#allocation2 + $0x28] sm:$0xe]  ;;  %v672_v8 = vshll.u32 %v3386_v14, 16  ;;  %v2326_v44 = vcombine.low %v3392_v26, %v3403_v35 }
  0xb5   : > { %v558_v39 = vsel %vm3179_vm11, %v553_v61, %v557_v34  ;;  %v733_v16 = vshrl.u32 %v625_v5, 16  ;;  %v736_v18 = vshll.u32 %v625_v5, 16  ;;  %v2316_v19 = vcombine.low %v624_v15, %v625_v5 }
  0xb6   : > { %v2308_v20 = vcombine.low %v544_v12, %v558_v39  ;;  %v661_v34 = vsel %vm3179_vm11, %v3218_v0, %v660_v36  ;;  %v2325_v15 = vcombine.low %v3352_v17, %v3360_v27  ;;  %v3405_v12 = vld [vmem:[#allocation2 + $0x24] sm:$0x1]  ;;  %v784_v0 = vrot.slane %v3390_v40, 5 }
  0xb7   : > { %v3394_v28 = vrot.slane %v733_v16, 4  ;;  %v3396_v29 = vrot.slane %v736_v18, 5  ;;  %1852 = vmatprep.mubr.bf16.mxu1 %v2316_v19  ;;  %v2317_v49 = vcombine.low %v647_v3, %v661_v34  ;;  %v848_v17 = vshrl.u32 %v3392_v26, 16  ;;  %v3429_v19 = vld [vmem:[#allocation2 + $0x34] sm:$0x1] }
  0xb8   : > { %1787 = vmatprep.mubr.bf16.mxu0 %v2308_v20  ;;  %1853 = vmatmul.mubr.bf16.gmra.mrb[12].mxu1 %v2312_v46  ;;  %v832_v27 = vsel %vm3179_vm11, %v827_v6, %v831_v10  ;;  %v846_v36 = vsel %vm3179_vm11, %v841_v43, %v845_v48  ;;  %v851_v46 = vshll.u32 %v3392_v26, 16  ;;  %v857_v61 = vshll.u32 %v3405_v12, 16  ;;  %v2773_v20 = vld [vmem:[#allocation6 + $0x208] sm:$0xff]   ;;  %v751_v34 = vld [vmem:[#allocation2 + $0x30] sm:$0xe] }
  0xb9   : > { %1788 = vmatmul.mubr.bf16.gmra.mrb[12].mxu0 %v2304_v22  ;;  %v2329_v1 = vcombine.low %v832_v27, %v846_v36  ;;  %v781_v22 = vsel %vm3171_vm10, %v2287_v50, %v780_v55  ;;  %v785_v4 = vsel %vm3171_vm10, %v2288_v60, %v784_v0  ;;  %v850_v3 = vrot.slane %v848_v17, 4  ;;  %v3439_v60 = vld [vmem:[#allocation2 + $0x30] sm:$0xf] }
  0xba   : > { %1893 = vmatprep.mubr.bf16.mxu0 %v2321_v47  ;;  %v2322_v5 = vcombine.low %v781_v22, %v785_v4  ;;  %v853_v47 = vrot.slane %v851_v46, 5  ;;  %v859_v9 = vrot.slane %v857_v61, 5  ;;  %v862_v10 = vshrl.u32 %v3403_v35, 16 }
  0xbb   : > { %1958 = vmatprep.mubr.bf16.mxu1 %v2329_v1  ;;  %v871_v39 = vshll.u32 %v3407_v54, 16  ;;  %v965_v16 = vrot.slane %v3405_v12, 5  ;;  %v969_v18 = vrot.slane %v3407_v54, 5  ;;  %v670_v48 = vrot.slane %v669_v51, 4  ;;  %v3443_v51 = vld [vmem:[#allocation2 + $0x38] sm:$0xf] }
  0xbc   : > { %v854_v21 = vor.u32 %v853_v47, %v850_v3  ;;  %v864_v25 = vrot.slane %v862_v10, 4  ;;  %v867_v6 = vrot.slane %v865_v13, 5  ;;  %v684_v50 = vrot.slane %v683_v53, 4 }
  0xbd   : > { %v873_v43 = vrot.slane %v871_v39, 5  ;;  %v686_v55 = vshll.u32 %v3390_v40, 16  ;;  %v674_v17 = vrot.slane %v672_v8, 5  ;;  %v2289_v45 = vrot.slane %v750_v56, 9  ;;  %v3447_v40 = vld [vmem:[#allocation2 + $0x34] sm:$0x1] }
  0xbe   : > { %v855_v0 = vrot.slane %v854_v21, 4  ;;  %v868_v14 = vor.u32 %v867_v6, %v864_v25  ;;  %v788_v38 = vrot.slane %v3423_v11, 5  ;;  %v2290_v53 = vrot.slane %v751_v34, 9  ;;  %v3469_v56 = vld [vmem:[#allocation2 + $0x3c] sm:$0x1] }
  0xbf   : > { %v688_v27 = vrot.slane %v686_v55, 5  ;;  %v792_v35 = vrot.slane %v3429_v19, 5  ;;  %v876_v36 = vshrl.u32 %v3439_v60, 16  ;;  %v879_v1 = vshll.u32 %v3439_v60, 16  ;;  %v752_v21 = vld [vmem:[#allocation2 + $0x38] sm:$0xe] }
  0xc0   : > { %1959 = vmatmul.mubr.bf16.vlgmr.msra.gmra.mrb[16].mxu1 %v2325_v15  ;;  %v860_v26 = vsel %vm3179_vm11, %v855_v0, %v859_v9  ;;  %v675_v15 = vsel %vm3179_vm11, %v670_v48, %v674_v17  ;;  %v869_v46 = vrot.slane %v868_v14, 4  ;;  %v885_v47 = vshll.u32 %v3447_v40, 16  ;;  %v425_v9 = vld [vmem:[#allocation2 + $0x44] sm:$0x1]  ;;  %v3473_v6 = vld [vmem:[#allocation2 + $0x40] sm:$0xe] }
  0xc1   : > { %1894 = vmatmul.mubr.bf16.vlgmr.msra.gmra.mrb[16].mxu0 %v2317_v49  ;;  %2622 = vmatpush3.bf16.msra.mxu1 %v3336_v7  ;;  %v3455_v49 = vld [vmem:[#allocation2 + $0x3c] sm:$0x1]  ;;  %v689_v61 = vsel %vm3179_vm11, %v684_v50, %v688_v27  ;;  %v793_v4 = vsel %vm3171_vm10, %v2290_v53, %v792_v35  ;;  %v878_v3 = vrot.slane %v876_v36, 4  ;;  %v881_v13 = vrot.slane %v879_v1, 5  ;;  %v2776_v50 = vld [vmem:[#allocation6 + $0x218] sm:$0xff]  }
  0xc2   : > { %2591 = vmatpush3.bf16.msra.mxu0 %v3336_v7  ;;  %2615 = vmatprep.subr.bf16.mxu1 %v2773_v20  ;;  %v789_v7 = vsel %vm3171_vm10, %v2289_v45, %v788_v38  ;;  %v2318_v22 = vcombine.low %v675_v15, %v689_v61  ;;  %v890_v39 = vshrl.u32 %v3443_v51, 16  ;;  %v887_v48 = vrot.slane %v885_v47, 5  ;;  %v3485_v53 = vld [vmem:[#allocation2 + $0x48] sm:$0xf]  ;;  %v931_v47 = vld [vmem:[#allocation2 + $0x10] sm:$0xe] }
  0xc3   : > { %2592 = vmatprep.subr.bf16.mxu0 %v2773_v20  ;;  %1901 = vmatprep.mubr.bf16.mxu0 %v2322_v5  ;;  %v874_v5 = vsel %vm3179_vm11, %v869_v46, %v873_v43  ;;  %v2323_v10 = vcombine.low %v789_v7, %v793_v4  ;;  %v893_v8 = vshll.u32 %v3443_v51, 16  ;;  %v899_v34 = vshll.u32 %v3455_v49, 16 }
  0xc4   : > { %v2330_v25 = vcombine.low %v860_v26, %v874_v5  ;;  %v882_v43 = vor.u32 %v881_v13, %v878_v3  ;;  %v892_v55 = vrot.slane %v890_v39, 4  ;;  %v698_v0 = vrot.slane %v697_v62, 4  ;;  %v2779_v5 = vld [vmem:[#allocation6 + $0x228] sm:$0xff]  }
  0xc5   : > { %2623 = vmatpush3.bf16.msra.mxu1 %v2773_v20  ;;  %v700_v17 = vshll.u32 %v3423_v11, 16  ;;  %v895_v45 = vrot.slane %v893_v8, 5  ;;  %v901_v14 = vrot.slane %v899_v34, 5  ;;  %v712_v27 = vrot.slane %v711_v63, 4  ;;  %v3493_v11 = vld [vmem:[#allocation2 + $0x4c] sm:$0x1] }
  0xc6   : > { %2593 = vmatpush3.bf16.msra.mxu0 %v2773_v20  ;;  %2616 = vmatprep.subr.bf16.mxu1 %v2775_v37  ;;  %v3479_v20 = vld [vmem:[#allocation2 + $0x40] sm:$0xf]  ;;  %v714_v38 = vshll.u32 %v3429_v19, 16  ;;  %v883_v26 = vrot.slane %v882_v43, 4  ;;  %v2327_v59 = vcombine.low %v3439_v60, %v3443_v51  ;;  %v426_v62 = vsel %vm3146_vm5, %v356_v2, %v425_v9  ;;  %v2778_v63 = vld [vmem:[#allocation6 + $0x220] sm:$0xff]  }
  0xc7   : > { %2594 = vmatprep.subr.bf16.mxu0 %v2775_v37  ;;  %1966 = vmatprep.mubr.bf16.mxu1 %v2330_v25  ;;  %v702_v58 = vrot.slane %v700_v17, 5  ;;  %v896_v23 = vor.u32 %v895_v45, %v892_v55  ;;  %427 = vst [vmem:[#allocation2 + $0x44] sm:$0x1] %v426_v62  ;;  %v2291_v19 = vrot.slane %v752_v21, 9  ;;  %v2292_v52 = vrot.slane %v3473_v6, 9 }
  0xc8   : > { %1967 = vmatmul.mubr.bf16.gmra.mrb[20].mxu1 %v2326_v44  ;;  %v716_v24 = vrot.slane %v714_v38, 5  ;;  %v796_v44 = vrot.slane %v3469_v56, 5  ;;  %v888_v60 = vsel %vm3179_vm11, %v883_v26, %v887_v48  ;;  %v904_v2 = vshrl.u32 %v3479_v20, 16  ;;  %v932_v34 = vld [vmem:[#allocation2 + $0x18] sm:$0xe]  ;;  %v2781_v26 = vld [vmem:[#allocation6 + $0x230] sm:$0xff]  }
  0xc9   : > { %1902 = vmatmul.mubr.bf16.gmra.mrb[20].mxu0 %v2318_v22  ;;  %2624 = vmatpush3.bf16.msra.mxu1 %v2775_v37  ;;  %v703_v57 = vsel %vm3179_vm11, %v698_v0, %v702_v58  ;;  %v897_v51 = vrot.slane %v896_v23, 4  ;;  %v907_v35 = vshll.u32 %v3479_v20, 16  ;;  %v918_v61 = vshrl.u32 %v3485_v53, 16  ;;  %v935_v38 = vld [vmem:[#allocation2 + $0x30] sm:$0xe] }
  0xca   : > { %2595 = vmatpush3.bf16.msra.mxu0 %v2775_v37  ;;  %2617 = vmatprep.subr.bf16.mxu1 %v2776_v50  ;;  %v717_v37 = vsel %vm3179_vm11, %v712_v27, %v716_v24  ;;  %v3506_v15 = vsel %vm3171_vm10, %v2291_v19, %v796_v44  ;;  %v906_v46 = vrot.slane %v904_v2, 4  ;;  %v921_v7 = vshll.u32 %v3485_v53, 16  ;;  %v936_v62 = vld [vmem:[#allocation2 + $0x38] sm:$0xe]  ;;  %v933_v44 = vld [vmem:[#allocation2 + $0x20] sm:$0xe] }
  0xcb   : > { %2596 = vmatprep.subr.bf16.mxu0 %v2776_v50  ;;  %1909 = vmatprep.mubr.bf16.mxu0 %v2323_v10  ;;  %v2319_v36 = vcombine.low %v703_v57, %v717_v37  ;;  %v902_v1 = vsel %vm3179_vm11, %v897_v51, %v901_v14  ;;  %v909_v22 = vrot.slane %v907_v35, 5  ;;  %v927_v4 = vshll.u32 %v3493_v11, 16  ;;  %v934_v2 = vld [vmem:[#allocation2 + $0x28] sm:$0xe]  ;;  %v937_v51 = vld [vmem:[#allocation2 + $0x40] sm:$0xe] }
  0xcc   : > { %v985_v3 = vrot.slane %v3493_v11, 5  ;;  %v2331_v9 = vcombine.low %v888_v60, %v902_v1  ;;  %v920_v10 = vrot.slane %v918_v61, 4  ;;  %v923_v13 = vrot.slane %v921_v7, 5  ;;  %v2782_v7 = vld [vmem:[#allocation6 + $0x238] sm:$0xff]  }
  0xcd   : > { %2625 = vmatpush3.bf16.msra.mxu1 %v2776_v50  ;;  %v725_v39 = vor.u32 %v3364_v32, %v3362_v31  ;;  %v910_v21 = vor.u32 %v909_v22, %v906_v46  ;;  %v929_v25 = vrot.slane %v927_v4, 5  ;;  %v728_v48 = vshll.u32 %v3469_v56, 16  ;;  %v938_v46 = vld [vmem:[#allocation2 + $0x48] sm:$0xe] }
  0xce   : > { %2597 = vmatpush3.bf16.msra.mxu0 %v2776_v50  ;;  %2618 = vmatprep.subr.bf16.mxu1 %v2778_v63  ;;  %v739_v8 = vor.u32 %v3396_v29, %v3394_v28  ;;  %v633_v6 = vld [vmem:[#allocation2 + $0x44] sm:$0x1]  ;;  %v924_v43 = vor.u32 %v923_v13, %v920_v10  ;;  %v2328_v0 = vcombine.low %v3479_v20, %v3485_v53  ;;  %v2293_v17 = vrot.slane %v931_v47, 9 }
  0xcf   : > { %2598 = vmatprep.subr.bf16.mxu0 %v2778_v63  ;;  %1974 = vmatprep.mubr.bf16.mxu1 %v2331_v9  ;;  %v3520_v50 = vld [vmem:[#allocation2 + $0x44] sm:$0x1]  ;;  %v726_v55 = vrot.slane %v725_v39, 4  ;;  %v800_v31 = vrot.slane %v633_v6, 5  ;;  %v911_v32 = vrot.slane %v910_v21, 4  ;;  %v730_v45 = vrot.slane %v728_v48, 5 }
  0xd0   : > { %1975 = vmatmul.mubr.bf16.gmra.mrb[24].mxu1 %v2327_v59  ;;  %v913_v56 = vshll.u32 %v3520_v50, 16  ;;  %v981_v28 = vrot.slane %v3520_v50, 5  ;;  %v925_v29 = vrot.slane %v924_v43, 4  ;;  %v740_v14 = vrot.slane %v739_v8, 4 }
  0xd1   : > { %1910 = vmatmul.mubr.bf16.gmra.mrb[24].mxu0 %v2319_v36  ;;  %2626 = vmatpush3.bf16.msra.mxu1 %v2778_v63  ;;  %v742_v27 = vshll.u32 %v633_v6, 16  ;;  %v801_v20 = vsel %vm3171_vm10, %v2292_v52, %v800_v31  ;;  %v957_v58 = vrot.slane %v3366_v33, 5  ;;  %v2294_v59 = vrot.slane %v932_v34, 9 }
  0xd2   : > { %2599 = vmatpush3.bf16.msra.mxu0 %v2778_v63  ;;  %2619 = vmatprep.subr.bf16.mxu1 %v2779_v5  ;;  %v915_v53 = vrot.slane %v913_v56, 5  ;;  %v2324_v23 = vcombine.low %v3506_v15, %v801_v20  ;;  %v930_v24 = vsel %vm3179_vm11, %v925_v29, %v929_v25  ;;  %v731_v63 = vsel %vm3179_vm11, %v726_v55, %v730_v45 }
  0xd3   : > { %2600 = vmatprep.subr.bf16.mxu0 %v2779_v5  ;;  %v744_v19 = vrot.slane %v742_v27, 5  ;;  %v958_v57 = vsel %vm3171_vm10, %v2293_v17, %v957_v58  ;;  %v961_v33 = vrot.slane %v3372_v41, 5  ;;  %v2297_v52 = vrot.slane %v935_v38, 9 }
  0xd4   : > { %v916_v60 = vsel %vm3179_vm11, %v911_v32, %v915_v53  ;;  %1917 = vmatprep.mubr.bf16.mxu0 %v2324_v23  ;;  %v973_v35 = vrot.slane %v3447_v40, 5  ;;  %v2298_v36 = vrot.slane %v936_v62, 9  ;;  %v977_v1 = vrot.slane %v3455_v49, 5 }
  0xd5   : > { %2627 = vmatpush3.bf16.msra.mxu1 %v2779_v5  ;;  %v2332_v37 = vcombine.low %v916_v60, %v930_v24  ;;  %v745_v15 = vsel %vm3179_vm11, %v740_v14, %v744_v19  ;;  %v962_v41 = vsel %vm3171_vm10, %v2294_v59, %v961_v33  ;;  %v2295_v22 = vrot.slane %v933_v44, 9 }
  0xd6   : > { %2601 = vmatpush3.bf16.msra.mxu0 %v2779_v5  ;;  %v2320_v61 = vcombine.low %v731_v63, %v745_v15  ;;  %2620 = vmatprep.subr.bf16.mxu1 %v2781_v26  ;;  %v2333_v4 = vcombine.low %v958_v57, %v962_v41  ;;  %v974_v42 = vsel %vm3171_vm10, %v2297_v52, %v973_v35  ;;  %v2296_v47 = vrot.slane %v934_v2, 9 }
  0xd7   : > { %2602 = vmatprep.subr.bf16.mxu0 %v2781_v26  ;;  %1982 = vmatprep.mubr.bf16.mxu1 %v2332_v37  ;;  %v2299_v9 = vrot.slane %v937_v51, 9  ;;  %v978_v40 = vsel %vm3171_vm10, %v2298_v36, %v977_v1  ;;  %v966_v5 = vsel %vm3171_vm10, %v2295_v22, %v965_v16  ;;  %v2300_v10 = vrot.slane %v938_v46, 9 }
  0xd8   : > { %1983 = vmatmul.mubr.bf16.gmra.mrb[28].mxu1 %v2328_v0  ;;  %v2335_v49 = vcombine.low %v974_v42, %v978_v40  ;;  %v970_v13 = vsel %vm3171_vm10, %v2296_v47, %v969_v18 }
  0xd9   : > { %1918 = vmatmul.mubr.bf16.gmra.mrb[28].mxu0 %v2320_v61  ;;  %2628 = vmatpush3.bf16.msra.mxu1 %v2781_v26  ;;  %v982_v39 = vsel %vm3171_vm10, %v2299_v9, %v981_v28  ;;  %v986_v12 = vsel %vm3171_vm10, %v2300_v10, %v985_v3  ;;  %v2334_v16 = vcombine.low %v966_v5, %v970_v13 }
  0xda   : > { %2603 = vmatpush3.bf16.msra.mxu0 %v2781_v26  ;;  %2621 = vmatprep.subr.bf16.mxu1 %v2782_v7  ;;  %v2336_v21 = vcombine.low %v982_v39, %v986_v12 }
  0xdb   : > { %2604 = vmatprep.subr.bf16.mxu0 %v2782_v7  ;;  %2606 = vmatprep.mubr.bf16.mxu0 %v2333_v4 }
  0xdc   : > { %2610 = vmatprep.mubr.bf16.mxu1 %v2335_v49 }
  0xdd   : > { %2629 = vmatpush3.bf16.msra.mxu1 %v2782_v7 }
  0xde   : > { %2605 = vmatpush3.bf16.msra.mxu0 %v2782_v7 }
  0xe0   : > { %2611 = vmatmul.mubr.bf16.vlgmr.msra.gmra.mrb[32].mxu1 %v2336_v21 }
  0xe1   : > { %2607 = vmatmul.mubr.bf16.vlgmr.msra.gmra.mrb[32].mxu0 %v2334_v16 }
 0x154   : > { %v2474_v54 = vpop.f32.mrb[0].mxu1 }
 0x155   : > { %v2475_v18 = vpop.f32.mrb[1].mxu1 }
 0x156   : > { %v2476_v25 = vadd.f32 %v2475_v18, %v2474_v54  ;;  %v2477_v48 = vpop.f32.mrb[2].mxu1 }
 0x157   : > { %v2478_v8 = vpop.f32.mrb[3].mxu1 }
 0x158   : > { %v2479_v34 = vadd.f32 %v2478_v8, %v2477_v48 }
 0x15a   : > { %v2434_v6 = vpop.f32.mrb[0].mxu0 }
 0x15b   : > { %v2435_v50 = vpop.f32.mrb[1].mxu0 }
 0x15c   : > { %v2436_v11 = vadd.f32 %v2435_v50, %v2434_v6  ;;  %v2437_v43 = vpop.f32.mrb[2].mxu0 }
 0x15d   : > { %v2438_v30 = vpop.f32.mrb[3].mxu0 }
 0x15e   : > { %v1831_v3 = vadd.f32 %v2476_v25, %v2436_v11  ;;  %v2439_v55 = vadd.f32 %v2438_v30, %v2437_v43 }
 0x160   : > { %v1834_v0 = vadd.f32 %v2479_v34, %v2439_v55 }
 0x166   : > { %v2480_v17 = vpop.f32.mrb[4].mxu1 }
 0x167   : > { %v2481_v31 = vpop.f32.mrb[5].mxu1 }
 0x168   : > { %v2482_v32 = vadd.f32 %v2481_v31, %v2480_v17  ;;  %v2483_v56 = vpop.f32.mrb[6].mxu1 }
 0x169   : > { %v2484_v29 = vpop.f32.mrb[7].mxu1 }
 0x16a   : > { %v2440_v28 = vpop.f32.mrb[4].mxu0  ;;  %v2485_v14 = vadd.f32 %v2484_v29, %v2483_v56 }
 0x16b   : > { %v2441_v45 = vpop.f32.mrb[5].mxu0 }
 0x16c   : > { %v2442_v27 = vadd.f32 %v2441_v45, %v2440_v28  ;;  %v2443_v38 = vpop.f32.mrb[6].mxu0 }
 0x16d   : > { %v2444_v20 = vpop.f32.mrb[7].mxu0 }
 0x16e   : > { %v1839_v53 = vadd.f32 %v2482_v32, %v2442_v27  ;;  %v2445_v26 = vadd.f32 %v2444_v20, %v2443_v38 }
 0x170   : > { %v1842_v58 = vadd.f32 %v2485_v14, %v2445_v26 }
 0x175   : > { %v2486_v59 = vpop.f32.mrb[8].mxu1 }
 0x176   : > { %v2487_v62 = vpop.f32.mrb[9].mxu1 }
 0x177   : > { %v2488_v24 = vadd.f32 %v2487_v62, %v2486_v59  ;;  %v2489_v63 = vpop.f32.mrb[10].mxu1 }
 0x178   : > { %v2446_v23 = vpop.f32.mrb[8].mxu0  ;;  %v2490_v44 = vpop.f32.mrb[11].mxu1 }
 0x179   : > { %v2447_v19 = vpop.f32.mrb[9].mxu0  ;;  %v2491_v33 = vadd.f32 %v2490_v44, %v2489_v63 }
 0x17a   : > { %v2448_v60 = vadd.f32 %v2447_v19, %v2446_v23  ;;  %v2449_v57 = vpop.f32.mrb[10].mxu0 }
 0x17b   : > { %v2450_v52 = vpop.f32.mrb[11].mxu0 }
 0x17c   : > { %v1847_v2 = vadd.f32 %v2488_v24, %v2448_v60  ;;  %v2451_v51 = vadd.f32 %v2450_v52, %v2449_v57 }
 0x17e   : > { %v1850_v37 = vadd.f32 %v2491_v33, %v2451_v51 }
 0x18b   : > { %v2492_v15 = vpop.f32.mrb[12].mxu1 }
 0x18c   : > { %v2452_v35 = vpop.f32.mrb[12].mxu0  ;;  %v2493_v36 = vpop.f32.mrb[13].mxu1 }
 0x18d   : > { %v2453_v46 = vpop.f32.mrb[13].mxu0  ;;  %v2494_v61 = vadd.f32 %v2493_v36, %v2492_v15  ;;  %v2495_v7 = vpop.f32.mrb[14].mxu1 }
 0x18e   : > { %v2454_v41 = vadd.f32 %v2453_v46, %v2452_v35  ;;  %v2455_v1 = vpop.f32.mrb[14].mxu0  ;;  %v2496_v22 = vpop.f32.mrb[15].mxu1 }
 0x18f   : > { %v2456_v4 = vpop.f32.mrb[15].mxu0  ;;  %v2497_v42 = vadd.f32 %v2496_v22, %v2495_v7 }
 0x190   : > { %v1855_v47 = vadd.f32 %v2494_v61, %v2454_v41  ;;  %v2457_v9 = vadd.f32 %v2456_v4, %v2455_v1 }
 0x192   : > { %v3563_v40 = vadd.f32 %v2497_v42, %v2457_v9 }
 0x193   : > { %v2554_v5 = vpop.f32.mrb[16].mxu1 }
 0x194   : > { %v2514_v10 = vpop.f32.mrb[16].mxu0  ;;  %v2555_v49 = vpop.f32.mrb[17].mxu1 }
 0x195   : > { %v2515_v13 = vpop.f32.mrb[17].mxu0  ;;  %v2556_v39 = vadd.f32 %v2555_v49, %v2554_v5  ;;  %v2557_v12 = vpop.f32.mrb[18].mxu1 }
 0x196   : > { %v2516_v16 = vadd.f32 %v2515_v13, %v2514_v10  ;;  %v2517_v21 = vpop.f32.mrb[18].mxu0  ;;  %v2558_v54 = vpop.f32.mrb[19].mxu1 }
 0x197   : > { %v2518_v18 = vpop.f32.mrb[19].mxu0  ;;  %v2559_v25 = vadd.f32 %v2558_v54, %v2557_v12 }
 0x198   : > { %v1896_v48 = vadd.f32 %v2516_v16, %v1831_v3  ;;  %v2519_v8 = vadd.f32 %v2518_v18, %v2517_v21 }
 0x19a   : > { %v1899_v34 = vadd.f32 %v2519_v8, %v1834_v0  ;;  %v1961_v6 = vadd.f32 %v2556_v39, %v1896_v48 }
 0x19b   : > { %v2560_v11 = vpop.f32.mrb[20].mxu1 }
 0x19c   : > { %v2520_v50 = vpop.f32.mrb[20].mxu0  ;;  %v3565_v43 = vadd.f32 %v2559_v25, %v1899_v34  ;;  %v2561_v55 = vpop.f32.mrb[21].mxu1 }
 0x19d   : > { %v2521_v30 = vpop.f32.mrb[21].mxu0  ;;  %v2562_v32 = vadd.f32 %v2561_v55, %v2560_v11  ;;  %v2563_v56 = vpop.f32.mrb[22].mxu1 }
 0x19e   : > { %v2522_v17 = vadd.f32 %v2521_v30, %v2520_v50  ;;  %v2523_v31 = vpop.f32.mrb[22].mxu0  ;;  %v2564_v29 = vpop.f32.mrb[23].mxu1 }
 0x19f   : > { %v2524_v28 = vpop.f32.mrb[23].mxu0  ;;  %v2565_v27 = vadd.f32 %v2564_v29, %v2563_v56 }
 0x1a0   : > { %v1904_v45 = vadd.f32 %v2522_v17, %v1839_v53  ;;  %v2525_v14 = vadd.f32 %v2524_v28, %v2523_v31 }
 0x1a2   : > { %v1907_v38 = vadd.f32 %v2525_v14, %v1842_v58  ;;  %v1969_v3 = vadd.f32 %v2562_v32, %v1904_v45 }
 0x1a3   : > { %v2566_v59 = vpop.f32.mrb[24].mxu1 }
 0x1a4   : > { %v2526_v20 = vpop.f32.mrb[24].mxu0  ;;  %v1972_v0 = vadd.f32 %v2565_v27, %v1907_v38  ;;  %v2567_v24 = vpop.f32.mrb[25].mxu1 }
 0x1a5   : > { %v2527_v26 = vpop.f32.mrb[25].mxu0  ;;  %v2568_v19 = vadd.f32 %v2567_v24, %v2566_v59  ;;  %v2569_v44 = vpop.f32.mrb[26].mxu1 }
 0x1a6   : > { %v2528_v62 = vadd.f32 %v2527_v26, %v2526_v20  ;;  %v2529_v23 = vpop.f32.mrb[26].mxu0  ;;  %v2570_v33 = vpop.f32.mrb[27].mxu1 }
 0x1a7   : > { %v2530_v63 = vpop.f32.mrb[27].mxu0  ;;  %v2571_v52 = vadd.f32 %v2570_v33, %v2569_v44 }
 0x1a8   : > { %v1912_v60 = vadd.f32 %v2528_v62, %v1847_v2  ;;  %v2531_v57 = vadd.f32 %v2530_v63, %v2529_v23 }
 0x1aa   : > { %v1915_v53 = vadd.f32 %v2531_v57, %v1850_v37  ;;  %v1977_v51 = vadd.f32 %v2568_v19, %v1912_v60 }
 0x1ab   : > { %v2572_v35 = vpop.f32.mrb[28].mxu1 }
 0x1ac   : > { %v1980_v15 = vadd.f32 %v2571_v52, %v1915_v53  ;;  %v2532_v58 = vpop.f32.mrb[28].mxu0  ;;  %v2573_v46 = vpop.f32.mrb[29].mxu1 }
 0x1ad   : > { %v2533_v36 = vpop.f32.mrb[29].mxu0  ;;  %v2574_v41 = vadd.f32 %v2573_v46, %v2572_v35  ;;  %v2575_v1 = vpop.f32.mrb[30].mxu1 }
 0x1ae   : > { %v2534_v61 = vadd.f32 %v2533_v36, %v2532_v58  ;;  %v2535_v7 = vpop.f32.mrb[30].mxu0  ;;  %v2576_v4 = vpop.f32.mrb[31].mxu1 }
 0x1af   : > { %v2536_v22 = vpop.f32.mrb[31].mxu0  ;;  %v2577_v9 = vadd.f32 %v2576_v4, %v2575_v1 }
 0x1b0   : > { %v1920_v2 = vadd.f32 %v2534_v61, %v1855_v47  ;;  %v2537_v42 = vadd.f32 %v2536_v22, %v2535_v7 }
 0x1b2   : > { %v1923_v5 = vadd.f32 %v2537_v42, %v3563_v40  ;;  %v1985_v37 = vadd.f32 %v2574_v41, %v1920_v2 }
 0x1b3   : > { %v2612_v49 = vpop.f32.mrb[32].mxu1 }
 0x1b4   : > { %v2608_v10 = vpop.f32.mrb[32].mxu0  ;;  %v1988_v13 = vadd.f32 %v2577_v9, %v1923_v5  ;;  %v3573_v12 = vadd.f32 %v2612_v49, %v1985_v37  ;;  %v2041_v16 = vpop.f32.mrb[33].mxu1 }
 0x1b5   : > { %v2034_v39 = vadd.f32 %v2608_v10, %v1969_v3  ;;  %v2025_v47 = vpop.f32.mrb[33].mxu0  ;;  %v2042_v21 = vadd.f32 %v2041_v16, %v1977_v51  ;;  %v2613_v18 = vpop.f32.mrb[34].mxu1 }
 0x1b6   : > { %v2026_v40 = vadd.f32 %v2025_v47, %v1961_v6  ;;  %v2609_v54 = vpop.f32.mrb[34].mxu0  ;;  %2062 = vst [vmem:[%s3569_s20 + $0x30] sm:$0xff] %v3573_v12  ;;  %v2053_v48 = vadd.f32 %v2613_v18, %v1988_v13  ;;  %v2044_v34 = vpop.f32.mrb[35].mxu1 }
 0x1b7   : > { %2058 = vst [vmem:[%s3569_s20 + $0x10] sm:$0xff] %v2034_v39  ;;  %v2037_v25 = vadd.f32 %v2609_v54, %v1972_v0  ;;  %v2028_v8 = vpop.f32.mrb[35].mxu0  ;;  %2060 = vst [vmem:[%s3569_s20 + $0x20] sm:$0xff] %v2042_v21  ;;  %v2045_v50 = vadd.f32 %v2044_v34, %v1980_v15 }
 0x1b8   : > { %2056 = vst [vmem:[%s3569_s20] sm:$0xff] %v2026_v40  ;;  %v2029_v6 = vadd.f32 %v2028_v8, %v3565_v43  ;;  %2063 = vst [vmem:[%s3569_s20 + $0x38] sm:$0xff] %v2053_v48  ;;  %v2078_v11 = vmul.f32 %v2026_v40, %v2026_v40 }
 0x1b9   : > { %2059 = vst [vmem:[%s3569_s20 + $0x18] sm:$0xff] %v2037_v25  ;;  %2061 = vst [vmem:[%s3569_s20 + $0x28] sm:$0xff] %v2045_v50 }
 0x1ba   : > { %2057 = vst [vmem:[%s3569_s20 + $0x8] sm:$0xff] %v2029_v6  ;;  %v2064_v30 = vadd.f32 %v2029_v6, %v2026_v40  ;;  %v2079_v55 = vmul.f32 %v2029_v6, %v2029_v6 }
 0x1bb   : > { %2854 = shalt.err (!%p2851_p7)
}
 0x1bc   : > { %s2855_s30 = scalar_lea.hbm %s3583_s10, 1024  ;;  %s2859_s8 = scalar_lea.hbm %s3670_s2, 2048 }
 0x1bd   : > { %p2856_p9 = scmp.ne.s32.totalorder %s3583_s10, %s2855_s30  ;;  %p2860_p5 = scmp.lt.u32.totalorder %s3583_s10, %s3670_s2 }
 0x1be   : > { %p2861_p11 = scmp.lt.u32.totalorder %s2859_s8, %s2855_s30  ;;  %p2863_p4 = scmp.lt.u32.totalorder %s2855_s30, %s3583_s10 }
 0x1bf   : > { %p2857_p2 = pnand %p2856_p9, %p3067_p12 }
 0x1c0   : > { %p2862_p1 = por %p2861_p11, %p2860_p5 }
 0x1c1   : > { %p2858_p0 = pneg %p2857_p2 }
 0x1c2   : > { %p2864_p6 = por %p2863_p4, %p2862_p1 }
 0x1c4   : > { %p2865_p8 = pnand %p2864_p6, %p2858_p0 }
 0x1c6   : > { %2868 = shalt.err (!%p2865_p8)
}
 0x1c7   : > { %s2953_s20 = smov 128   ;;  %s2954_s25 = smov 8   ;;  %v2080_v43 = vmul.f32 %v2034_v39, %v2034_v39  ;;  %v2065_v17 = vadd.f32 %v2064_v30, %v2034_v39  ;;  %v2086_v31 = vadd.f32 %v2079_v55, %v2078_v11  ;;  %v2081_v32 = vmul.f32 %v2037_v25, %v2037_v25 }
 0x1c8   : > { %2636 = dma.vmem_to_hbm [thread:$0]  (%p3067_p12), %s3575_s4, 1024, %s3583_s10, %s2103_s11, %s2953_s20, %s2953_s20, %s2954_s25   ;;  %v2082_v29 = vmul.f32 %v2042_v21, %v2042_v21  ;;  %v2083_v38 = vmul.f32 %v2045_v50, %v2045_v50  ;;  %v2084_v20 = vmul.f32 %v3573_v12, %v3573_v12  ;;  %v2085_v59 = vmul.f32 %v2053_v48, %v2053_v48 }
 0x1c9   : > { %v2087_v56 = vadd.f32 %v2086_v31, %v2080_v43  ;;  %v2066_v28 = vadd.f32 %v2065_v17, %v2037_v25  ;;  %s2260_s4 = sshll.u32 %s3115_s6, 1  ;;  %s2413_s26 = sshll.u32 %s2997_s16, 5 }
 0x1ca   : > { %s214_s5 = scalar_lea.vmem [#allocation9], %s2260_s4  ;;  %s3624_s28 = scalar_lea.hbm %s3671_s3, %s2413_s26 }
 0x1cb   : > { %v2067_v45 = vadd.f32 %v2066_v28, %v2042_v21  ;;  %v2088_v14 = vadd.f32 %v2087_v56, %v2081_v32  ;;  %s2137_s10 = sshll.u32 %s214_s5, 4  ;;  %s2108_s29 = scalar_lea.sflag [#allocation10], %s3115_s6  ;;  %s3626_s10 = int_to_ptr.vmem [resolvable:$true] %s2137_s10 }
 0x1cc   : > { %s2869_s23 = scalar_lea.vmem %s3626_s10, 32  ;;  %s2955_s16 = smov [#allocation9]  }
 0x1cd   : > { %v2068_v27 = vadd.f32 %v2067_v45, %v2045_v50  ;;  %v2089_v3 = vadd.f32 %v2088_v14, %v2082_v29  ;;  %p2870_p10 = scmp.ne.s32.totalorder %s3626_s10, %s2869_s23  ;;  %s2873_s30 = sshll.u32 %s2955_s16, 4  ;;  %s2874_s30 = int_to_ptr.vmem [resolvable:$false] %s2873_s30 }
 0x1ce   : > { %s2875_s22 = scalar_lea.vmem %s2874_s30, 64  ;;  %p2876_p7 = scmp.lt.s32.totalorder %s3626_s10, %s2874_s30 }
 0x1cf   : > { %v2069_v0 = vadd.f32 %v2068_v27, %v3573_v12  ;;  %v2090_v26 = vadd.f32 %v2089_v3, %v2083_v38  ;;  %p2871_p13 = pnand %p2870_p10, %p3067_p12  ;;  %p2877_p9 = scmp.lt.s32.totalorder %s2875_s22, %s2869_s23 }
 0x1d1   : > { %v2070_v62 = vadd.f32 %v2069_v0, %v2053_v48  ;;  %v2091_v23 = vadd.f32 %v2090_v26, %v2084_v20  ;;  %p2872_p3 = pneg %p2871_p13  ;;  %p2878_p2 = por %p2877_p9, %p2876_p7 }
 0x1d3   : > { %v2071_v24 = vrot.slane %v2070_v62, 4  ;;  %v2092_v63 = vadd.f32 %v2091_v23, %v2085_v59  ;;  %p2879_p0 = pnand %p2878_p2, %p2872_p3 }
 0x1d5   : > { %v2072_v19 = vadd.f32 %v2071_v24, %v2070_v62  ;;  %v2093_v44 = vrot.slane %v2092_v63, 4 }
 0x1d7   : > { %v2073_v60 = vrot.slane %v2072_v19, 2  ;;  %v2094_v57 = vadd.f32 %v2093_v44, %v2092_v63 }
 0x1d9   : > { %v2074_v33 = vadd.f32 %v2073_v60, %v2072_v19  ;;  %v2095_v52 = vrot.slane %v2094_v57, 2 }
 0x1db   : > { %v2075_v53 = vrot.slane %v2074_v33, 1  ;;  %v2096_v51 = vadd.f32 %v2095_v52, %v2094_v57 }
 0x1dd   : > { %v2076_v15 = vadd.f32 %v2075_v53, %v2074_v33  ;;  %v2097_v58 = vrot.slane %v2096_v51, 1 }
 0x1df   : > { %v2098_v35 = vadd.f32 %v2097_v58, %v2096_v51  ;;  %2100 = vst [vmem:[%s214_s5] sm:$0x1] %v2076_v15 }
 0x1e1   : > { %2101 = vst [vmem:[%s214_s5 + $0x1] sm:$0x1] %v2098_v35 }
 0x1e2   : > { %2882 = shalt.err (!%p2879_p0)
}
 0x1e3   : > { %s2883_s6 = scalar_lea.hbm %s3624_s28, 32  ;;  %s2887_s9 = scalar_lea.hbm %s3671_s3, 64 }
 0x1e4   : > { %p2884_p5 = scmp.ne.s32.totalorder %s3624_s28, %s2883_s6  ;;  %p2888_p4 = scmp.lt.u32.totalorder %s3624_s28, %s3671_s3 }
 0x1e5   : > { %p2889_p6 = scmp.lt.u32.totalorder %s2887_s9, %s2883_s6  ;;  %p2891_p10 = scmp.lt.u32.totalorder %s2883_s6, %s3624_s28 }
 0x1e6   : > { %p2885_p11 = pnand %p2884_p5, %p3067_p12 }
 0x1e7   : > { %p2890_p8 = por %p2889_p6, %p2888_p4 }
 0x1e8   : > { %p2886_p1 = pneg %p2885_p11 }
 0x1e9   : > { %p2892_p13 = por %p2891_p10, %p2890_p8 }
 0x1eb   : > { %p2893_p3 = pnand %p2892_p13, %p2886_p1 }
 0x1ed   : > { %2896 = shalt.err (!%p2893_p3)
}
 0x1ee   : > { %2637 = dma.vmem_to_hbm [thread:$0]  (%p3067_p12), %s3626_s10, 32, %s3624_s28, %s2108_s29  }
 0x1ef PF: > { %s2149_s25 = sand.u32 1, %s2931_s12   ;;  %p3694_p7 = scmp.ne.s32.totalorder %s3676_s19, 0 }
 0x1f0   : > { %p3695_p9 = scmp.ge.s32.totalorder %s2943_s15, 2  ;;  %s2150_s4 = scalar_lea.sflag [#allocation5], %s2149_s25 }
 0x1f2   : > { %p2649_p2 = pnand %p3695_p9, %p3694_p7 }
 0x1f4   : > { %2922 = dma.done.wait (!%p2649_p2), %s2150_s4, 1024  }
 0x1f5   : > { %2924 = vsyncadd (!%p2649_p2), %s2150_s4, 4294966272  ;;  %s2159_s26 = scalar_lea.sflag [#allocation10], %s2149_s25 }
 0x1f6   : > { %2926 = dma.done.wait (!%p2649_p2), %s2159_s26, 32  }
 0x1f7   : > { %2928 = vsyncadd (!%p2649_p2), %s2159_s26, 4294967264  ;;  %p21_p12 = scmp.ge.s32.totalorder %s3032_s24, 4   ;;  %s3696_s12 = smov %s2935_s13 }
 0x1f8   : > { %s3697_s13 = smov %s2939_s14  ;;  %s3698_s14 = smov %s3063_s17 }
 0x1f9   : > { %s3699_s15 = smov %s3032_s24  ;;  %23 = sbr.rel (!%p21_p12) target bundleno = 8 (0x8), region = 97 }
 0x200   :  { %2164 = vsyncpa [#allocation4], 1 }
 0x201   :  { %2166 = vsyncpa [#allocation4 + $0x1], 1 }
 0x202   :  { %2167 = vsyncpa [#allocation7], 1 }
 0x203   :  { %2168 = vsyncpa [#allocation5], 1 }
 0x204   :  { %2170 = vsyncpa [#allocation5 + $0x1], 1 }
 0x205   :  { %2171 = vsyncpa [#allocation10], 1 }
 0x206   :  { %2173 = vsyncpa [#allocation10 + $0x1], 1 }

// kernel: down_forward.6
= control target key start
LH: loop header
LB: loop body
LE: loop exit
PB: predicated region body
PF: predicated region fallthrough
CT: control target
= control target key end

     0   :  { %9 = vsyncpa [#allocation4], 0  ;;  %s3580_s0 = inlined_call_operand.hbm [shape: bf16[2,8,8,128], index: 0, kind: input, shape index: {}]   ;;  %s3581_s1 = inlined_call_operand.hbm [shape: bf16[1152,128], index: 1, kind: input, shape index: {}]   ;;  %s3582_s2 = inlined_call_operand.hbm [shape: f32[2,64,128], index: 2, kind: output, shape index: {0}]   ;;  %s3583_s3 = inlined_call_operand.hbm [shape: f32[2,2,128], index: 3, kind: output, shape index: {1}]  }
   0x1   :  { %11 = vsyncpa [#allocation4 + $0x1], 0 }
   0x2   :  { %12 = vsyncpa [#allocation7], 0 }
   0x3   :  { %13 = vsyncpa [#allocation5], 0 }
   0x4   :  { %15 = vsyncpa [#allocation5 + $0x1], 0 }
   0x5   :  { %16 = vsyncpa [#allocation10], 0 }
   0x6   :  { %18 = vsyncpa [#allocation10 + $0x1], 0  ;;  %s2907_s12 = smov 0   ;;  %s2909_s13 = smov 0  }
   0x7   :  { %s2911_s14 = smov 0   ;;  %s2913_s15 = smov 0  }
   0x8 LB: > { %s2928_s16 = sadd.s32 4294967295, %s2876_s15   ;;  %s2200_s17 = sadd.s32 4294967294, %s2876_s15   ;;  %s2876_s15 = sphi %s2913_s15, %s3611_s15   ;;  %s2872_s14 = sphi %s2911_s14, %s3610_s14   ;;  %s2868_s13 = sphi %s2909_s13, %s3609_s13   ;;  %s2864_s12 = sphi %s2907_s12, %s3608_s12  }
   0x9   : > { %p44_p0 = scmp.ne.s32.totalorder %s2868_s13, %s2864_s12  ;;  %p3584_p1 = scmp.eq.s32.totalorder %s2928_s16, 0 }
   0xa   : > { %p95_p3 = scmp.eq.s32.totalorder %s2200_s17, 1  ;;  %p2201_p5 = scmp.ge.s32.totalorder %s2876_s15, 1 }
   0xb   : > { %p2937_p4 = por %p3584_p1, %p44_p0  ;;  %p128_p7 = scmp.lt.s32.totalorder %s2876_s15, 3 }
   0xc   : > { %p2942_p6 = por %p95_p3, %p44_p0  ;;  %s2878_s21 = smov [#allocation6]  }
   0xd   : > { %s3587_s18 = scalar_select %p2937_p4, 1, 0 }
   0xe   : > { %s3588_s19 = scalar_select %p2942_p6, 1, 0 }
   0xf   : > { %p2947_p8 = pnand %p2201_p5, %p128_p7  ;;  %s140_s22 = sshll.u32 %s2878_s21, 4  ;;  %s2951_s22 = int_to_ptr.vmem [resolvable:$true] %s140_s22 }
  0x10   : > { %s2963_s24 = sadd.s32 1, %s2876_s15   ;;  %s31_s25 = sadd.s32 1, %s2872_s14 }
  0x11   : > { %s3589_s20 = scalar_select %p2947_p8, 1, 0 }
  0x12   : > { %p2575_p9 = pneg %p2947_p8  ;;  %s28_s26 = ssub.s32 %s2876_s15, %s2963_s24 }
  0x13   : > { %s2716_s29 = scalar_lea.hbm %s3581_s1, 9216 }
  0x14   : > { %p2958_p11 = pnand %p2575_p9, %p3584_p1  ;;  %p2717_p12 = scmp.ne.s32.totalorder %s3581_s1, %s2716_s29 }
  0x15   : > { %p2723_p5 = scmp.lt.u32.totalorder %s2716_s29, %s3581_s1 }
  0x16   : > { %p2718_p13 = pneg %p2958_p11 }
  0x18   : > { %p2719_p0 = pnand %p2718_p13, %p2717_p12 }
  0x1a   : > { %p2720_p3 = pneg %p2719_p0 }
  0x1c   : > { %p2725_p7 = pnand %p2723_p5, %p2720_p3 }
  0x1e   : > { %2728 = shalt.err (!%p2725_p7)
}
  0x1f   : > { %s2729_s7 = scalar_lea.vmem %s2951_s22, 9216  ;;  %p2737_p2 = scmp.lt.s32.totalorder %s2951_s22, %s2951_s22 }
  0x20   : > { %p2730_p9 = scmp.ne.s32.totalorder %s2951_s22, %s2729_s7  ;;  %p2738_p6 = scmp.lt.s32.totalorder %s2729_s7, %s2729_s7 }
  0x22   : > { %p2732_p10 = pnand %p2730_p9, %p2718_p13  ;;  %p2739_p4 = por %p2738_p6, %p2737_p2 }
  0x24   : > { %p2733_p1 = pneg %p2732_p10 }
  0x26   : > { %p2740_p8 = pnand %p2739_p4, %p2733_p1 }
  0x28   : > { %2743 = shalt.err (!%p2740_p8)
}
  0x29   : > { %s2879_s8 = smov 64   ;;  %s2880_s9 = smov 4  }
  0x2a   : > { %2578 = dma.hbm_to_vmem [thread:$0]  (!%p2958_p11), %s3581_s1, 9216, %s2951_s22, [#allocation7], %s2879_s8, %s2879_s8, %s2880_s9  }
  0x2b   : > { %p29_p1 = scmp.eq.s32.totalorder %s28_s26, 0  ;;  %p38_p2 = scmp.ne.s32.totalorder %s2872_s14, %s2868_s13 }
  0x2c   : > { %p39_p4 = scmp.eq.s32.totalorder %s2876_s15, 0  ;;  %p2591_p6 = scmp.lt.s32.totalorder %s2876_s15, 2 }
  0x2d   : > { %s2997_s17 = scalar_select %p29_p1, %s2872_s14, %s31_s25  }
  0x2e   : > { %p40_p8 = por %p39_p4, %p38_p2  ;;  %p3591_p10 = scmp.eq.s32.totalorder %s2928_s16, 1 }
  0x2f   : > { %s154_s23 = sand.u32 1, %s2872_s14   ;;  %s2351_s27 = sshll.u32 %s2876_s15, 9 }
  0x30   : > { %p3001_p12 = por %p3591_p10, %p38_p2  ;;  %s2204_s28 = sshll.u32 %s154_s23, 5 }
  0x31   : > { %s3010_s4 = scalar_lea.hbm %s3580_s0, %s2351_s27  ;;  %s158_s22 = scalar_lea.vmem [#allocation3], %s2204_s28 }
  0x32   : > { %s165_s25 = sshll.u32 %s158_s22, 4  ;;  %p3012_p11 = pnand %p2591_p6, %p40_p8  ;;  %s3016_s25 = int_to_ptr.vmem [resolvable:$true] %s165_s25 }
  0x33   : > { %s3018_s5 = scalar_lea.sflag [#allocation4], %s154_s23  ;;  %s2744_s6 = scalar_lea.hbm %s3010_s4, 512 }
  0x34   : > { %p2745_p13 = scmp.ne.s32.totalorder %s3010_s4, %s2744_s6  ;;  %p2746_p0 = pneg %p3012_p11 }
  0x35   : > { %s2749_s11 = scalar_lea.hbm %s3580_s0, 1024  ;;  %p2750_p7 = scmp.lt.u32.totalorder %s3010_s4, %s3580_s0 }
  0x36   : > { %p2747_p3 = pnand %p2746_p0, %p2745_p13  ;;  %p2751_p9 = scmp.lt.u32.totalorder %s2749_s11, %s2744_s6 }
  0x37   : > { %p2753_p2 = scmp.lt.u32.totalorder %s2744_s6, %s3010_s4 }
  0x38   : > { %p2748_p5 = pneg %p2747_p3  ;;  %p2752_p1 = por %p2751_p9, %p2750_p7 }
  0x3a   : > { %p2754_p4 = por %p2753_p2, %p2752_p1 }
  0x3c   : > { %p2755_p6 = pnand %p2754_p4, %p2748_p5 }
  0x3e   : > { %2758 = shalt.err (!%p2755_p6)
}
  0x3f   : > { %s2759_s23 = scalar_lea.vmem %s3016_s25, 512  ;;  %s2881_s29 = smov [#allocation3]  }
  0x40   : > { %p2760_p8 = scmp.ne.s32.totalorder %s3016_s25, %s2759_s23  ;;  %s2764_s30 = sshll.u32 %s2881_s29, 4  ;;  %s2765_s30 = int_to_ptr.vmem [resolvable:$false] %s2764_s30 }
  0x41   : > { %s2766_s22 = scalar_lea.vmem %s2765_s30, 1024  ;;  %p2767_p3 = scmp.lt.s32.totalorder %s3016_s25, %s2765_s30 }
  0x42   : > { %p2762_p10 = pnand %p2760_p8, %p2746_p0  ;;  %p2768_p7 = scmp.lt.s32.totalorder %s2766_s22, %s2759_s23 }
  0x44   : > { %p2763_p13 = pneg %p2762_p10  ;;  %p2769_p9 = por %p2768_p7, %p2767_p3 }
  0x46   : > { %p2770_p1 = pnand %p2769_p9, %p2763_p13 }
  0x48   : > { %2773 = shalt.err (!%p2770_p1)
}
  0x49   : > { %2582 = dma.hbm_to_vmem [thread:$0]  (!%p3012_p11), %s3010_s4, 512, %s3016_s25, %s3018_s5, %s2879_s8, %s2879_s8, %s2880_s9  }
  0x4a   : > { %p3594_p0 = scmp.ne.s32.totalorder %s3589_s20, 0 }
  0x4b   : > { %s3052_s6 = sand.u32 (!%p3594_p0), 1, %s2868_s13   ;;  %p3595_p5 = scmp.ne.s32.totalorder (!%p3594_p0), %s3587_s18, 0 }
  0x4c   : > { %177 = sbr.rel (%p3594_p0) target bundleno = 486 (0x1e6), region = 28  ;;  %s2208_s7 = sshll.u32 (!%p3594_p0), %s3052_s6, 5 }
  0x4d   : > { %s180_s10 = scalar_lea.sflag (!%p3594_p0), [#allocation4], %s3052_s6  ;;  %s3056_s11 = scalar_lea.vmem (!%p3594_p0), [#allocation3], %s2208_s7 }
  0x53   : > { %2847 = dma.done.wait (%p3595_p5), %s180_s10, 512  }
  0x54   : > { %2849 = vsyncadd (%p3595_p5), %s180_s10, 4294966784  ;;  %p3596_p11 = scmp.eq.s32.totalorder %s2928_s16, 0 }
  0x56   : > { %2851 = dma.done.wait (%p3596_p11), [#allocation7], 9216   ;;  %p3597_p2 = pmov %p3596_p11 }
  0x57   : > { %v2882_v0 = vmov 0   ;;  %v2632_v1 = vld [vmem:[#allocation6 + $0x40] sm:$0xff]   ;;  %v2636_v5 = vld [vmem:[#allocation6 + $0x48] sm:$0xff]   ;;  %v2640_v9 = vld [vmem:[#allocation6 + $0x50] sm:$0xff]   ;;  %vm326_vm0 = vsmask.f32 7938 }
  0x58   : > { %2853 = vsyncadd (%p3597_p2), [#allocation7], 4294958080  ;;  %216 = vst [vmem:[#allocation2] sm:$0xf] %v2882_v0  ;;  %v2633_v2 = vld [vmem:[#allocation6 + $0xc0] sm:$0xff]   ;;  %2353 = vmatprep.subr.bf16.mxu0 %v2632_v1  ;;  %v2637_v6 = vld [vmem:[#allocation6 + $0xc8] sm:$0xff]  }
  0x59   : > { %217 = vst [vmem:[#allocation2 + $0x4] sm:$0x1] %v2882_v0  ;;  %218 = vst [vmem:[#allocation2 + $0x8] sm:$0xf] %v2882_v0  ;;  %v2634_v3 = vld [vmem:[#allocation6] sm:$0xff]   ;;  %2393 = vmatprep.subr.bf16.mxu1 %v2633_v2  ;;  %v2638_v7 = vld [vmem:[#allocation6 + $0x8] sm:$0xff]  }
  0x5a   : > { %219 = vst [vmem:[#allocation2 + $0xc] sm:$0x1] %v2882_v0  ;;  %220 = vst [vmem:[#allocation2 + $0x10] sm:$0xf] %v2882_v0  ;;  %v2635_v4 = vld [vmem:[#allocation6 + $0x80] sm:$0xff]   ;;  %2354 = vmatpush3.bf16.msra.mxu0 %v2634_v3  ;;  %v2639_v8 = vld [vmem:[#allocation6 + $0x88] sm:$0xff]  }
  0x5b   : > { %221 = vst [vmem:[#allocation2 + $0x14] sm:$0x1] %v2882_v0  ;;  %222 = vst [vmem:[#allocation2 + $0x18] sm:$0xf] %v2882_v0  ;;  %2394 = vmatpush3.bf16.msra.mxu1 %v2635_v4  ;;  %2355 = vmatprep.subr.bf16.mxu0 %v2636_v5  ;;  %v2641_v10 = vld [vmem:[#allocation6 + $0xd0] sm:$0xff]   ;;  %v2644_v13 = vld [vmem:[#allocation6 + $0x58] sm:$0xff]  }
  0x5c   : > { %223 = vst [vmem:[#allocation2 + $0x1c] sm:$0x1] %v2882_v0  ;;  %224 = vst [vmem:[#allocation2 + $0x20] sm:$0xf] %v2882_v0  ;;  %2395 = vmatprep.subr.bf16.mxu1 %v2637_v6  ;;  %v2642_v11 = vld [vmem:[#allocation6 + $0x10] sm:$0xff]   ;;  %v2645_v14 = vld [vmem:[#allocation6 + $0xd8] sm:$0xff]  }
  0x5d   : > { %225 = vst [vmem:[#allocation2 + $0x24] sm:$0x1] %v2882_v0  ;;  %226 = vst [vmem:[#allocation2 + $0x28] sm:$0xf] %v2882_v0  ;;  %v2643_v12 = vld [vmem:[#allocation6 + $0x90] sm:$0xff]   ;;  %v2646_v15 = vld [vmem:[#allocation6 + $0x18] sm:$0xff]  }
  0x5e   : > { %227 = vst [vmem:[#allocation2 + $0x2c] sm:$0x1] %v2882_v0  ;;  %228 = vst [vmem:[#allocation2 + $0x30] sm:$0xf] %v2882_v0  ;;  %2356 = vmatpush3.bf16.msra.mxu0 %v2638_v7  ;;  %v2647_v16 = vld [vmem:[#allocation6 + $0x98] sm:$0xff]   ;;  %v2648_v17 = vld [vmem:[#allocation6 + $0x60] sm:$0xff]  }
  0x5f   : > { %229 = vst [vmem:[#allocation2 + $0x34] sm:$0x1] %v2882_v0  ;;  %230 = vst [vmem:[#allocation2 + $0x38] sm:$0xf] %v2882_v0  ;;  %2396 = vmatpush3.bf16.msra.mxu1 %v2639_v8  ;;  %2357 = vmatprep.subr.bf16.mxu0 %v2640_v9  ;;  %v2649_v18 = vld [vmem:[#allocation6 + $0xe0] sm:$0xff]   ;;  %v2652_v21 = vld [vmem:[#allocation6 + $0x68] sm:$0xff]  }
  0x60   : > { %231 = vst [vmem:[#allocation2 + $0x3c] sm:$0x1] %v2882_v0  ;;  %232 = vst [vmem:[#allocation2 + $0x40] sm:$0xf] %v2882_v0  ;;  %2397 = vmatprep.subr.bf16.mxu1 %v2641_v10  ;;  %v2650_v19 = vld [vmem:[#allocation6 + $0x20] sm:$0xff]   ;;  %v2653_v22 = vld [vmem:[#allocation6 + $0xe8] sm:$0xff]  }
  0x61   : > { %233 = vst [vmem:[#allocation2 + $0x44] sm:$0x1] %v2882_v0  ;;  %234 = vst [vmem:[#allocation2 + $0x48] sm:$0xf] %v2882_v0  ;;  %v2651_v20 = vld [vmem:[#allocation6 + $0xa0] sm:$0xff]   ;;  %v2654_v23 = vld [vmem:[#allocation6 + $0x28] sm:$0xff]  }
  0x62   : > { %235 = vst [vmem:[#allocation2 + $0x4c] sm:$0x1] %v2882_v0  ;;  %2358 = vmatpush3.bf16.msra.mxu0 %v2642_v11  ;;  %v2655_v24 = vld [vmem:[#allocation6 + $0xa8] sm:$0xff]   ;;  %v2656_v25 = vld [vmem:[#allocation6 + $0x70] sm:$0xff]   ;;  %vm332_vm1 = vsmask.f32 256 }
  0x63   : > { %2398 = vmatpush3.bf16.msra.mxu1 %v2643_v12  ;;  %2359 = vmatprep.subr.bf16.mxu0 %v2644_v13  ;;  %v2657_v26 = vld [vmem:[#allocation6 + $0xf0] sm:$0xff]   ;;  %v2660_v29 = vld [vmem:[#allocation6 + $0x78] sm:$0xff]   ;;  %vm325_vm2 = vcmask 1043456   ;;  %vm331_vm3 = vcmask 1040384   ;;  %v236_v33 = vld [vmem:[%s3056_s11] sm:$0xf] }
  0x64   : > { %2399 = vmatprep.subr.bf16.mxu1 %v2645_v14  ;;  %v2658_v27 = vld [vmem:[#allocation6 + $0x30] sm:$0xff]   ;;  %v2661_v30 = vld [vmem:[#allocation6 + $0xf8] sm:$0xff]   ;;  %vm395_vm4 = vsmask.f32 3328  ;;  %vm396_vm5 = vsmask.f32 7440  ;;  %vm3074_vm8 = vmand %vm325_vm2, %vm326_vm0 }
  0x65   : > { %v2659_v28 = vld [vmem:[#allocation6 + $0xb0] sm:$0xff]   ;;  %v2662_v31 = vld [vmem:[#allocation6 + $0x38] sm:$0xff]   ;;  %v245_v34 = vshrl.u32 %v236_v33, 16  ;;  %v248_v35 = vshll.u32 %v236_v33, 16  ;;  %vm534_vm6 = vcmask 1042432   ;;  %vm535_vm7 = vcmask 1046532   ;;  %vm3080_vm9 = vmand %vm331_vm3, %vm332_vm1 }
  0x66   : > { %2360 = vmatpush3.bf16.msra.mxu0 %v2646_v15  ;;  %v2663_v32 = vld [vmem:[#allocation6 + $0xb8] sm:$0xff]   ;;  %v3067_v36 = vld [vmem:[#allocation2] sm:$0xf]  ;;  %v387_v37 = vld [vmem:[#allocation2 + $0x4] sm:$0x1]  ;;  %s2210_s18 = sshll.u32 %s3052_s6, 6 }
  0x67   : > { %2400 = vmatpush3.bf16.msra.mxu1 %v2647_v16  ;;  %2361 = vmatprep.subr.bf16.mxu0 %v2648_v17  ;;  %v328_v38 = vld [vmem:[#allocation2 + $0x8] sm:$0xf]  ;;  %v399_v39 = vshrl.u32 %v3067_v36, 16  ;;  %v402_v40 = vshll.u32 %v3067_v36, 16  ;;  %v237_v41 = vld [vmem:[%s3056_s11 + $0x4] sm:$0xf]  ;;  %vm3094_vm10 = vmor %vm395_vm4, %vm396_vm5 }
  0x68   : > { %2401 = vmatprep.subr.bf16.mxu1 %v2649_v18  ;;  %v247_v42 = vrot.slane %v245_v34, 7  ;;  %v334_v44 = vld [vmem:[#allocation2 + $0xc] sm:$0x1]  ;;  %v253_v45 = vshrl.u32 %v237_v41, 16  ;;  %v256_v46 = vshll.u32 %v237_v41, 16  ;;  %v2666_v47 = vld [vmem:[#allocation6 + $0x140] sm:$0xff]   ;;  %vm3102_vm11 = vmor %vm534_vm6, %vm535_vm7 }
  0x69   : > { %v401_v49 = vrot.slane %v399_v39, 4  ;;  %v404_v50 = vrot.slane %v402_v40, 5  ;;  %v408_v51 = vshll.u32 %v387_v37, 16  ;;  %v539_v52 = vrot.slane %v387_v37, 5  ;;  %v2667_v53 = vld [vmem:[#allocation6 + $0x1c0] sm:$0xff]   ;;  %s3481_s20 = scalar_lea.vmem [#allocation8], %s2210_s18 }
  0x6a   : > { %2362 = vmatpush3.bf16.msra.mxu0 %v2650_v19  ;;  %v250_v54 = vor.u32 %v248_v35, %v247_v42  ;;  %v251_v55 = vrot.slane %v247_v42, 4  ;;  %v255_v56 = vrot.slane %v253_v45, 7  ;;  %v337_v57 = vld [vmem:[#allocation2 + $0x10] sm:$0xf]  ;;  %v510_v62 = vld [vmem:[#allocation2] sm:$0xe] }
  0x6b   : > { %2402 = vmatpush3.bf16.msra.mxu1 %v2651_v20  ;;  %2363 = vmatprep.subr.bf16.mxu0 %v2652_v21  ;;  %v405_v60 = vor.u32 %v404_v50, %v401_v49  ;;  %v3090_v0 = vrot.slane %v408_v51, 5  ;;  %v2212_v4 = vrot.slane %v510_v62, 9  ;;  %v238_v6 = vld [vmem:[%s3056_s11 + $0x8] sm:$0xf]  ;;  %v340_v7 = vld [vmem:[#allocation2 + $0x14] sm:$0x1] }
  0x6c   : > { %2403 = vmatprep.subr.bf16.mxu1 %v2653_v22  ;;  %v329_v58 = vsel %vm3074_vm8, %v250_v54, %v328_v38  ;;  %v335_v59 = vsel %vm3080_vm9, %v251_v55, %v334_v44  ;;  %v258_v61 = vor.u32 %v256_v46, %v255_v56  ;;  %v259_v1 = vrot.slane %v255_v56, 4  ;;  %v2671_v35 = vld [vmem:[#allocation6 + $0x1c8] sm:$0xff]   ;;  %s2072_s8 = sshll.u32 %s3481_s20, 4  ;;  %s2352_s9 = sshll.u32 %s2928_s16, 10  ;;  %s3487_s8 = int_to_ptr.vmem [resolvable:$true] %s2072_s8 }
  0x6d   : > { %330 = vst [vmem:[#allocation2 + $0x8] sm:$0xf] %v329_v58  ;;  %336 = vst [vmem:[#allocation2 + $0xc] sm:$0x1] %v335_v59  ;;  %v3098_v3 = vrot.slane %v405_v60, 4  ;;  %v261_v8 = vshrl.u32 %v238_v6, 16  ;;  %v540_v14 = vsel %vm3102_vm11, %v2212_v4, %v539_v52  ;;  %s3495_s26 = scalar_lea.hbm %s3582_s2, %s2352_s9 }
  0x6e   : > { %2364 = vmatpush3.bf16.msra.mxu0 %v2654_v23  ;;  %v338_v63 = vsel %vm3074_vm8, %v258_v61, %v337_v57  ;;  %v341_v9 = vsel %vm3080_vm9, %v259_v1, %v340_v7  ;;  %v343_v37 = vld [vmem:[#allocation2 + $0x18] sm:$0xf]  ;;  %v346_v38 = vld [vmem:[#allocation2 + $0x1c] sm:$0x1]  ;;  %v2668_v57 = vld [vmem:[#allocation6 + $0x100] sm:$0xff]   ;;  %s2054_s5 = scalar_lea.sflag [#allocation5], %s3052_s6 }
  0x6f   : > { %2404 = vmatpush3.bf16.msra.mxu1 %v2655_v24  ;;  %2365 = vmatprep.subr.bf16.mxu0 %v2656_v25  ;;  %339 = vst [vmem:[#allocation2 + $0x10] sm:$0xf] %v338_v63  ;;  %v411_v12 = vsel %vm3094_vm10, %v3098_v3, %v3090_v0  ;;  %342 = vst [vmem:[#allocation2 + $0x14] sm:$0x1] %v341_v9  ;;  %v264_v24 = vshll.u32 %v238_v6, 16  ;;  %v263_v42 = vrot.slane %v261_v8, 7 }
  0x70   : > { %2405 = vmatprep.subr.bf16.mxu1 %v2657_v26  ;;  %v239_v44 = vld [vmem:[%s3056_s11 + $0xc] sm:$0xf]  ;;  %v2677_v4 = vld [vmem:[#allocation6 + $0x1d0] sm:$0xff]   ;;  %s2774_s27 = scalar_lea.vmem %s3487_s8, 1024  ;;  %s2883_s28 = smov [#allocation8]  }
  0x71   : > { %v266_v51 = vor.u32 %v264_v24, %v263_v42  ;;  %v267_v52 = vrot.slane %v263_v42, 4  ;;  %v2673_v59 = vld [vmem:[#allocation6 + $0x188] sm:$0xff]   ;;  %v269_v3 = vshrl.u32 %v239_v44, 16  ;;  %v272_v8 = vshll.u32 %v239_v44, 16  ;;  %v349_v9 = vld [vmem:[#allocation2 + $0x20] sm:$0xf]  ;;  %p2775_p4 = scmp.ne.s32.totalorder %s3487_s8, %s2774_s27 }
  0x72   : > { %2366 = vmatpush3.bf16.msra.mxu0 %v2658_v27  ;;  %s2778_s23 = sshll.u32 %s2883_s28, 4  ;;  %s2779_s23 = int_to_ptr.vmem [resolvable:$false] %s2778_s23 }
  0x73   : > { %2406 = vmatpush3.bf16.msra.mxu1 %v2659_v28  ;;  %2367 = vmatprep.subr.bf16.mxu0 %v2660_v29  ;;  %v2669_v29 = vld [vmem:[#allocation6 + $0x180] sm:$0xff]   ;;  %v344_v60 = vsel %vm3074_vm8, %v266_v51, %v343_v37  ;;  %v347_v61 = vsel %vm3080_vm9, %v267_v52, %v346_v38  ;;  %v2682_v52 = vld [vmem:[#allocation6 + $0x118] sm:$0xff]   ;;  %p2776_p6 = pnand %p2775_p4, %p3001_p12  ;;  %s2780_s29 = scalar_lea.vmem %s2779_s23, 2048 }
  0x74   : > { %2407 = vmatprep.subr.bf16.mxu1 %v2661_v30  ;;  %v3109_v10 = vld [vmem:[#allocation2 + $0x8] sm:$0xf]  ;;  %v388_v11 = vld [vmem:[#allocation2 + $0xc] sm:$0x1]  ;;  %345 = vst [vmem:[#allocation2 + $0x18] sm:$0xf] %v344_v60  ;;  %p2781_p10 = scmp.lt.s32.totalorder %s3487_s8, %s2779_s23  ;;  %p2782_p13 = scmp.lt.s32.totalorder %s2780_s29, %s2774_s27 }
  0x75   : > { %v569_v13 = vld [vmem:[#allocation2 + $0x8] sm:$0xf]  ;;  %v413_v15 = vshrl.u32 %v3109_v10, 16  ;;  %v416_v16 = vshll.u32 %v3109_v10, 16  ;;  %v422_v17 = vshll.u32 %v388_v11, 16  ;;  %v543_v18 = vrot.slane %v388_v11, 5  ;;  %p2777_p8 = pneg %p2776_p6 }
  0x76   : > { %2368 = vmatpush3.bf16.msra.mxu0 %v2662_v31  ;;  %v511_v19 = vld [vmem:[#allocation2 + $0x8] sm:$0xe]  ;;  %v570_v20 = vld [vmem:[#allocation2 + $0x10] sm:$0xf]  ;;  %v586_v21 = vshrl.u32 %v569_v13, 16  ;;  %v589_v22 = vshll.u32 %v569_v13, 16  ;;  %v2236_v56 = vcombine.low %v3067_v36, %v3109_v10  ;;  %p2783_p3 = por %p2782_p13, %p2781_p10 }
  0x77   : > { %2408 = vmatpush3.bf16.msra.mxu1 %v2663_v32  ;;  %2433 = vmatprep.subr.bf16.mxu0 %v2666_v47  ;;  %v2213_v23 = vrot.slane %v511_v19, 9  ;;  %v415_v25 = vrot.slane %v413_v15, 4  ;;  %v418_v26 = vrot.slane %v416_v16, 5  ;;  %v424_v27 = vrot.slane %v422_v17, 5  ;;  %v3119_v30 = vld [vmem:[#allocation2 + $0x10] sm:$0xf] }
  0x78   : > { %2473 = vmatprep.subr.bf16.mxu1 %v2667_v53  ;;  %v600_v28 = vshrl.u32 %v570_v20, 16  ;;  %v588_v31 = vrot.slane %v586_v21, 4  ;;  %v591_v32 = vrot.slane %v589_v22, 5  ;;  %v603_v33 = vshll.u32 %v570_v20, 16  ;;  %v3125_v53 = vld [vmem:[#allocation2 + $0x14] sm:$0x1]  ;;  %p2784_p7 = pnand %p2783_p3, %p2777_p8 }
  0x79   : > { %v2248_v34 = vcombine.low %v569_v13, %v570_v20  ;;  %v419_v39 = vor.u32 %v418_v26, %v415_v25  ;;  %v544_v41 = vsel %vm3102_vm11, %v2213_v23, %v543_v18  ;;  %v427_v49 = vshrl.u32 %v3119_v30, 16  ;;  %v3137_v63 = vld [vmem:[#allocation2 + $0x10] sm:$0xe]  ;;  %v2670_v36 = vld [vmem:[#allocation6 + $0x148] sm:$0xff]   ;;  %348 = vst [vmem:[#allocation2 + $0x1c] sm:$0x1] %v347_v61 }
  0x7a   : > { %v602_v40 = vrot.slane %v600_v28, 4  ;;  %v592_v45 = vor.u32 %v591_v32, %v588_v31  ;;  %v605_v46 = vrot.slane %v603_v33, 5  ;;  %v2244_v47 = vcombine.low %v540_v14, %v544_v41  ;;  %v2679_v10 = vld [vmem:[#allocation6 + $0x190] sm:$0xff]   ;;  %v2672_v13 = vld [vmem:[#allocation6 + $0x108] sm:$0xff]   ;;  %v2681_v16 = vld [vmem:[#allocation6 + $0x1d8] sm:$0xff]  }
  0x7b   : > { %1779 = vmatprep.mubr.bf16.mxu1 %v2248_v34  ;;  %v420_v50 = vrot.slane %v419_v39, 4  ;;  %v430_v54 = vshll.u32 %v3119_v30, 16  ;;  %v436_v62 = vshll.u32 %v3125_v53, 16  ;;  %v429_v6 = vrot.slane %v427_v49, 4  ;;  %v2676_v15 = vld [vmem:[#allocation6 + $0x150] sm:$0xff]   ;;  %v2683_v26 = vld [vmem:[#allocation6 + $0x198] sm:$0xff]  }
  0x7c   : > { %v606_v55 = vor.u32 %v605_v46, %v602_v40  ;;  %1780 = vmatmul.mubr.bf16.vlgmr.msra.gmra.mrb[0].mxu1 %v2244_v47  ;;  %v3139_v1 = vrot.slane %v592_v45, 4  ;;  %v271_v14 = vrot.slane %v269_v3, 7  ;;  %v2214_v19 = vrot.slane %v3137_v63, 9  ;;  %v240_v21 = vld [vmem:[%s3056_s11 + $0x10] sm:$0xf]  ;;  %v2680_v34 = vld [vmem:[#allocation6 + $0x158] sm:$0xff]  }
  0x7d   : > { %v425_v58 = vsel %vm3094_vm10, %v420_v50, %v424_v27  ;;  %2474 = vmatpush3.bf16.msra.mxu1 %v2669_v29  ;;  %v432_v7 = vrot.slane %v430_v54, 5  ;;  %v352_v22 = vld [vmem:[#allocation2 + $0x24] sm:$0x1]  ;;  %v547_v24 = vrot.slane %v3125_v53, 5  ;;  %v277_v27 = vshrl.u32 %v240_v21, 16  ;;  %v2687_v29 = vld [vmem:[#allocation6 + $0x1e0] sm:$0xff]  }
  0x7e   : > { %v2240_v0 = vcombine.low %v411_v12, %v425_v58  ;;  %2475 = vmatprep.subr.bf16.mxu1 %v2671_v35  ;;  %v3141_v11 = vrot.slane %v606_v55, 4  ;;  %v3143_v12 = vrot.slane %v436_v62, 5  ;;  %v274_v17 = vor.u32 %v272_v8, %v271_v14  ;;  %v2678_v25 = vld [vmem:[#allocation6 + $0x110] sm:$0xff]   ;;  %v3152_v31 = vld [vmem:[#allocation2 + $0x18] sm:$0xf]  ;;  %v2689_v60 = vld [vmem:[#allocation6 + $0x1a0] sm:$0xff]  }
  0x7f   : > { %v275_v18 = vrot.slane %v271_v14, 4  ;;  %v433_v20 = vor.u32 %v432_v7, %v429_v6  ;;  %v3154_v33 = vld [vmem:[#allocation2 + $0x18] sm:$0xf]  ;;  %v441_v35 = vshrl.u32 %v3152_v31, 16  ;;  %v444_v37 = vshll.u32 %v3152_v31, 16 }
  0x80   : > { %1714 = vmatprep.mubr.bf16.mxu0 %v2240_v0  ;;  %v350_v23 = vsel %vm3074_vm8, %v274_v17, %v349_v9  ;;  %v390_v32 = vld [vmem:[#allocation2 + $0x1c] sm:$0x1]  ;;  %v614_v39 = vshrl.u32 %v3154_v33, 16  ;;  %v513_v40 = vld [vmem:[#allocation2 + $0x18] sm:$0xe]  ;;  %v280_v45 = vshll.u32 %v240_v21, 16  ;;  %v548_v51 = vsel %vm3102_vm11, %v2214_v19, %v547_v24 }
  0x81   : > { %1715 = vmatmul.mubr.bf16.vlgmr.msra.gmra.mrb[0].mxu0 %v2236_v56  ;;  %2476 = vmatpush3.bf16.msra.mxu1 %v2673_v59  ;;  %v353_v28 = vsel %vm3080_vm9, %v275_v18, %v352_v22  ;;  %351 = vst [vmem:[#allocation2 + $0x20] sm:$0xf] %v350_v23  ;;  %v450_v38 = vshll.u32 %v390_v32, 16  ;;  %v434_v41 = vrot.slane %v433_v20, 4  ;;  %v2215_v42 = vrot.slane %v513_v40, 9  ;;  %v2686_v59 = vld [vmem:[#allocation6 + $0x160] sm:$0xff]  }
  0x82   : > { %2434 = vmatpush3.bf16.msra.mxu0 %v2668_v57  ;;  %2477 = vmatprep.subr.bf16.mxu1 %v2677_v4  ;;  %354 = vst [vmem:[#allocation2 + $0x24] sm:$0x1] %v353_v28  ;;  %v551_v44 = vrot.slane %v390_v32, 5  ;;  %v241_v46 = vld [vmem:[%s3056_s11 + $0x14] sm:$0xf]  ;;  %v443_v47 = vrot.slane %v441_v35, 4  ;;  %v2237_v8 = vcombine.low %v3119_v30, %v3152_v31 }
  0x83   : > { %2435 = vmatprep.subr.bf16.mxu0 %v2670_v36  ;;  %v446_v49 = vrot.slane %v444_v37, 5  ;;  %v617_v50 = vshll.u32 %v3154_v33, 16  ;;  %v355_v53 = vld [vmem:[#allocation2 + $0x28] sm:$0xf]  ;;  %v452_v54 = vrot.slane %v450_v38, 5  ;;  %v279_v56 = vrot.slane %v277_v27, 7 }
  0x84   : > { %v552_v55 = vsel %vm3102_vm11, %v2215_v42, %v551_v44  ;;  %v358_v57 = vld [vmem:[#allocation2 + $0x2c] sm:$0x1]  ;;  %v285_v58 = vshrl.u32 %v241_v46, 16  ;;  %v3165_v62 = vrot.slane %v614_v39, 4  ;;  %v288_v63 = vshll.u32 %v241_v46, 16  ;;  %v2690_v28 = vld [vmem:[#allocation6 + $0x168] sm:$0xff]  }
  0x85   : > { %2478 = vmatpush3.bf16.msra.mxu1 %v2679_v10  ;;  %v447_v61 = vor.u32 %v446_v49, %v443_v47  ;;  %v282_v0 = vor.u32 %v280_v45, %v279_v56  ;;  %v283_v36 = vrot.slane %v279_v56, 4  ;;  %v439_v4 = vsel %vm3094_vm10, %v434_v41, %v3143_v12  ;;  %v361_v19 = vld [vmem:[#allocation2 + $0x30] sm:$0xf]  ;;  %v2692_v40 = vld [vmem:[#allocation6 + $0x128] sm:$0xff]   ;;  %v2696_v44 = vld [vmem:[#allocation6 + $0x170] sm:$0xff]  }
  0x86   : > { %2436 = vmatpush3.bf16.msra.mxu0 %v2672_v13  ;;  %2479 = vmatprep.subr.bf16.mxu1 %v2681_v16  ;;  %v287_v3 = vrot.slane %v285_v58, 7  ;;  %v2245_v9 = vcombine.low %v548_v51, %v552_v55  ;;  %v2691_v13 = vld [vmem:[#allocation6 + $0x1e8] sm:$0xff]   ;;  %v2688_v12 = vld [vmem:[#allocation6 + $0x120] sm:$0xff]   ;;  %v242_v46 = vld [vmem:[%s3056_s11 + $0x18] sm:$0xf] }
  0x87   : > { %2437 = vmatprep.subr.bf16.mxu0 %v2676_v15  ;;  %v448_v6 = vrot.slane %v447_v61, 4  ;;  %v356_v17 = vsel %vm3074_vm8, %v282_v0, %v355_v53  ;;  %v359_v30 = vsel %vm3080_vm9, %v283_v36, %v358_v57  ;;  %v364_v47 = vld [vmem:[#allocation2 + $0x34] sm:$0x1]  ;;  %v2697_v49 = vld [vmem:[#allocation6 + $0x1f0] sm:$0xff]   ;;  %v577_v43 = vld [vmem:[#allocation2 + $0xc] sm:$0x1] }
  0x88   : > { %v572_v7 = vld [vmem:[#allocation2 + $0x20] sm:$0xf]  ;;  %357 = vst [vmem:[#allocation2 + $0x28] sm:$0xf] %v356_v17  ;;  %360 = vst [vmem:[#allocation2 + $0x2c] sm:$0x1] %v359_v30 }
  0x89   : > { %2480 = vmatpush3.bf16.msra.mxu1 %v2683_v26  ;;  %v3172_v10 = vld [vmem:[#allocation2 + $0x20] sm:$0xf]  ;;  %v628_v14 = vshrl.u32 %v572_v7, 16  ;;  %v631_v15 = vshll.u32 %v572_v7, 16  ;;  %v2249_v16 = vcombine.low %v3154_v33, %v572_v7  ;;  %v391_v18 = vld [vmem:[#allocation2 + $0x24] sm:$0x1]  ;;  %v453_v21 = vsel %vm3094_vm10, %v448_v6, %v452_v54 }
  0x8a   : > { %2438 = vmatpush3.bf16.msra.mxu0 %v2678_v25  ;;  %2481 = vmatprep.subr.bf16.mxu1 %v2687_v29  ;;  %v514_v20 = vld [vmem:[#allocation2 + $0x20] sm:$0xe]  ;;  %v455_v22 = vshrl.u32 %v3172_v10, 16  ;;  %v458_v23 = vshll.u32 %v3172_v10, 16  ;;  %v2241_v24 = vcombine.low %v439_v4, %v453_v21  ;;  %v3183_v25 = vrot.slane %v617_v50, 5 }
  0x8b   : > { %2439 = vmatprep.subr.bf16.mxu0 %v2680_v34  ;;  %v3185_v26 = vrot.slane %v628_v14, 4  ;;  %1787 = vmatprep.mubr.bf16.mxu1 %v2249_v16  ;;  %v464_v27 = vshll.u32 %v391_v18, 16  ;;  %v3187_v29 = vrot.slane %v631_v15, 5  ;;  %v290_v33 = vor.u32 %v288_v63, %v287_v3  ;;  %v2693_v34 = vld [vmem:[#allocation6 + $0x1a8] sm:$0xff]   ;;  %v2699_v4 = vld [vmem:[#allocation6 + $0x1b0] sm:$0xff]  }
  0x8c   : > { %1788 = vmatmul.mubr.bf16.gmra.mrb[4].mxu1 %v2245_v9  ;;  %v457_v31 = vrot.slane %v455_v22, 4  ;;  %v460_v32 = vrot.slane %v458_v23, 5  ;;  %1722 = vmatprep.mubr.bf16.mxu0 %v2241_v24  ;;  %v291_v37 = vrot.slane %v287_v3, 4  ;;  %v2216_v38 = vrot.slane %v514_v20, 9  ;;  %v2698_v3 = vld [vmem:[#allocation6 + $0x130] sm:$0xff]  }
  0x8d   : > { %2482 = vmatpush3.bf16.msra.mxu1 %v2689_v60  ;;  %v3189_v35 = vrot.slane %v464_v27, 5  ;;  %v555_v39 = vrot.slane %v391_v18, 5  ;;  %1723 = vmatmul.mubr.bf16.gmra.mrb[4].mxu0 %v2237_v8  ;;  %v362_v42 = vsel %vm3074_vm8, %v290_v33, %v361_v19  ;;  %v620_v55 = vor.u32 %v3183_v25, %v3165_v62  ;;  %v243_v17 = vld [vmem:[%s3056_s11 + $0x1c] sm:$0xf]  ;;  %v367_v27 = vld [vmem:[#allocation2 + $0x38] sm:$0xf] }
  0x8e   : > { %2440 = vmatpush3.bf16.msra.mxu0 %v2682_v52  ;;  %2483 = vmatprep.subr.bf16.mxu1 %v2691_v13  ;;  %v461_v41 = vor.u32 %v460_v32, %v457_v31  ;;  %363 = vst [vmem:[#allocation2 + $0x30] sm:$0xf] %v362_v42  ;;  %v365_v54 = vsel %vm3080_vm9, %v291_v37, %v364_v47  ;;  %v293_v15 = vshrl.u32 %v242_v46, 16  ;;  %v296_v16 = vshll.u32 %v242_v46, 16  ;;  %v373_v37 = vld [vmem:[#allocation2 + $0x40] sm:$0xf] }
  0x8f   : > { %2441 = vmatprep.subr.bf16.mxu0 %v2686_v59  ;;  %v3196_v50 = vld [vmem:[#allocation2 + $0x28] sm:$0xf]  ;;  %v556_v53 = vsel %vm3102_vm11, %v2216_v38, %v555_v39  ;;  %v392_v56 = vld [vmem:[#allocation2 + $0x2c] sm:$0x1]  ;;  %366 = vst [vmem:[#allocation2 + $0x34] sm:$0x1] %v365_v54 }
  0x90   : > { %v3193_v45 = vrot.slane %v461_v41, 4  ;;  %v573_v51 = vld [vmem:[#allocation2 + $0x28] sm:$0xf]  ;;  %v469_v58 = vshrl.u32 %v3196_v50, 16  ;;  %v472_v59 = vshll.u32 %v3196_v50, 16  ;;  %v478_v61 = vshll.u32 %v392_v56, 16 }
  0x91   : > { %2484 = vmatpush3.bf16.msra.mxu1 %v2693_v34  ;;  %v515_v52 = vld [vmem:[#allocation2 + $0x28] sm:$0xe]  ;;  %v642_v60 = vshrl.u32 %v573_v51, 16  ;;  %v645_v63 = vshll.u32 %v573_v51, 16  ;;  %v2238_v0 = vcombine.low %v3172_v10, %v3196_v50  ;;  %v559_v9 = vrot.slane %v392_v56, 5 }
  0x92   : > { %2442 = vmatpush3.bf16.msra.mxu0 %v2688_v12  ;;  %v467_v57 = vsel %vm3094_vm10, %v3193_v45, %v3189_v35  ;;  %2485 = vmatprep.subr.bf16.mxu1 %v2697_v49  ;;  %v2217_v36 = vrot.slane %v515_v52, 9  ;;  %v471_v6 = vrot.slane %v469_v58, 4  ;;  %v474_v7 = vrot.slane %v472_v59, 5 }
  0x93   : > { %2443 = vmatprep.subr.bf16.mxu0 %v2690_v28  ;;  %v3212_v8 = vrot.slane %v642_v60, 4  ;;  %v480_v13 = vrot.slane %v478_v61, 5  ;;  %v3214_v14 = vrot.slane %v645_v63, 5  ;;  %v301_v12 = vshrl.u32 %v243_v17, 16  ;;  %v370_v28 = vld [vmem:[#allocation2 + $0x3c] sm:$0x1] }
  0x94   : > { %v475_v18 = vor.u32 %v474_v7, %v471_v6  ;;  %v560_v10 = vsel %vm3102_vm11, %v2217_v36, %v559_v9  ;;  %v304_v21 = vshll.u32 %v243_v17, 16  ;;  %v295_v33 = vrot.slane %v293_v15, 7  ;;  %v2700_v61 = vld [vmem:[#allocation6 + $0x178] sm:$0xff]   ;;  %v578_v9 = vld [vmem:[#allocation2 + $0x14] sm:$0x1] }
  0x95   : > { %2486 = vmatpush3.bf16.msra.mxu1 %v2699_v4  ;;  %v574_v19 = vld [vmem:[#allocation2 + $0x30] sm:$0xf]  ;;  %v2246_v24 = vcombine.low %v556_v53, %v560_v10  ;;  %v3227_v41 = vrot.slane %v301_v12, 7  ;;  %v634_v63 = vor.u32 %v3187_v29, %v3185_v26  ;;  %v2702_v4 = vld [vmem:[#allocation6 + $0x138] sm:$0xff]   ;;  %v3248_v6 = vrot.slane %v620_v55, 4 }
  0x96   : > { %2444 = vmatpush3.bf16.msra.mxu0 %v2692_v40  ;;  %v3219_v20 = vld [vmem:[#allocation2 + $0x30] sm:$0xf]  ;;  %v656_v30 = vshrl.u32 %v574_v19, 16  ;;  %v659_v22 = vshll.u32 %v574_v19, 16  ;;  %v2250_v23 = vcombine.low %v573_v51, %v574_v19  ;;  %v476_v32 = vrot.slane %v475_v18, 4  ;;  %v2703_v7 = vld [vmem:[#allocation6 + $0x1b8] sm:$0xff]  }
  0x97   : > { %2445 = vmatprep.subr.bf16.mxu0 %v2696_v44  ;;  %v516_v31 = vld [vmem:[#allocation2 + $0x30] sm:$0xe]  ;;  %v483_v34 = vshrl.u32 %v3219_v20, 16  ;;  %v486_v35 = vshll.u32 %v3219_v20, 16  ;;  %v393_v40 = vld [vmem:[#allocation2 + $0x34] sm:$0x1]  ;;  %v298_v45 = vor.u32 %v296_v16, %v295_v33  ;;  %v306_v52 = vor.u32 %v304_v21, %v3227_v41 }
  0x98   : > { %v3223_v38 = vrot.slane %v656_v30, 4  ;;  %v3225_v39 = vrot.slane %v659_v22, 5  ;;  %1795 = vmatprep.mubr.bf16.mxu1 %v2250_v23  ;;  %v2218_v42 = vrot.slane %v516_v31, 9  ;;  %v481_v44 = vsel %vm3094_vm10, %v476_v32, %v480_v13  ;;  %v698_v15 = vld [vmem:[#allocation2 + $0x10] sm:$0xe] }
  0x99   : > { %1796 = vmatmul.mubr.bf16.gmra.mrb[8].mxu1 %v2246_v24  ;;  %v299_v46 = vrot.slane %v295_v33, 4  ;;  %v485_v47 = vrot.slane %v483_v34, 4  ;;  %v2242_v49 = vcombine.low %v467_v57, %v481_v44  ;;  %v488_v50 = vrot.slane %v486_v35, 5  ;;  %v3266_v31 = vld [vmem:[#allocation2 + $0x10] sm:$0xf] }
  0x9a   : > { %2446 = vmatpush3.bf16.msra.mxu0 %v2698_v3  ;;  %v492_v51 = vshll.u32 %v393_v40, 16  ;;  %v368_v53 = vsel %vm3074_vm8, %v298_v45, %v367_v27  ;;  %v307_v56 = vrot.slane %v3227_v41, 4  ;;  %v563_v58 = vrot.slane %v393_v40, 5  ;;  %v2701_v3 = vld [vmem:[#allocation6 + $0x1f8] sm:$0xff]   ;;  %v3268_v40 = vld [vmem:[#allocation6 + $0x200] sm:$0xff]  }
  0x9b   : > { %v371_v54 = vsel %vm3080_vm9, %v299_v46, %v370_v28  ;;  %1730 = vmatprep.mubr.bf16.mxu0 %v2242_v49  ;;  %369 = vst [vmem:[#allocation2 + $0x38] sm:$0xf] %v368_v53  ;;  %v489_v59 = vor.u32 %v488_v50, %v485_v47  ;;  %v374_v57 = vsel %vm3074_vm8, %v306_v52, %v373_v37  ;;  %v3250_v13 = vrot.slane %v634_v63, 4  ;;  %v3272_v47 = vld [vmem:[#allocation2 + $0x18] sm:$0xf] }
  0x9c   : > { %372 = vst [vmem:[#allocation2 + $0x3c] sm:$0x1] %v371_v54  ;;  %v3237_v60 = vrot.slane %v492_v51, 5  ;;  %1731 = vmatmul.mubr.bf16.gmra.mrb[8].mxu0 %v2238_v0  ;;  %375 = vst [vmem:[#allocation2 + $0x40] sm:$0xf] %v374_v57  ;;  %2447 = vmatprep.subr.bf16.mxu0 %v2700_v61  ;;  %v595_v26 = vshll.u32 %v577_v43, 16  ;;  %v564_v12 = vsel %vm3102_vm11, %v2218_v42, %v563_v58 }
  0x9d   : > { %v3243_v36 = vrot.slane %v489_v59, 4  ;;  %2487 = vmatprep.subr.bf16.mxu1 %v2701_v3  ;;  %v609_v29 = vshll.u32 %v578_v9, 16  ;;  %v697_v0 = vld [vmem:[#allocation2 + $0x8] sm:$0xe]  ;;  %v723_v17 = vrot.slane %v577_v43, 5  ;;  %v2221_v18 = vrot.slane %v698_v15, 9 }
  0x9e   : > { %2448 = vmatpush3.bf16.msra.mxu0 %v2702_v4  ;;  %2488 = vmatpush3.bf16.msra.mxu1 %v2703_v7  ;;  %v2220_v16 = vrot.slane %v697_v0, 9  ;;  %v727_v19 = vrot.slane %v578_v9, 5  ;;  %v648_v21 = vor.u32 %v3214_v14, %v3212_v8  ;;  %v662_v30 = vor.u32 %v3225_v39, %v3223_v38  ;;  %v3282_v53 = vld [vmem:[#allocation2 + $0x14] sm:$0x1]  ;;  %v3285_v57 = vld [vmem:[#allocation2 + $0x1c] sm:$0x1] }
  0x9f   : > { %v495_v25 = vsel %vm3094_vm10, %v3243_v36, %v3237_v60  ;;  %2525 = vmatprep.subr.bf16.mxu0 %v3268_v40  ;;  %v597_v60 = vrot.slane %v595_v26, 5  ;;  %2549 = vmatprep.subr.bf16.mxu1 %v3268_v40  ;;  %v611_v61 = vrot.slane %v609_v29, 5  ;;  %v774_v43 = vshll.u32 %v3266_v31, 16  ;;  %v3298_v15 = vld [vmem:[#allocation2 + $0x1c] sm:$0x1] }
  0xa0   : > { %v724_v63 = vsel %vm3102_vm11, %v2220_v16, %v723_v17  ;;  %v728_v36 = vsel %vm3102_vm11, %v2221_v18, %v727_v19  ;;  %v780_v0 = vshll.u32 %v3282_v53, 16  ;;  %v785_v29 = vshrl.u32 %v3272_v47, 16 }
  0xa1   : > { %v2256_v7 = vcombine.low %v724_v63, %v728_v36  ;;  %v776_v17 = vrot.slane %v774_v43, 5  ;;  %v788_v18 = vshll.u32 %v3272_v47, 16  ;;  %v794_v19 = vshll.u32 %v3285_v57, 16 }
  0xa2   : > { %v3252_v10 = vld [vmem:[#allocation2 + $0x38] sm:$0xf] }
  0xa3   : > { %v394_v62 = vld [vmem:[#allocation2 + $0x3c] sm:$0x1]  ;;  %v575_v55 = vld [vmem:[#allocation2 + $0x38] sm:$0xf]  ;;  %v497_v22 = vshrl.u32 %v3252_v10, 16  ;;  %v500_v23 = vshll.u32 %v3252_v10, 16  ;;  %v2239_v52 = vcombine.low %v3219_v20, %v3252_v10 }
  0xa4   : > { %v506_v24 = vshll.u32 %v394_v62, 16  ;;  %v576_v27 = vld [vmem:[#allocation2 + $0x40] sm:$0xf]  ;;  %v670_v28 = vshrl.u32 %v575_v55, 16  ;;  %v673_v32 = vshll.u32 %v575_v55, 16  ;;  %v567_v59 = vrot.slane %v394_v62, 5 }
  0xa5   : > { %v684_v33 = vshrl.u32 %v576_v27, 16  ;;  %v687_v34 = vshll.u32 %v576_v27, 16  ;;  %v2251_v35 = vcombine.low %v575_v55, %v576_v27  ;;  %v517_v37 = vld [vmem:[#allocation2 + $0x38] sm:$0xe]  ;;  %v499_v42 = vrot.slane %v497_v22, 4 }
  0xa6   : > { %v502_v44 = vrot.slane %v500_v23, 5  ;;  %v508_v45 = vrot.slane %v506_v24, 5  ;;  %v3270_v46 = vrot.slane %v670_v28, 4  ;;  %v3274_v49 = vrot.slane %v673_v32, 5  ;;  %v3304_v10 = vld [vmem:[#allocation2 + $0x24] sm:$0x1] }
  0xa7   : > { %v3276_v50 = vrot.slane %v684_v33, 4  ;;  %v3278_v51 = vrot.slane %v687_v34, 5  ;;  %1803 = vmatprep.mubr.bf16.mxu1 %v2251_v35  ;;  %v2219_v58 = vrot.slane %v517_v37, 9  ;;  %v771_v20 = vshrl.u32 %v3266_v31, 16  ;;  %v699_v23 = vld [vmem:[#allocation2 + $0x18] sm:$0xe] }
  0xa8   : > { %v503_v54 = vor.u32 %v502_v44, %v499_v42  ;;  %v782_v55 = vrot.slane %v780_v0, 5  ;;  %v598_v22 = vsel %vm3094_vm10, %v3139_v1, %v597_v60  ;;  %v700_v24 = vld [vmem:[#allocation2 + $0x20] sm:$0xe]  ;;  %v790_v28 = vrot.slane %v788_v18, 5  ;;  %v3314_v35 = vld [vmem:[#allocation2 + $0x28] sm:$0xf] }
  0xa9   : > { %v568_v4 = vsel %vm3102_vm11, %v2219_v58, %v567_v59  ;;  %v773_v26 = vrot.slane %v771_v20, 4  ;;  %v796_v32 = vrot.slane %v794_v19, 5  ;;  %v612_v33 = vsel %vm3094_vm10, %v3141_v11, %v611_v61  ;;  %v3312_v34 = vld [vmem:[#allocation2 + $0x20] sm:$0xf]  ;;  %v3319_v44 = vld [vmem:[#allocation2 + $0x24] sm:$0x1] }
  0xaa   : > { %v504_v3 = vrot.slane %v503_v54, 4  ;;  %v2247_v9 = vcombine.low %v564_v12, %v568_v4  ;;  %v787_v12 = vrot.slane %v785_v29, 4  ;;  %v2260_v37 = vcombine.low %v3266_v31, %v3272_v47  ;;  %v2706_v0 = vld [vmem:[#allocation6 + $0x208] sm:$0xff]   ;;  %v3340_v18 = vld [vmem:[#allocation2 + $0x34] sm:$0x1] }
  0xab   : > { %v777_v27 = vor.u32 %v776_v17, %v773_v26  ;;  %v2222_v42 = vrot.slane %v699_v23, 9  ;;  %v731_v1 = vrot.slane %v3298_v15, 5  ;;  %v2223_v11 = vrot.slane %v700_v24, 9  ;;  %v702_v23 = vld [vmem:[#allocation2 + $0x30] sm:$0xe] }
  0xac   : > { %v509_v16 = vsel %vm3094_vm10, %v504_v3, %v508_v45  ;;  %1804 = vmatmul.mubr.bf16.gmra.mrb[12].mxu1 %v2247_v9  ;;  %v3321_v45 = vld [vmem:[#allocation2 + $0x2c] sm:$0x1]  ;;  %v791_v58 = vor.u32 %v790_v28, %v787_v12  ;;  %v735_v59 = vrot.slane %v3304_v10, 5  ;;  %v799_v61 = vshrl.u32 %v3312_v34, 16 }
  0xad   : > { %v2243_v62 = vcombine.low %v495_v25, %v509_v16  ;;  %v2252_v25 = vcombine.low %v598_v22, %v612_v33  ;;  %v778_v54 = vrot.slane %v777_v27, 4  ;;  %v732_v60 = vsel %vm3102_vm11, %v2222_v42, %v731_v1  ;;  %v3334_v9 = vld [vmem:[#allocation2 + $0x2c] sm:$0x1]  ;;  %v701_v22 = vld [vmem:[#allocation2 + $0x28] sm:$0xe] }
  0xae   : > { %v802_v31 = vshll.u32 %v3312_v34, 16  ;;  %v808_v47 = vshll.u32 %v3319_v44, 16  ;;  %v792_v36 = vrot.slane %v791_v58, 4  ;;  %v813_v20 = vshrl.u32 %v3314_v35, 16  ;;  %v3346_v33 = vld [vmem:[#allocation2 + $0x30] sm:$0xf] }
  0xaf   : > { %1738 = vmatprep.mubr.bf16.mxu0 %v2243_v62  ;;  %v783_v63 = vsel %vm3094_vm10, %v778_v54, %v782_v55  ;;  %v801_v4 = vrot.slane %v799_v61, 4  ;;  %v816_v16 = vshll.u32 %v3314_v35, 16  ;;  %v822_v17 = vshll.u32 %v3321_v45, 16 }
  0xb0   : > { %1739 = vmatmul.mubr.bf16.gmra.mrb[12].mxu0 %v2239_v52  ;;  %v736_v52 = vsel %vm3102_vm11, %v2223_v11, %v735_v59  ;;  %v810_v43 = vrot.slane %v808_v47, 5  ;;  %v797_v26 = vsel %vm3094_vm10, %v792_v36, %v796_v32  ;;  %v815_v29 = vrot.slane %v813_v20, 4  ;;  %v3351_v11 = vld [vmem:[#allocation2 + $0x38] sm:$0xf] }
  0xb1   : > { %1844 = vmatprep.mubr.bf16.mxu0 %v2256_v7  ;;  %v2257_v3 = vcombine.low %v732_v60, %v736_v52  ;;  %v804_v7 = vrot.slane %v802_v31, 5  ;;  %v2264_v19 = vcombine.low %v783_v63, %v797_v26  ;;  %v916_v55 = vrot.slane %v3319_v44, 5  ;;  %v376_v26 = vld [vmem:[#allocation2 + $0x44] sm:$0x1] }
  0xb2   : > { %v920_v12 = vrot.slane %v3321_v45, 5  ;;  %v818_v24 = vrot.slane %v816_v16, 5  ;;  %v824_v27 = vrot.slane %v822_v17, 5  ;;  %v623_v28 = vshll.u32 %v3298_v15, 16  ;;  %v2708_v15 = vld [vmem:[#allocation6 + $0x210] sm:$0xff]  }
  0xb3   : > { %v805_v62 = vor.u32 %v804_v7, %v801_v4  ;;  %v637_v32 = vshll.u32 %v3304_v10, 16  ;;  %1909 = vmatprep.mubr.bf16.mxu1 %v2264_v19  ;;  %v2261_v1 = vcombine.low %v3312_v34, %v3314_v35  ;;  %v2224_v54 = vrot.slane %v701_v22, 9  ;;  %v3353_v10 = vld [vmem:[#allocation2 + $0x34] sm:$0x1]  ;;  %v703_v19 = vld [vmem:[#allocation2 + $0x38] sm:$0xe] }
  0xb4   : > { %v739_v58 = vrot.slane %v3334_v9, 5  ;;  %1910 = vmatmul.mubr.bf16.vlgmr.msra.gmra.mrb[16].mxu1 %v2260_v37  ;;  %v819_v59 = vor.u32 %v818_v24, %v815_v29  ;;  %v625_v60 = vrot.slane %v623_v28, 5  ;;  %v2225_v31 = vrot.slane %v702_v23, 9  ;;  %v3364_v37 = vld [vmem:[#allocation2 + $0x3c] sm:$0x1] }
  0xb5   : > { %v806_v42 = vrot.slane %v805_v62, 4  ;;  %v639_v61 = vrot.slane %v637_v32, 5  ;;  %2557 = vmatpush3.bf16.msra.mxu1 %v3268_v40  ;;  %v827_v47 = vshrl.u32 %v3346_v33, 16  ;;  %v830_v52 = vshll.u32 %v3346_v33, 16  ;;  %v3385_v24 = vld [vmem:[#allocation2 + $0x40] sm:$0xe] }
  0xb6   : > { %v3361_v35 = vsel %vm3102_vm11, %v2224_v54, %v739_v58  ;;  %2550 = vmatprep.subr.bf16.mxu1 %v2706_v0  ;;  %v820_v63 = vrot.slane %v819_v59, 4  ;;  %v841_v17 = vshrl.u32 %v3351_v11, 16  ;;  %v844_v22 = vshll.u32 %v3351_v11, 16 }
  0xb7   : > { %v811_v34 = vsel %vm3094_vm10, %v806_v42, %v810_v43  ;;  %v640_v36 = vsel %vm3094_vm10, %v3250_v13, %v639_v61  ;;  %v829_v7 = vrot.slane %v827_v47, 4  ;;  %v836_v43 = vshll.u32 %v3353_v10, 16  ;;  %v3381_v13 = vld [vmem:[#allocation2 + $0x3c] sm:$0x1] }
  0xb8   : > { %1845 = vmatmul.mubr.bf16.vlgmr.msra.gmra.mrb[16].mxu0 %v2252_v25  ;;  %v743_v25 = vrot.slane %v3340_v18, 5  ;;  %v825_v29 = vsel %vm3094_vm10, %v820_v63, %v824_v27  ;;  %v832_v16 = vrot.slane %v830_v52, 5  ;;  %v850_v23 = vshll.u32 %v3364_v37, 16  ;;  %v2709_v27 = vld [vmem:[#allocation6 + $0x218] sm:$0xff]  }
  0xb9   : > { %2526 = vmatpush3.bf16.msra.mxu0 %v3268_v40  ;;  %v626_v40 = vsel %vm3094_vm10, %v3248_v6, %v625_v60  ;;  %1852 = vmatprep.mubr.bf16.mxu0 %v2257_v3  ;;  %v2265_v3 = vcombine.low %v811_v34, %v825_v29  ;;  %v838_v62 = vrot.slane %v836_v43, 5  ;;  %v843_v32 = vrot.slane %v841_v17, 4  ;;  %v882_v43 = vld [vmem:[#allocation2 + $0x10] sm:$0xe]  ;;  %v2712_v29 = vld [vmem:[#allocation6 + $0x228] sm:$0xff]  }
  0xba   : > { %2527 = vmatprep.subr.bf16.mxu0 %v2706_v0  ;;  %v2253_v20 = vcombine.low %v626_v40, %v640_v36  ;;  %v744_v4 = vsel %vm3102_vm11, %v2225_v31, %v743_v25  ;;  %2558 = vmatpush3.bf16.msra.mxu1 %v2706_v0  ;;  %v833_v28 = vor.u32 %v832_v16, %v829_v7  ;;  %v649_v42 = vrot.slane %v648_v21, 4  ;;  %v3397_v31 = vld [vmem:[#allocation2 + $0x48] sm:$0xf] }
  0xbb   : > { %v2258_v6 = vcombine.low %v3361_v35, %v744_v4  ;;  %2551 = vmatprep.subr.bf16.mxu1 %v2708_v15  ;;  %v651_v54 = vshll.u32 %v3334_v9, 16  ;;  %1917 = vmatprep.mubr.bf16.mxu1 %v2265_v3  ;;  %v846_v58 = vrot.slane %v844_v22, 5  ;;  %v852_v59 = vrot.slane %v850_v23, 5  ;;  %v3405_v9 = vld [vmem:[#allocation2 + $0x4c] sm:$0x1] }
  0xbc   : > { %v663_v60 = vrot.slane %v662_v30, 4  ;;  %v665_v61 = vshll.u32 %v3340_v18, 16  ;;  %1918 = vmatmul.mubr.bf16.gmra.mrb[20].mxu1 %v2261_v1  ;;  %v834_v34 = vrot.slane %v833_v28, 4  ;;  %v2262_v14 = vcombine.low %v3346_v33, %v3351_v11  ;;  %v2711_v30 = vld [vmem:[#allocation6 + $0x220] sm:$0xff]   ;;  %v883_v23 = vld [vmem:[#allocation2 + $0x18] sm:$0xe] }
  0xbd   : > { %2528 = vmatpush3.bf16.msra.mxu0 %v2706_v0  ;;  %v3391_v0 = vld [vmem:[#allocation2 + $0x40] sm:$0xf]  ;;  %v653_v8 = vrot.slane %v651_v54, 5  ;;  %v377_v21 = vsel %vm3080_vm9, %v307_v56, %v376_v26  ;;  %v847_v38 = vor.u32 %v846_v58, %v843_v32  ;;  %v2226_v18 = vrot.slane %v703_v19, 9 }
  0xbe   : > { %2529 = vmatprep.subr.bf16.mxu0 %v2708_v15  ;;  %2559 = vmatpush3.bf16.msra.mxu1 %v2708_v15  ;;  %v667_v39 = vrot.slane %v665_v61, 5  ;;  %378 = vst [vmem:[#allocation2 + $0x44] sm:$0x1] %v377_v21  ;;  %v747_v1 = vrot.slane %v3381_v13, 5  ;;  %v839_v33 = vsel %vm3094_vm10, %v834_v34, %v838_v62  ;;  %v2227_v41 = vrot.slane %v3385_v24, 9  ;;  %v2714_v34 = vld [vmem:[#allocation6 + $0x230] sm:$0xff]  }
  0xbf   : > { %2552 = vmatprep.subr.bf16.mxu1 %v2709_v27  ;;  %v654_v48 = vsel %vm3094_vm10, %v649_v42, %v653_v8  ;;  %v855_v56 = vshrl.u32 %v3391_v0, 16  ;;  %v848_v11 = vrot.slane %v847_v38, 4  ;;  %v858_v25 = vshll.u32 %v3391_v0, 16  ;;  %v886_v61 = vld [vmem:[#allocation2 + $0x30] sm:$0xe] }
  0xc0   : > { %1853 = vmatmul.mubr.bf16.gmra.mrb[20].mxu0 %v2253_v20  ;;  %v3418_v35 = vsel %vm3102_vm11, %v2226_v18, %v747_v1  ;;  %v869_v40 = vshrl.u32 %v3397_v31, 16  ;;  %v872_v36 = vshll.u32 %v3397_v31, 16  ;;  %v878_v4 = vshll.u32 %v3405_v9, 16  ;;  %v887_v21 = vld [vmem:[#allocation2 + $0x38] sm:$0xe] }
  0xc1   : > { %2530 = vmatpush3.bf16.msra.mxu0 %v2708_v15  ;;  %1860 = vmatprep.mubr.bf16.mxu0 %v2258_v6  ;;  %v668_v15 = vsel %vm3094_vm10, %v663_v60, %v667_v39  ;;  %v857_v63 = vrot.slane %v855_v56, 4  ;;  %v853_v52 = vsel %vm3094_vm10, %v848_v11, %v852_v59  ;;  %v860_v20 = vrot.slane %v858_v25, 5  ;;  %v884_v1 = vld [vmem:[#allocation2 + $0x20] sm:$0xe]  ;;  %v885_v56 = vld [vmem:[#allocation2 + $0x28] sm:$0xe] }
  0xc2   : > { %2531 = vmatprep.subr.bf16.mxu0 %v2709_v27  ;;  %v2254_v47 = vcombine.low %v654_v48, %v668_v15  ;;  %2560 = vmatpush3.bf16.msra.mxu1 %v2709_v27  ;;  %v936_v7 = vrot.slane %v3405_v9, 5  ;;  %v2266_v26 = vcombine.low %v839_v33, %v853_v52  ;;  %v871_v6 = vrot.slane %v869_v40, 4  ;;  %v888_v11 = vld [vmem:[#allocation2 + $0x40] sm:$0xe] }
  0xc3   : > { %2553 = vmatprep.subr.bf16.mxu1 %v2711_v30  ;;  %v874_v16 = vrot.slane %v872_v36, 5  ;;  %v676_v17 = vor.u32 %v3274_v49, %v3270_v46  ;;  %v861_v19 = vor.u32 %v860_v20, %v857_v63  ;;  %v880_v3 = vrot.slane %v878_v4, 5  ;;  %v889_v63 = vld [vmem:[#allocation2 + $0x48] sm:$0xe] }
  0xc4   : > { %v679_v62 = vshll.u32 %v3381_v13, 16  ;;  %v690_v22 = vor.u32 %v3278_v51, %v3276_v50  ;;  %1925 = vmatprep.mubr.bf16.mxu1 %v2266_v26  ;;  %v2263_v42 = vcombine.low %v3391_v0, %v3397_v31  ;;  %v2228_v54 = vrot.slane %v882_v43, 9  ;;  %v2715_v36 = vld [vmem:[#allocation6 + $0x238] sm:$0xff]  }
  0xc5   : > { %2532 = vmatpush3.bf16.msra.mxu0 %v2709_v27  ;;  %v584_v24 = vld [vmem:[#allocation2 + $0x44] sm:$0x1]  ;;  %v875_v28 = vor.u32 %v874_v16, %v871_v6  ;;  %v677_v32 = vrot.slane %v676_v17, 4  ;;  %1926 = vmatmul.mubr.bf16.gmra.mrb[24].mxu1 %v2262_v14  ;;  %v862_v49 = vrot.slane %v861_v19, 4  ;;  %v908_v8 = vrot.slane %v3282_v53, 5 }
  0xc6   : > { %2533 = vmatprep.subr.bf16.mxu0 %v2711_v30  ;;  %v3432_v27 = vld [vmem:[#allocation2 + $0x44] sm:$0x1]  ;;  %v751_v46 = vrot.slane %v584_v24, 5  ;;  %2561 = vmatpush3.bf16.msra.mxu1 %v2711_v30  ;;  %v681_v58 = vrot.slane %v679_v62, 5  ;;  %v691_v59 = vrot.slane %v690_v22, 4  ;;  %v693_v60 = vshll.u32 %v584_v24, 16 }
  0xc7   : > { %v864_v13 = vshll.u32 %v3432_v27, 16  ;;  %v932_v50 = vrot.slane %v3432_v27, 5  ;;  %v876_v51 = vrot.slane %v875_v28, 4  ;;  %2554 = vmatprep.subr.bf16.mxu1 %v2712_v29  ;;  %v2229_v14 = vrot.slane %v883_v23, 9 }
  0xc8   : > { %1861 = vmatmul.mubr.bf16.gmra.mrb[24].mxu0 %v2254_v47  ;;  %v752_v0 = vsel %vm3102_vm11, %v2227_v41, %v751_v46  ;;  %v695_v18 = vrot.slane %v693_v60, 5  ;;  %v909_v48 = vsel %vm3102_vm11, %v2228_v54, %v908_v8  ;;  %v912_v53 = vrot.slane %v3285_v57, 5 }
  0xc9   : > { %2534 = vmatpush3.bf16.msra.mxu0 %v2711_v30  ;;  %v866_v31 = vrot.slane %v864_v13, 5  ;;  %v2259_v38 = vcombine.low %v3418_v35, %v752_v0  ;;  %v881_v39 = vsel %vm3094_vm10, %v876_v51, %v880_v3  ;;  %v682_v30 = vsel %vm3094_vm10, %v677_v32, %v681_v58 }
  0xca   : > { %2535 = vmatprep.subr.bf16.mxu0 %v2712_v29  ;;  %v2232_v41 = vrot.slane %v886_v61, 9  ;;  %2562 = vmatpush3.bf16.msra.mxu1 %v2712_v29  ;;  %v696_v35 = vsel %vm3094_vm10, %v691_v59, %v695_v18  ;;  %v924_v25 = vrot.slane %v3353_v10, 5  ;;  %v2233_v47 = vrot.slane %v887_v21, 9 }
  0xcb   : > { %v867_v33 = vsel %vm3094_vm10, %v862_v49, %v866_v31  ;;  %1868 = vmatprep.mubr.bf16.mxu0 %v2259_v38  ;;  %v2255_v40 = vcombine.low %v682_v30, %v696_v35  ;;  %2555 = vmatprep.subr.bf16.mxu1 %v2714_v34  ;;  %v913_v57 = vsel %vm3102_vm11, %v2229_v14, %v912_v53  ;;  %v928_v52 = vrot.slane %v3364_v37, 5 }
  0xcc   : > { %v2267_v15 = vcombine.low %v867_v33, %v881_v39  ;;  %v2230_v20 = vrot.slane %v884_v1, 9  ;;  %v2268_v4 = vcombine.low %v909_v48, %v913_v57  ;;  %v925_v2 = vsel %vm3102_vm11, %v2232_v41, %v924_v25 }
  0xcd   : > { %2536 = vmatpush3.bf16.msra.mxu0 %v2712_v29  ;;  %v2231_v43 = vrot.slane %v885_v56, 9  ;;  %v2234_v26 = vrot.slane %v888_v11, 9  ;;  %v929_v10 = vsel %vm3102_vm11, %v2233_v47, %v928_v52  ;;  %v2235_v6 = vrot.slane %v889_v63, 9 }
  0xce   : > { %2537 = vmatprep.subr.bf16.mxu0 %v2714_v34  ;;  %1933 = vmatprep.mubr.bf16.mxu1 %v2267_v15  ;;  %v917_v29 = vsel %vm3102_vm11, %v2230_v20, %v916_v55  ;;  %v2270_v37 = vcombine.low %v925_v2, %v929_v10 }
  0xcf   : > { %1934 = vmatmul.mubr.bf16.gmra.mrb[28].mxu1 %v2263_v42  ;;  %v921_v16 = vsel %vm3102_vm11, %v2231_v43, %v920_v12  ;;  %v933_v17 = vsel %vm3102_vm11, %v2234_v26, %v932_v50  ;;  %v937_v44 = vsel %vm3102_vm11, %v2235_v6, %v936_v7 }
  0xd0   : > { %1869 = vmatmul.mubr.bf16.gmra.mrb[28].mxu0 %v2255_v40  ;;  %2563 = vmatpush3.bf16.msra.mxu1 %v2714_v34  ;;  %v2269_v55 = vcombine.low %v917_v29, %v921_v16  ;;  %v2271_v19 = vcombine.low %v933_v17, %v937_v44 }
  0xd1   : > { %2538 = vmatpush3.bf16.msra.mxu0 %v2714_v34  ;;  %2556 = vmatprep.subr.bf16.mxu1 %v2715_v36 }
  0xd2   : > { %2539 = vmatprep.subr.bf16.mxu0 %v2715_v36  ;;  %2541 = vmatprep.mubr.bf16.mxu0 %v2268_v4 }
  0xd3   : > { %2545 = vmatprep.mubr.bf16.mxu1 %v2270_v37 }
  0xd4   : > { %2564 = vmatpush3.bf16.msra.mxu1 %v2715_v36 }
  0xd5   : > { %2540 = vmatpush3.bf16.msra.mxu0 %v2715_v36 }
  0xd7   : > { %2546 = vmatmul.mubr.bf16.vlgmr.msra.gmra.mrb[32].mxu1 %v2271_v19 }
  0xd8   : > { %2542 = vmatmul.mubr.bf16.vlgmr.msra.gmra.mrb[32].mxu0 %v2269_v55 }
 0x14f   : > { %v2409_v45 = vpop.f32.mrb[0].mxu1 }
 0x150   : > { %v2410_v12 = vpop.f32.mrb[1].mxu1 }
 0x151   : > { %v2411_v3 = vadd.f32 %v2410_v12, %v2409_v45  ;;  %v2412_v62 = vpop.f32.mrb[2].mxu1 }
 0x152   : > { %v2413_v22 = vpop.f32.mrb[3].mxu1 }
 0x153   : > { %v2414_v23 = vadd.f32 %v2413_v22, %v2412_v62 }
 0x154   : > { %v2369_v24 = vpop.f32.mrb[0].mxu0 }
 0x155   : > { %v2370_v27 = vpop.f32.mrb[1].mxu0 }
 0x156   : > { %v2371_v9 = vadd.f32 %v2370_v27, %v2369_v24  ;;  %v2372_v28 = vpop.f32.mrb[2].mxu0 }
 0x157   : > { %v2373_v5 = vpop.f32.mrb[3].mxu0 }
 0x158   : > { %v1782_v7 = vadd.f32 %v2411_v3, %v2371_v9  ;;  %v2374_v32 = vadd.f32 %v2373_v5, %v2372_v28 }
 0x15a   : > { %v1785_v42 = vadd.f32 %v2414_v23, %v2374_v32 }
 0x15f   : > { %v2415_v54 = vpop.f32.mrb[4].mxu1 }
 0x160   : > { %v2416_v46 = vpop.f32.mrb[5].mxu1  ;;  %v2375_v49 = vpop.f32.mrb[4].mxu0 }
 0x161   : > { %v2417_v13 = vadd.f32 %v2416_v46, %v2415_v54  ;;  %v2418_v50 = vpop.f32.mrb[6].mxu1  ;;  %v2376_v51 = vpop.f32.mrb[5].mxu0 }
 0x162   : > { %v2419_v58 = vpop.f32.mrb[7].mxu1  ;;  %v2377_v59 = vadd.f32 %v2376_v51, %v2375_v49  ;;  %v2378_v60 = vpop.f32.mrb[6].mxu0 }
 0x163   : > { %v2420_v61 = vadd.f32 %v2419_v58, %v2418_v50  ;;  %v2379_v0 = vpop.f32.mrb[7].mxu0 }
 0x164   : > { %v1790_v31 = vadd.f32 %v2417_v13, %v2377_v59  ;;  %v2380_v34 = vadd.f32 %v2379_v0, %v2378_v60 }
 0x166   : > { %v1793_v8 = vadd.f32 %v2420_v61, %v2380_v34 }
 0x16c   : > { %v2421_v14 = vpop.f32.mrb[8].mxu1 }
 0x16d   : > { %v2422_v21 = vpop.f32.mrb[9].mxu1 }
 0x16e   : > { %v2423_v38 = vadd.f32 %v2422_v21, %v2421_v14  ;;  %v2424_v39 = vpop.f32.mrb[10].mxu1 }
 0x16f   : > { %v2425_v30 = vpop.f32.mrb[11].mxu1  ;;  %v2381_v18 = vpop.f32.mrb[8].mxu0 }
 0x170   : > { %v2426_v1 = vadd.f32 %v2425_v30, %v2424_v39  ;;  %v2382_v33 = vpop.f32.mrb[9].mxu0 }
 0x171   : > { %v2383_v48 = vadd.f32 %v2382_v33, %v2381_v18  ;;  %v2384_v53 = vpop.f32.mrb[10].mxu0 }
 0x172   : > { %v2385_v41 = vpop.f32.mrb[11].mxu0 }
 0x173   : > { %v1798_v56 = vadd.f32 %v2423_v38, %v2383_v48  ;;  %v2386_v11 = vadd.f32 %v2385_v41, %v2384_v53 }
 0x175   : > { %v1801_v15 = vadd.f32 %v2426_v1, %v2386_v11 }
 0x17f   : > { %v2427_v35 = vpop.f32.mrb[12].mxu1 }
 0x180   : > { %v2428_v25 = vpop.f32.mrb[13].mxu1 }
 0x181   : > { %v2429_v47 = vadd.f32 %v2428_v25, %v2427_v35  ;;  %v2430_v63 = vpop.f32.mrb[14].mxu1 }
 0x182   : > { %v2431_v36 = vpop.f32.mrb[15].mxu1 }
 0x183   : > { %v2387_v40 = vpop.f32.mrb[12].mxu0  ;;  %v2432_v52 = vadd.f32 %v2431_v36, %v2430_v63 }
 0x184   : > { %v2388_v57 = vpop.f32.mrb[13].mxu0 }
 0x185   : > { %v2389_v20 = vadd.f32 %v2388_v57, %v2387_v40  ;;  %v2390_v4 = vpop.f32.mrb[14].mxu0 }
 0x186   : > { %v2391_v2 = vpop.f32.mrb[15].mxu0 }
 0x187   : > { %v1806_v43 = vadd.f32 %v2429_v47, %v2389_v20  ;;  %v2392_v26 = vadd.f32 %v2391_v2, %v2390_v4  ;;  %v2489_v6 = vpop.f32.mrb[16].mxu1 }
 0x188   : > { %v2490_v16 = vpop.f32.mrb[17].mxu1 }
 0x189   : > { %v3475_v10 = vadd.f32 %v2432_v52, %v2392_v26  ;;  %v2491_v55 = vadd.f32 %v2490_v16, %v2489_v6  ;;  %v2492_v19 = vpop.f32.mrb[18].mxu1 }
 0x18a   : > { %v2493_v12 = vpop.f32.mrb[19].mxu1 }
 0x18b   : > { %v2449_v29 = vpop.f32.mrb[16].mxu0  ;;  %v2494_v22 = vadd.f32 %v2493_v12, %v2492_v19 }
 0x18c   : > { %v2450_v37 = vpop.f32.mrb[17].mxu0 }
 0x18d   : > { %v2451_v17 = vadd.f32 %v2450_v37, %v2449_v29  ;;  %v2452_v44 = vpop.f32.mrb[18].mxu0 }
 0x18e   : > { %v2453_v45 = vpop.f32.mrb[19].mxu0 }
 0x18f   : > { %v1847_v3 = vadd.f32 %v2451_v17, %v1782_v7  ;;  %v2454_v62 = vadd.f32 %v2453_v45, %v2452_v44  ;;  %v2495_v9 = vpop.f32.mrb[20].mxu1 }
 0x190   : > { %v2496_v32 = vpop.f32.mrb[21].mxu1 }
 0x191   : > { %v1850_v23 = vadd.f32 %v2454_v62, %v1785_v42  ;;  %v1912_v24 = vadd.f32 %v2491_v55, %v1847_v3  ;;  %v2497_v49 = vadd.f32 %v2496_v32, %v2495_v9  ;;  %v2498_v13 = vpop.f32.mrb[22].mxu1 }
 0x192   : > { %v2499_v51 = vpop.f32.mrb[23].mxu1 }
 0x193   : > { %v2455_v27 = vpop.f32.mrb[20].mxu0  ;;  %v3477_v28 = vadd.f32 %v2494_v22, %v1850_v23  ;;  %v2500_v60 = vadd.f32 %v2499_v51, %v2498_v13 }
 0x194   : > { %v2456_v5 = vpop.f32.mrb[21].mxu0 }
 0x195   : > { %v2457_v54 = vadd.f32 %v2456_v5, %v2455_v27  ;;  %v2458_v46 = vpop.f32.mrb[22].mxu0 }
 0x196   : > { %v2459_v50 = vpop.f32.mrb[23].mxu0 }
 0x197   : > { %v1855_v58 = vadd.f32 %v2457_v54, %v1790_v31  ;;  %v2460_v59 = vadd.f32 %v2459_v50, %v2458_v46 }
 0x198   : > { %v2501_v14 = vpop.f32.mrb[24].mxu1 }
 0x199   : > { %v1858_v7 = vadd.f32 %v2460_v59, %v1793_v8  ;;  %v1920_v61 = vadd.f32 %v2497_v49, %v1855_v58  ;;  %v2502_v39 = vpop.f32.mrb[25].mxu1 }
 0x19a   : > { %v2503_v18 = vadd.f32 %v2502_v39, %v2501_v14  ;;  %v2504_v1 = vpop.f32.mrb[26].mxu1 }
 0x19b   : > { %v2461_v0 = vpop.f32.mrb[24].mxu0  ;;  %v1923_v42 = vadd.f32 %v2500_v60, %v1858_v7  ;;  %v2505_v53 = vpop.f32.mrb[27].mxu1 }
 0x19c   : > { %v2462_v34 = vpop.f32.mrb[25].mxu0  ;;  %v2506_v41 = vadd.f32 %v2505_v53, %v2504_v1 }
 0x19d   : > { %v2463_v21 = vadd.f32 %v2462_v34, %v2461_v0  ;;  %v2464_v38 = vpop.f32.mrb[26].mxu0 }
 0x19e   : > { %v2465_v30 = vpop.f32.mrb[27].mxu0 }
 0x19f   : > { %v1863_v33 = vadd.f32 %v2463_v21, %v1798_v56  ;;  %v2466_v48 = vadd.f32 %v2465_v30, %v2464_v38 }
 0x1a1   : > { %v1866_v31 = vadd.f32 %v2466_v48, %v1801_v15  ;;  %v1928_v11 = vadd.f32 %v2503_v18, %v1863_v33 }
 0x1a2   : > { %v2507_v25 = vpop.f32.mrb[28].mxu1 }
 0x1a3   : > { %v1931_v35 = vadd.f32 %v2506_v41, %v1866_v31  ;;  %v2467_v8 = vpop.f32.mrb[28].mxu0  ;;  %v2508_v63 = vpop.f32.mrb[29].mxu1 }
 0x1a4   : > { %v2468_v47 = vpop.f32.mrb[29].mxu0  ;;  %v2509_v57 = vadd.f32 %v2508_v63, %v2507_v25  ;;  %v2510_v52 = vpop.f32.mrb[30].mxu1 }
 0x1a5   : > { %v2469_v40 = vadd.f32 %v2468_v47, %v2467_v8  ;;  %v2470_v36 = vpop.f32.mrb[30].mxu0  ;;  %v2511_v4 = vpop.f32.mrb[31].mxu1 }
 0x1a6   : > { %v2471_v20 = vpop.f32.mrb[31].mxu0  ;;  %v2512_v26 = vadd.f32 %v2511_v4, %v2510_v52 }
 0x1a7   : > { %v1871_v56 = vadd.f32 %v2469_v40, %v1806_v43  ;;  %v2472_v2 = vadd.f32 %v2471_v20, %v2470_v36 }
 0x1a9   : > { %v1874_v29 = vadd.f32 %v2472_v2, %v3475_v10  ;;  %v1936_v15 = vadd.f32 %v2509_v57, %v1871_v56 }
 0x1aa   : > { %v2547_v37 = vpop.f32.mrb[32].mxu1 }
 0x1ab   : > { %v2543_v6 = vpop.f32.mrb[32].mxu0  ;;  %v1939_v16 = vadd.f32 %v2512_v26, %v1874_v29  ;;  %v3485_v44 = vadd.f32 %v2547_v37, %v1936_v15  ;;  %v1992_v55 = vpop.f32.mrb[33].mxu1 }
 0x1ac   : > { %v1985_v17 = vadd.f32 %v2543_v6, %v1920_v61  ;;  %v1976_v43 = vpop.f32.mrb[33].mxu0  ;;  %v1993_v19 = vadd.f32 %v1992_v55, %v1928_v11  ;;  %v2548_v12 = vpop.f32.mrb[34].mxu1 }
 0x1ad   : > { %v1977_v10 = vadd.f32 %v1976_v43, %v1912_v24  ;;  %v2544_v45 = vpop.f32.mrb[34].mxu0  ;;  %2013 = vst [vmem:[%s3481_s20 + $0x30] sm:$0xff] %v3485_v44  ;;  %v2004_v62 = vadd.f32 %v2548_v12, %v1939_v16  ;;  %v1995_v23 = vpop.f32.mrb[35].mxu1 }
 0x1ae   : > { %2009 = vst [vmem:[%s3481_s20 + $0x10] sm:$0xff] %v1985_v17  ;;  %v1988_v3 = vadd.f32 %v2544_v45, %v1923_v42  ;;  %v1979_v22 = vpop.f32.mrb[35].mxu0  ;;  %2011 = vst [vmem:[%s3481_s20 + $0x20] sm:$0xff] %v1993_v19  ;;  %v1996_v27 = vadd.f32 %v1995_v23, %v1931_v35 }
 0x1af   : > { %2007 = vst [vmem:[%s3481_s20] sm:$0xff] %v1977_v10  ;;  %v1980_v24 = vadd.f32 %v1979_v22, %v3477_v28  ;;  %2014 = vst [vmem:[%s3481_s20 + $0x38] sm:$0xff] %v2004_v62  ;;  %v2029_v9 = vmul.f32 %v1977_v10, %v1977_v10 }
 0x1b0   : > { %2010 = vst [vmem:[%s3481_s20 + $0x18] sm:$0xff] %v1988_v3  ;;  %2012 = vst [vmem:[%s3481_s20 + $0x28] sm:$0xff] %v1996_v27 }
 0x1b1   : > { %2008 = vst [vmem:[%s3481_s20 + $0x8] sm:$0xff] %v1980_v24  ;;  %v2015_v5 = vadd.f32 %v1980_v24, %v1977_v10  ;;  %v2030_v32 = vmul.f32 %v1980_v24, %v1980_v24 }
 0x1b2   : > { %2787 = shalt.err (!%p2784_p7)
}
 0x1b3   : > { %s2788_s30 = scalar_lea.hbm %s3495_s26, 1024  ;;  %s2792_s10 = scalar_lea.hbm %s3582_s2, 2048 }
 0x1b4   : > { %p2789_p9 = scmp.ne.s32.totalorder %s3495_s26, %s2788_s30  ;;  %p2793_p5 = scmp.lt.u32.totalorder %s3495_s26, %s3582_s2 }
 0x1b5   : > { %p2794_p11 = scmp.lt.u32.totalorder %s2792_s10, %s2788_s30  ;;  %p2796_p4 = scmp.lt.u32.totalorder %s2788_s30, %s3495_s26 }
 0x1b6   : > { %p2790_p1 = pnand %p2789_p9, %p3001_p12 }
 0x1b7   : > { %p2795_p2 = por %p2794_p11, %p2793_p5 }
 0x1b8   : > { %p2791_p0 = pneg %p2790_p1 }
 0x1b9   : > { %p2797_p6 = por %p2796_p4, %p2795_p2 }
 0x1bb   : > { %p2798_p8 = pnand %p2797_p6, %p2791_p0 }
 0x1bd   : > { %2801 = shalt.err (!%p2798_p8)
}
 0x1be   : > { %s2884_s20 = smov 128   ;;  %s2885_s9 = smov 8   ;;  %v2031_v28 = vmul.f32 %v1985_v17, %v1985_v17  ;;  %v2016_v54 = vadd.f32 %v2015_v5, %v1985_v17  ;;  %v2037_v46 = vadd.f32 %v2030_v32, %v2029_v9  ;;  %v2032_v49 = vmul.f32 %v1988_v3, %v1988_v3 }
 0x1bf   : > { %2571 = dma.vmem_to_hbm [thread:$0]  (%p3001_p12), %s3487_s8, 1024, %s3495_s26, %s2054_s5, %s2884_s20, %s2884_s20, %s2885_s9   ;;  %v2033_v51 = vmul.f32 %v1993_v19, %v1993_v19  ;;  %v2034_v7 = vmul.f32 %v1996_v27, %v1996_v27  ;;  %v2035_v0 = vmul.f32 %v3485_v44, %v3485_v44  ;;  %v2036_v14 = vmul.f32 %v2004_v62, %v2004_v62 }
 0x1c0   : > { %v2038_v13 = vadd.f32 %v2037_v46, %v2031_v28  ;;  %v2017_v50 = vadd.f32 %v2016_v54, %v1988_v3  ;;  %s2211_s8 = sshll.u32 %s3052_s6, 1  ;;  %s2348_s4 = sshll.u32 %s2928_s16, 5 }
 0x1c1   : > { %s214_s25 = scalar_lea.vmem [#allocation9], %s2211_s8  ;;  %s3536_s28 = scalar_lea.hbm %s3583_s3, %s2348_s4 }
 0x1c2   : > { %v2018_v58 = vadd.f32 %v2017_v50, %v1993_v19  ;;  %v2039_v59 = vadd.f32 %v2038_v13, %v2032_v49  ;;  %s2088_s26 = sshll.u32 %s214_s25, 4  ;;  %s2059_s23 = scalar_lea.sflag [#allocation10], %s3052_s6  ;;  %s3538_s26 = int_to_ptr.vmem [resolvable:$true] %s2088_s26 }
 0x1c3   : > { %s2802_s29 = scalar_lea.vmem %s3538_s26, 32  ;;  %s2886_s16 = smov [#allocation9]  }
 0x1c4   : > { %v2019_v60 = vadd.f32 %v2018_v58, %v1996_v27  ;;  %v2040_v61 = vadd.f32 %v2039_v59, %v2033_v51  ;;  %p2803_p10 = scmp.ne.s32.totalorder %s3538_s26, %s2802_s29  ;;  %s2806_s30 = sshll.u32 %s2886_s16, 4  ;;  %s2807_s30 = int_to_ptr.vmem [resolvable:$false] %s2806_s30 }
 0x1c5   : > { %s2808_s22 = scalar_lea.vmem %s2807_s30, 64  ;;  %p2809_p7 = scmp.lt.s32.totalorder %s3538_s26, %s2807_s30 }
 0x1c6   : > { %v2020_v42 = vadd.f32 %v2019_v60, %v3485_v44  ;;  %v2041_v34 = vadd.f32 %v2040_v61, %v2034_v7  ;;  %p2804_p13 = pnand %p2803_p10, %p3001_p12  ;;  %p2810_p9 = scmp.lt.s32.totalorder %s2808_s22, %s2802_s29 }
 0x1c8   : > { %v2021_v21 = vadd.f32 %v2020_v42, %v2004_v62  ;;  %v2042_v38 = vadd.f32 %v2041_v34, %v2035_v0  ;;  %p2805_p3 = pneg %p2804_p13  ;;  %p2811_p1 = por %p2810_p9, %p2809_p7 }
 0x1ca   : > { %v2022_v39 = vrot.slane %v2021_v21, 4  ;;  %v2043_v30 = vadd.f32 %v2042_v38, %v2036_v14  ;;  %p2812_p0 = pnand %p2811_p1, %p2805_p3 }
 0x1cc   : > { %v2023_v18 = vadd.f32 %v2022_v39, %v2021_v21  ;;  %v2044_v1 = vrot.slane %v2043_v30, 4 }
 0x1ce   : > { %v2024_v33 = vrot.slane %v2023_v18, 2  ;;  %v2045_v48 = vadd.f32 %v2044_v1, %v2043_v30 }
 0x1d0   : > { %v2025_v53 = vadd.f32 %v2024_v33, %v2023_v18  ;;  %v2046_v41 = vrot.slane %v2045_v48, 2 }
 0x1d2   : > { %v2026_v31 = vrot.slane %v2025_v53, 1  ;;  %v2047_v11 = vadd.f32 %v2046_v41, %v2045_v48 }
 0x1d4   : > { %v2027_v35 = vadd.f32 %v2026_v31, %v2025_v53  ;;  %v2048_v8 = vrot.slane %v2047_v11, 1 }
 0x1d6   : > { %v2049_v25 = vadd.f32 %v2048_v8, %v2047_v11  ;;  %2051 = vst [vmem:[%s214_s25] sm:$0x1] %v2027_v35 }
 0x1d8   : > { %2052 = vst [vmem:[%s214_s25 + $0x1] sm:$0x1] %v2049_v25 }
 0x1d9   : > { %2815 = shalt.err (!%p2812_p0)
}
 0x1da   : > { %s2816_s6 = scalar_lea.hbm %s3536_s28, 32  ;;  %s2820_s11 = scalar_lea.hbm %s3583_s3, 64 }
 0x1db   : > { %p2817_p5 = scmp.ne.s32.totalorder %s3536_s28, %s2816_s6  ;;  %p2821_p4 = scmp.lt.u32.totalorder %s3536_s28, %s3583_s3 }
 0x1dc   : > { %p2822_p6 = scmp.lt.u32.totalorder %s2820_s11, %s2816_s6  ;;  %p2824_p10 = scmp.lt.u32.totalorder %s2816_s6, %s3536_s28 }
 0x1dd   : > { %p2818_p11 = pnand %p2817_p5, %p3001_p12 }
 0x1de   : > { %p2823_p8 = por %p2822_p6, %p2821_p4 }
 0x1df   : > { %p2819_p2 = pneg %p2818_p11 }
 0x1e0   : > { %p2825_p13 = por %p2824_p10, %p2823_p8 }
 0x1e2   : > { %p2826_p3 = pnand %p2825_p13, %p2819_p2 }
 0x1e4   : > { %2829 = shalt.err (!%p2826_p3)
}
 0x1e5   : > { %2572 = dma.vmem_to_hbm [thread:$0]  (%p3001_p12), %s3538_s26, 32, %s3536_s28, %s2059_s23  }
 0x1e6 PF: > { %s2100_s9 = sand.u32 1, %s2864_s12   ;;  %p3606_p7 = scmp.ne.s32.totalorder %s3588_s19, 0 }
 0x1e7   : > { %p3607_p9 = scmp.ge.s32.totalorder %s2876_s15, 2  ;;  %s2101_s8 = scalar_lea.sflag [#allocation5], %s2100_s9 }
 0x1e9   : > { %p2584_p1 = pnand %p3607_p9, %p3606_p7 }
 0x1eb   : > { %2855 = dma.done.wait (!%p2584_p1), %s2101_s8, 1024  }
 0x1ec   : > { %2857 = vsyncadd (!%p2584_p1), %s2101_s8, 4294966272  ;;  %s2110_s4 = scalar_lea.sflag [#allocation10], %s2100_s9 }
 0x1ed   : > { %2859 = dma.done.wait (!%p2584_p1), %s2110_s4, 32  }
 0x1ee   : > { %2861 = vsyncadd (!%p2584_p1), %s2110_s4, 4294967264  ;;  %p21_p12 = scmp.ge.s32.totalorder %s2963_s24, 4   ;;  %s3608_s12 = smov %s2868_s13 }
 0x1ef   : > { %s3609_s13 = smov %s2872_s14  ;;  %s3610_s14 = smov %s2997_s17 }
 0x1f0   : > { %s3611_s15 = smov %s2963_s24  ;;  %23 = sbr.rel (!%p21_p12) target bundleno = 8 (0x8), region = 96 }
 0x1f7   :  { %2115 = vsyncpa [#allocation4], 1 }
 0x1f8   :  { %2117 = vsyncpa [#allocation4 + $0x1], 1 }
 0x1f9   :  { %2118 = vsyncpa [#allocation7], 1 }
 0x1fa   :  { %2119 = vsyncpa [#allocation5], 1 }
 0x1fb   :  { %2121 = vsyncpa [#allocation5 + $0x1], 1 }
 0x1fc   :  { %2122 = vsyncpa [#allocation10], 1 }
 0x1fd   :  { %2124 = vsyncpa [#allocation10 + $0x1], 1 }

</bundles_post_ra>
